<compile_context>
chip_gen: v7x
topology: tpu7x:2x2x1
jax: 0.10.0
libtpu: 0.0.40
codegen_flags: <defaults>
</compile_context>

<pallas_src>
import math
import functools

import jax
import jax.numpy as jnp
from jax import lax
from jax.experimental import pallas as pl
from jax.experimental.pallas import tpu as pltpu

EPS = 1e-5
_VMEM_LIMIT = 32 * 1024 * 1024


def _rmsnorm(x, w):
    # x: (S, D) f32, w: (1, D) f32
    ms = jnp.mean(x * x, axis=-1, keepdims=True)
    return w * x * lax.rsqrt(ms + EPS)


# ----------------- fused attention sublayer (one pallas_call) ----------------

def _attn_sublayer_kernel(*refs, n_heads, scale, cross, use_mask):
    idx = 0
    x_ref = refs[idx]; idx += 1
    kv_ref = None
    if cross:
        kv_ref = refs[idx]; idx += 1
    (nw_ref, wq_ref, bq_ref, wk_ref, bk_ref,
     wv_ref, bv_ref, wo_ref, bo_ref) = refs[idx:idx + 9]
    idx += 9
    mask_ref = None
    if use_mask:
        mask_ref = refs[idx]; idx += 1
    o_ref = refs[idx]

    x = x_ref[0].astype(jnp.float32)                          # (Sq, D)
    nx = _rmsnorm(x, nw_ref[...].astype(jnp.float32))         # (Sq, D)
    kv = kv_ref[0].astype(jnp.float32) if cross else nx       # (Sk, D)

    q_in = nx.astype(jnp.bfloat16)
    kv_in = kv.astype(jnp.bfloat16)

    Sq, D = x.shape
    acc = jnp.zeros((Sq, D), jnp.float32)
    # Per-head loop; head weights indexed from pre-split (H, D, Dh)/(H, Dh, D)
    # refs, so no in-kernel lane slicing and no XLA-side head transposes.
    for h in range(n_heads):
        qh = jnp.dot(q_in, wq_ref[h].astype(jnp.bfloat16),
                     preferred_element_type=jnp.float32) + bq_ref[h]   # (Sq, Dh)
        kh = jnp.dot(kv_in, wk_ref[h].astype(jnp.bfloat16),
                     preferred_element_type=jnp.float32) + bk_ref[h]   # (Sk, Dh)
        vh = jnp.dot(kv_in, wv_ref[h].astype(jnp.bfloat16),
                     preferred_element_type=jnp.float32) + bv_ref[h]   # (Sk, Dh)

        # Q.K^T without materializing a transpose of K.
        s = lax.dot_general(qh.astype(jnp.bfloat16), kh.astype(jnp.bfloat16),
                            (((1,), (1,)), ((), ())),
                            preferred_element_type=jnp.float32) * scale  # (Sq, Sk)
        if use_mask:
            s = s + mask_ref[...]
        s = s - jnp.max(s, axis=-1, keepdims=True)
        p = jnp.exp(s)
        p = p * pl.reciprocal(jnp.sum(p, axis=-1, keepdims=True), approx=True)

        oh = jnp.dot(p.astype(jnp.bfloat16), vh.astype(jnp.bfloat16),
                     preferred_element_type=jnp.float32)                # (Sq, Dh)
        acc = acc + jnp.dot(oh.astype(jnp.bfloat16),
                            wo_ref[h].astype(jnp.bfloat16),
                            preferred_element_type=jnp.float32)         # (Sq, D)

    out = x + acc + bo_ref[...].astype(jnp.float32)           # residual + out bias
    o_ref[0] = out.astype(o_ref.dtype)


def _const_spec(arr):
    nd = arr.ndim
    return pl.BlockSpec(arr.shape, lambda b, _nd=nd: (0,) * _nd)


def attn_sublayer(x, kv, norm_w, ap, mask, n_heads):
    """x: (B, Sq, D). kv: (B, Sk, D) or None (self-attn). mask: (Sq, Sk) additive or None."""
    B, Sq, D = x.shape
    cross = kv is not None
    use_mask = mask is not None
    Dh = D // n_heads

    operands = [x]
    in_specs = [pl.BlockSpec((1, Sq, D), lambda b: (b, 0, 0))]
    if cross:
        Sk = kv.shape[1]
        operands.append(kv)
        in_specs.append(pl.BlockSpec((1, Sk, D), lambda b: (b, 0, 0)))
    for w in (norm_w, ap["wq"], ap["bq"], ap["wk"], ap["bk"],
              ap["wv"], ap["bv"], ap["wo"], ap["bo"]):
        operands.append(w)
        in_specs.append(_const_spec(w))   # constant block index -> no re-DMA per step
    if use_mask:
        operands.append(mask)
        in_specs.append(_const_spec(mask))

    kern = functools.partial(_attn_sublayer_kernel, n_heads=n_heads,
                             scale=1.0 / math.sqrt(Dh), cross=cross,
                             use_mask=use_mask)
    return pl.pallas_call(
        kern,
        out_shape=jax.ShapeDtypeStruct((B, Sq, D), x.dtype),
        grid_spec=pltpu.PrefetchScalarGridSpec(
            num_scalar_prefetch=0,
            grid=(B,),
            in_specs=in_specs,
            out_specs=pl.BlockSpec((1, Sq, D), lambda b: (b, 0, 0)),
        ),
        compiler_params=pltpu.CompilerParams(
            dimension_semantics=("parallel",),
            vmem_limit_bytes=_VMEM_LIMIT),
    )(*operands)


# -------------------- fused MLP sublayer (one pallas_call) -------------------

def _mlp_sublayer_kernel(x_ref, nw_ref, w1_ref, b1_ref, w2_ref, b2_ref, o_ref):
    x = x_ref[...].astype(jnp.float32)                         # (tm, D)
    nx = _rmsnorm(x, nw_ref[...].astype(jnp.float32))
    h = jnp.dot(nx.astype(jnp.bfloat16), w1_ref[...].astype(jnp.bfloat16),
                preferred_element_type=jnp.float32) + b1_ref[...]
    h = 0.5 * h * (1.0 + lax.erf(h * (1.0 / math.sqrt(2.0))))  # exact erf GELU
    y = jnp.dot(h.astype(jnp.bfloat16), w2_ref[...].astype(jnp.bfloat16),
                preferred_element_type=jnp.float32) + b2_ref[...]
    o_ref[...] = (x + y).astype(o_ref.dtype)                   # residual


def _pick_row_tile(M, max_tile=256):
    if M <= max_tile:
        return M
    for t in range(max_tile, 7, -8):
        if M % t == 0:
            return t
    return M


def mlp_sublayer(x2d, norm_w, w1, b1, w2, b2):
    M, D = x2d.shape
    Dff = w1.shape[1]
    tm = _pick_row_tile(M)
    # TODO(synk): for production d_model, additionally tile Dff/K with a f32 VMEM
    # accumulator (pl.when init/finalize) so the working set fits v7x's 64 MiB VMEM.
    return pl.pallas_call(
        _mlp_sublayer_kernel,
        out_shape=jax.ShapeDtypeStruct((M, D), x2d.dtype),
        grid_spec=pltpu.PrefetchScalarGridSpec(
            num_scalar_prefetch=0,
            grid=(M // tm,),
            in_specs=[pl.BlockSpec((tm, D), lambda i: (i, 0)),
                      pl.BlockSpec((1, D), lambda i: (0, 0)),
                      pl.BlockSpec((D, Dff), lambda i: (0, 0)),
                      pl.BlockSpec((1, Dff), lambda i: (0, 0)),
                      pl.BlockSpec((Dff, D), lambda i: (0, 0)),
                      pl.BlockSpec((1, D), lambda i: (0, 0))],
            out_specs=pl.BlockSpec((tm, D), lambda i: (i, 0)),
        ),
        compiler_params=pltpu.CompilerParams(
            dimension_semantics=("parallel",),
            vmem_limit_bytes=_VMEM_LIMIT),
    )(x2d, norm_w, w1, b1, w2, b2)


# ------------------------------ decoder block --------------------------------

def decoder_block(x, enc_out, tgt_mask, params, *, n_heads):
    B, S, D = x.shape
    # x = x + self_attn(norm1(x), norm1(x), norm1(x), attn_mask=tgt_mask)
    x = attn_sublayer(x, None, params["norm1_w"], params["self_attn"], tgt_mask, n_heads)
    # x = x + cross_attn(norm2(x), enc_out, enc_out)           (no mask at all)
    x = attn_sublayer(x, enc_out, params["norm2_w"], params["cross_attn"], None, n_heads)
    # x = x + mlp(norm3(x))                 (dropout = identity at inference)
    xf = mlp_sublayer(x.reshape(B * S, D), params["norm3_w"],
                      params["mlp_w1"], params["mlp_b1"],
                      params["mlp_w2"], params["mlp_b2"])
    return xf.reshape(B, S, D)


# ------------------------------ parameter init -------------------------------

def _split_qkv_w(w, H):   # (D, D) -> (H, D, Dh): output columns grouped per head
    D_in, D_out = w.shape
    return w.reshape(D_in, H, D_out // H).transpose(1, 0, 2)


def _split_qkv_b(b, H):   # (1, D) -> (H, 1, Dh)
    D = b.shape[1]
    return b.reshape(1, H, D // H).transpose(1, 0, 2)


def _split_out_w(w, H):   # (D, D) -> (H, Dh, D): input rows grouped per head
    D_in, D_out = w.shape
    return w.reshape(H, D_in // H, D_out)


def init_params(key, d_model, n_heads):
    ks = iter(jax.random.split(key, 32))

    def mat(i, o):
        return jax.random.normal(next(ks), (i, o), jnp.float32) * 0.02

    def vec(n):
        return jax.random.normal(next(ks), (1, n), jnp.float32) * 0.02

    def attn_params():
        return dict(
            wq=_split_qkv_w(mat(d_model, d_model), n_heads),
            bq=_split_qkv_b(vec(d_model), n_heads),
            wk=_split_qkv_w(mat(d_model, d_model), n_heads),
            bk=_split_qkv_b(vec(d_model), n_heads),
            wv=_split_qkv_w(mat(d_model, d_model), n_heads),
            bv=_split_qkv_b(vec(d_model), n_heads),
            wo=_split_out_w(mat(d_model, d_model), n_heads),
            bo=vec(d_model),
        )

    return dict(
        norm1_w=jnp.ones((1, d_model), jnp.float32),
        norm2_w=jnp.ones((1, d_model), jnp.float32),
        norm3_w=jnp.ones((1, d_model), jnp.float32),
        self_attn=attn_params(),
        cross_attn=attn_params(),
        mlp_w1=mat(d_model, 4 * d_model), mlp_b1=vec(4 * d_model),
        mlp_w2=mat(4 * d_model, d_model), mlp_b2=vec(d_model),
    )


# ----------------------------------- main -------------------------------------

if __name__ == "__main__":
    B, S, Se, D, H = 2, 8, 12, 32, 4

    key = jax.random.PRNGKey(0)
    kx, ke, kp = jax.random.split(key, 3)
    x = jax.random.normal(kx, (B, S, D), jnp.float32)
    enc_out = jax.random.normal(ke, (B, Se, D), jnp.float32)
    params = init_params(kp, D, H)

    # causal additive mask (0 on/below diagonal, large-negative above)
    causal = jnp.tril(jnp.ones((S, S), jnp.bool_))
    tgt_mask_add = jnp.where(causal, 0.0, -1e9).astype(jnp.float32)

    # TODO(synk): dropout layers are treated as identity (inference mode).
    fwd = jax.jit(functools.partial(decoder_block, n_heads=H))
    out = fwd(x, enc_out, tgt_mask_add, params)
    jax.block_until_ready(out)
    assert out.shape == (B, S, D) and bool(jnp.all(jnp.isfinite(out)))
    print("KERNEL_OK")
</pallas_src>

<mosaic_0001>
module attributes {stable_mosaic.version = 11 : i64} {
  func.func @_attn_sublayer_kernel(%arg0: i32, %arg1: memref<1x8x32xf32, #tpu.memory_space<vmem>>, %arg2: memref<1x32xf32, #tpu.memory_space<vmem>>, %arg3: memref<4x32x8xf32, #tpu.memory_space<vmem>>, %arg4: memref<4x1x8xf32, #tpu.memory_space<vmem>>, %arg5: memref<4x32x8xf32, #tpu.memory_space<vmem>>, %arg6: memref<4x1x8xf32, #tpu.memory_space<vmem>>, %arg7: memref<4x32x8xf32, #tpu.memory_space<vmem>>, %arg8: memref<4x1x8xf32, #tpu.memory_space<vmem>>, %arg9: memref<4x8x32xf32, #tpu.memory_space<vmem>>, %arg10: memref<1x32xf32, #tpu.memory_space<vmem>>, %arg11: memref<8x8xf32, #tpu.memory_space<vmem>>, %arg12: memref<1x8x32xf32, #tpu.memory_space<vmem>>) attributes {dimension_semantics = [#tpu.dimension_semantics<parallel>], iteration_bounds = array<i64: 2>, scalar_prefetch = 0 : i64, scratch_operands = 0 : i64, tpu.core_type = #tpu.core_type<tc>, window_params = [{transform_indices = @transform_0, window_bounds = array<i64: 1, 8, 32>}, {pipeline_mode = #tpu.pipeline_mode<synchronous>, transform_indices = @transform_1, window_bounds = array<i64: 1, 32>}, {pipeline_mode = #tpu.pipeline_mode<synchronous>, transform_indices = @transform_2, window_bounds = array<i64: 4, 32, 8>}, {pipeline_mode = #tpu.pipeline_mode<synchronous>, transform_indices = @transform_3, window_bounds = array<i64: 4, 1, 8>}, {pipeline_mode = #tpu.pipeline_mode<synchronous>, transform_indices = @transform_4, window_bounds = array<i64: 4, 32, 8>}, {pipeline_mode = #tpu.pipeline_mode<synchronous>, transform_indices = @transform_5, window_bounds = array<i64: 4, 1, 8>}, {pipeline_mode = #tpu.pipeline_mode<synchronous>, transform_indices = @transform_6, window_bounds = array<i64: 4, 32, 8>}, {pipeline_mode = #tpu.pipeline_mode<synchronous>, transform_indices = @transform_7, window_bounds = array<i64: 4, 1, 8>}, {pipeline_mode = #tpu.pipeline_mode<synchronous>, transform_indices = @transform_8, window_bounds = array<i64: 4, 8, 32>}, {pipeline_mode = #tpu.pipeline_mode<synchronous>, transform_indices = @transform_9, window_bounds = array<i64: 1, 32>}, {pipeline_mode = #tpu.pipeline_mode<synchronous>, transform_indices = @transform_10, window_bounds = array<i64: 8, 8>}, {transform_indices = @transform_11, window_bounds = array<i64: 1, 8, 32>}]} {
    %c0 = arith.constant 0 : index
    %c0_0 = arith.constant 0 : index
    %c0_1 = arith.constant 0 : index
    %0 = vector.load %arg1[%c0, %c0_0, %c0_1] : memref<1x8x32xf32, #tpu.memory_space<vmem>>, vector<1x8x32xf32>
    %1 = vector.shape_cast %0 : vector<1x8x32xf32> to vector<8x32xf32>
    %c0_2 = arith.constant 0 : index
    %c0_3 = arith.constant 0 : index
    %2 = vector.load %arg2[%c0_2, %c0_3] : memref<1x32xf32, #tpu.memory_space<vmem>>, vector<1x32xf32>
    %3 = arith.mulf %1, %1 : vector<8x32xf32>
    %cst = arith.constant dense<0.000000e+00> : vector<8xf32>
    %4 = vector.multi_reduction <add>, %3, %cst [1] : vector<8x32xf32> to vector<8xf32>
    %5 = vector.shape_cast %4 : vector<8xf32> to vector<8x1xf32>
    %cst_4 = arith.constant 3.200000e+01 : f32
    %6 = vector.broadcast %cst_4 : f32 to vector<8x1xf32>
    %7 = arith.divf %5, %6 : vector<8x1xf32>
    %8 = vector.broadcast %2 : vector<1x32xf32> to vector<8x32xf32>
    %9 = arith.mulf %8, %1 : vector<8x32xf32>
    %cst_5 = arith.constant 9.99999974E-6 : f32
    %10 = vector.broadcast %cst_5 : f32 to vector<8x1xf32>
    %11 = arith.addf %7, %10 : vector<8x1xf32>
    %12 = math.rsqrt %11 : vector<8x1xf32>
    %13 = vector.broadcast %12 : vector<8x1xf32> to vector<8x32xf32>
    %14 = arith.mulf %9, %13 : vector<8x32xf32>
    %15 = arith.truncf %14 : vector<8x32xf32> to vector<8x32xbf16>
    %16 = arith.truncf %14 : vector<8x32xf32> to vector<8x32xbf16>
    %cst_6 = arith.constant 0.000000e+00 : f32
    %17 = vector.broadcast %cst_6 : f32 to vector<8x32xf32>
    %c0_7 = arith.constant 0 : index
    %c0_8 = arith.constant 0 : index
    %c0_9 = arith.constant 0 : index
    %18 = vector.load %arg3[%c0_7, %c0_8, %c0_9] : memref<4x32x8xf32, #tpu.memory_space<vmem>>, vector<1x32x8xf32>
    %19 = vector.shape_cast %18 : vector<1x32x8xf32> to vector<32x8xf32>
    %20 = arith.truncf %19 : vector<32x8xf32> to vector<32x8xbf16>
    %cst_10 = arith.constant dense<0.000000e+00> : vector<8x8xf32>
    %21 = tpu.matmul %15, %20, %cst_10 {dimension_numbers = #tpu.dot_dimension_numbers<[1], [0], [0], [1], [0, 0, 1, 1], [], []>} : vector<8x32xbf16>, vector<32x8xbf16>, vector<8x8xf32> -> vector<8x8xf32>
    %c0_11 = arith.constant 0 : index
    %c0_12 = arith.constant 0 : index
    %c0_13 = arith.constant 0 : index
    %22 = vector.load %arg4[%c0_11, %c0_12, %c0_13] : memref<4x1x8xf32, #tpu.memory_space<vmem>>, vector<1x1x8xf32>
    %23 = vector.shape_cast %22 : vector<1x1x8xf32> to vector<1x8xf32>
    %24 = vector.broadcast %23 : vector<1x8xf32> to vector<8x8xf32>
    %25 = arith.addf %21, %24 : vector<8x8xf32>
    %c0_14 = arith.constant 0 : index
    %c0_15 = arith.constant 0 : index
    %c0_16 = arith.constant 0 : index
    %26 = vector.load %arg5[%c0_14, %c0_15, %c0_16] : memref<4x32x8xf32, #tpu.memory_space<vmem>>, vector<1x32x8xf32>
    %27 = vector.shape_cast %26 : vector<1x32x8xf32> to vector<32x8xf32>
    %28 = arith.truncf %27 : vector<32x8xf32> to vector<32x8xbf16>
    %cst_17 = arith.constant dense<0.000000e+00> : vector<8x8xf32>
    %29 = tpu.matmul %16, %28, %cst_17 {dimension_numbers = #tpu.dot_dimension_numbers<[1], [0], [0], [1], [0, 0, 1, 1], [], []>} : vector<8x32xbf16>, vector<32x8xbf16>, vector<8x8xf32> -> vector<8x8xf32>
    %c0_18 = arith.constant 0 : index
    %c0_19 = arith.constant 0 : index
    %c0_20 = arith.constant 0 : index
    %30 = vector.load %arg6[%c0_18, %c0_19, %c0_20] : memref<4x1x8xf32, #tpu.memory_space<vmem>>, vector<1x1x8xf32>
    %31 = vector.shape_cast %30 : vector<1x1x8xf32> to vector<1x8xf32>
    %32 = vector.broadcast %31 : vector<1x8xf32> to vector<8x8xf32>
    %33 = arith.addf %29, %32 : vector<8x8xf32>
    %c0_21 = arith.constant 0 : index
    %c0_22 = arith.constant 0 : index
    %c0_23 = arith.constant 0 : index
    %34 = vector.load %arg7[%c0_21, %c0_22, %c0_23] : memref<4x32x8xf32, #tpu.memory_space<vmem>>, vector<1x32x8xf32>
    %35 = vector.shape_cast %34 : vector<1x32x8xf32> to vector<32x8xf32>
    %36 = arith.truncf %35 : vector<32x8xf32> to vector<32x8xbf16>
    %cst_24 = arith.constant dense<0.000000e+00> : vector<8x8xf32>
    %37 = tpu.matmul %16, %36, %cst_24 {dimension_numbers = #tpu.dot_dimension_numbers<[1], [0], [0], [1], [0, 0, 1, 1], [], []>} : vector<8x32xbf16>, vector<32x8xbf16>, vector<8x8xf32> -> vector<8x8xf32>
    %c0_25 = arith.constant 0 : index
    %c0_26 = arith.constant 0 : index
    %c0_27 = arith.constant 0 : index
    %38 = vector.load %arg8[%c0_25, %c0_26, %c0_27] : memref<4x1x8xf32, #tpu.memory_space<vmem>>, vector<1x1x8xf32>
    %39 = vector.shape_cast %38 : vector<1x1x8xf32> to vector<1x8xf32>
    %40 = vector.broadcast %39 : vector<1x8xf32> to vector<8x8xf32>
    %41 = arith.addf %37, %40 : vector<8x8xf32>
    %42 = arith.truncf %25 : vector<8x8xf32> to vector<8x8xbf16>
    %43 = arith.truncf %33 : vector<8x8xf32> to vector<8x8xbf16>
    %cst_28 = arith.constant dense<0.000000e+00> : vector<8x8xf32>
    %44 = tpu.matmul %42, %43, %cst_28 {dimension_numbers = #tpu.dot_dimension_numbers<[1], [1], [0], [0], [0, 0, 1, 0], [], []>} : vector<8x8xbf16>, vector<8x8xbf16>, vector<8x8xf32> -> vector<8x8xf32>
    %cst_29 = arith.constant 0.353553385 : f32
    %45 = vector.broadcast %cst_29 : f32 to vector<8x8xf32>
    %46 = arith.mulf %44, %45 : vector<8x8xf32>
    %c0_30 = arith.constant 0 : index
    %c0_31 = arith.constant 0 : index
    %47 = vector.load %arg11[%c0_30, %c0_31] : memref<8x8xf32, #tpu.memory_space<vmem>>, vector<8x8xf32>
    %48 = arith.addf %46, %47 : vector<8x8xf32>
    %cst_32 = arith.constant dense<0xFF800000> : vector<8xf32>
    %49 = vector.multi_reduction <maximumf>, %48, %cst_32 [1] : vector<8x8xf32> to vector<8xf32>
    %50 = vector.shape_cast %49 : vector<8xf32> to vector<8x1xf32>
    %51 = vector.broadcast %50 : vector<8x1xf32> to vector<8x8xf32>
    %52 = arith.subf %48, %51 : vector<8x8xf32>
    %53 = math.exp %52 : vector<8x8xf32>
    %cst_33 = arith.constant dense<0.000000e+00> : vector<8xf32>
    %54 = vector.multi_reduction <add>, %53, %cst_33 [1] : vector<8x8xf32> to vector<8xf32>
    %55 = vector.shape_cast %54 : vector<8xf32> to vector<8x1xf32>
    %56 = tpu.reciprocal %55 {approx = true} : vector<8x1xf32> -> vector<8x1xf32>
    %57 = vector.broadcast %56 : vector<8x1xf32> to vector<8x8xf32>
    %58 = arith.mulf %53, %57 : vector<8x8xf32>
    %59 = arith.truncf %58 : vector<8x8xf32> to vector<8x8xbf16>
    %60 = arith.truncf %41 : vector<8x8xf32> to vector<8x8xbf16>
    %cst_34 = arith.constant dense<0.000000e+00> : vector<8x8xf32>
    %61 = tpu.matmul %59, %60, %cst_34 {dimension_numbers = #tpu.dot_dimension_numbers<[1], [0], [0], [1], [0, 0, 1, 1], [], []>} : vector<8x8xbf16>, vector<8x8xbf16>, vector<8x8xf32> -> vector<8x8xf32>
    %62 = arith.truncf %61 : vector<8x8xf32> to vector<8x8xbf16>
    %c0_35 = arith.constant 0 : index
    %c0_36 = arith.constant 0 : index
    %c0_37 = arith.constant 0 : index
    %63 = vector.load %arg9[%c0_35, %c0_36, %c0_37] : memref<4x8x32xf32, #tpu.memory_space<vmem>>, vector<1x8x32xf32>
    %64 = vector.shape_cast %63 : vector<1x8x32xf32> to vector<8x32xf32>
    %65 = arith.truncf %64 : vector<8x32xf32> to vector<8x32xbf16>
    %cst_38 = arith.constant dense<0.000000e+00> : vector<8x32xf32>
    %66 = tpu.matmul %62, %65, %cst_38 {dimension_numbers = #tpu.dot_dimension_numbers<[1], [0], [0], [1], [0, 0, 1, 1], [], []>} : vector<8x8xbf16>, vector<8x32xbf16>, vector<8x32xf32> -> vector<8x32xf32>
    %67 = arith.addf %17, %66 : vector<8x32xf32>
    %c1 = arith.constant 1 : index
    %c0_39 = arith.constant 0 : index
    %c0_40 = arith.constant 0 : index
    %68 = vector.load %arg3[%c1, %c0_39, %c0_40] : memref<4x32x8xf32, #tpu.memory_space<vmem>>, vector<1x32x8xf32>
    %69 = vector.shape_cast %68 : vector<1x32x8xf32> to vector<32x8xf32>
    %70 = arith.truncf %69 : vector<32x8xf32> to vector<32x8xbf16>
    %cst_41 = arith.constant dense<0.000000e+00> : vector<8x8xf32>
    %71 = tpu.matmul %15, %70, %cst_41 {dimension_numbers = #tpu.dot_dimension_numbers<[1], [0], [0], [1], [0, 0, 1, 1], [], []>} : vector<8x32xbf16>, vector<32x8xbf16>, vector<8x8xf32> -> vector<8x8xf32>
    %c1_42 = arith.constant 1 : index
    %c0_43 = arith.constant 0 : index
    %c0_44 = arith.constant 0 : index
    %72 = vector.load %arg4[%c1_42, %c0_43, %c0_44] : memref<4x1x8xf32, #tpu.memory_space<vmem>>, vector<1x1x8xf32>
    %73 = vector.shape_cast %72 : vector<1x1x8xf32> to vector<1x8xf32>
    %74 = vector.broadcast %73 : vector<1x8xf32> to vector<8x8xf32>
    %75 = arith.addf %71, %74 : vector<8x8xf32>
    %c1_45 = arith.constant 1 : index
    %c0_46 = arith.constant 0 : index
    %c0_47 = arith.constant 0 : index
    %76 = vector.load %arg5[%c1_45, %c0_46, %c0_47] : memref<4x32x8xf32, #tpu.memory_space<vmem>>, vector<1x32x8xf32>
    %77 = vector.shape_cast %76 : vector<1x32x8xf32> to vector<32x8xf32>
    %78 = arith.truncf %77 : vector<32x8xf32> to vector<32x8xbf16>
    %cst_48 = arith.constant dense<0.000000e+00> : vector<8x8xf32>
    %79 = tpu.matmul %16, %78, %cst_48 {dimension_numbers = #tpu.dot_dimension_numbers<[1], [0], [0], [1], [0, 0, 1, 1], [], []>} : vector<8x32xbf16>, vector<32x8xbf16>, vector<8x8xf32> -> vector<8x8xf32>
    %c1_49 = arith.constant 1 : index
    %c0_50 = arith.constant 0 : index
    %c0_51 = arith.constant 0 : index
    %80 = vector.load %arg6[%c1_49, %c0_50, %c0_51] : memref<4x1x8xf32, #tpu.memory_space<vmem>>, vector<1x1x8xf32>
    %81 = vector.shape_cast %80 : vector<1x1x8xf32> to vector<1x8xf32>
    %82 = vector.broadcast %81 : vector<1x8xf32> to vector<8x8xf32>
    %83 = arith.addf %79, %82 : vector<8x8xf32>
    %c1_52 = arith.constant 1 : index
    %c0_53 = arith.constant 0 : index
    %c0_54 = arith.constant 0 : index
    %84 = vector.load %arg7[%c1_52, %c0_53, %c0_54] : memref<4x32x8xf32, #tpu.memory_space<vmem>>, vector<1x32x8xf32>
    %85 = vector.shape_cast %84 : vector<1x32x8xf32> to vector<32x8xf32>
    %86 = arith.truncf %85 : vector<32x8xf32> to vector<32x8xbf16>
    %cst_55 = arith.constant dense<0.000000e+00> : vector<8x8xf32>
    %87 = tpu.matmul %16, %86, %cst_55 {dimension_numbers = #tpu.dot_dimension_numbers<[1], [0], [0], [1], [0, 0, 1, 1], [], []>} : vector<8x32xbf16>, vector<32x8xbf16>, vector<8x8xf32> -> vector<8x8xf32>
    %c1_56 = arith.constant 1 : index
    %c0_57 = arith.constant 0 : index
    %c0_58 = arith.constant 0 : index
    %88 = vector.load %arg8[%c1_56, %c0_57, %c0_58] : memref<4x1x8xf32, #tpu.memory_space<vmem>>, vector<1x1x8xf32>
    %89 = vector.shape_cast %88 : vector<1x1x8xf32> to vector<1x8xf32>
    %90 = vector.broadcast %89 : vector<1x8xf32> to vector<8x8xf32>
    %91 = arith.addf %87, %90 : vector<8x8xf32>
    %92 = arith.truncf %75 : vector<8x8xf32> to vector<8x8xbf16>
    %93 = arith.truncf %83 : vector<8x8xf32> to vector<8x8xbf16>
    %cst_59 = arith.constant dense<0.000000e+00> : vector<8x8xf32>
    %94 = tpu.matmul %92, %93, %cst_59 {dimension_numbers = #tpu.dot_dimension_numbers<[1], [1], [0], [0], [0, 0, 1, 0], [], []>} : vector<8x8xbf16>, vector<8x8xbf16>, vector<8x8xf32> -> vector<8x8xf32>
    %cst_60 = arith.constant 0.353553385 : f32
    %95 = vector.broadcast %cst_60 : f32 to vector<8x8xf32>
    %96 = arith.mulf %94, %95 : vector<8x8xf32>
    %c0_61 = arith.constant 0 : index
    %c0_62 = arith.constant 0 : index
    %97 = vector.load %arg11[%c0_61, %c0_62] : memref<8x8xf32, #tpu.memory_space<vmem>>, vector<8x8xf32>
    %98 = arith.addf %96, %97 : vector<8x8xf32>
    %cst_63 = arith.constant dense<0xFF800000> : vector<8xf32>
    %99 = vector.multi_reduction <maximumf>, %98, %cst_63 [1] : vector<8x8xf32> to vector<8xf32>
    %100 = vector.shape_cast %99 : vector<8xf32> to vector<8x1xf32>
    %101 = vector.broadcast %100 : vector<8x1xf32> to vector<8x8xf32>
    %102 = arith.subf %98, %101 : vector<8x8xf32>
    %103 = math.exp %102 : vector<8x8xf32>
    %cst_64 = arith.constant dense<0.000000e+00> : vector<8xf32>
    %104 = vector.multi_reduction <add>, %103, %cst_64 [1] : vector<8x8xf32> to vector<8xf32>
    %105 = vector.shape_cast %104 : vector<8xf32> to vector<8x1xf32>
    %106 = tpu.reciprocal %105 {approx = true} : vector<8x1xf32> -> vector<8x1xf32>
    %107 = vector.broadcast %106 : vector<8x1xf32> to vector<8x8xf32>
    %108 = arith.mulf %103, %107 : vector<8x8xf32>
    %109 = arith.truncf %108 : vector<8x8xf32> to vector<8x8xbf16>
    %110 = arith.truncf %91 : vector<8x8xf32> to vector<8x8xbf16>
    %cst_65 = arith.constant dense<0.000000e+00> : vector<8x8xf32>
    %111 = tpu.matmul %109, %110, %cst_65 {dimension_numbers = #tpu.dot_dimension_numbers<[1], [0], [0], [1], [0, 0, 1, 1], [], []>} : vector<8x8xbf16>, vector<8x8xbf16>, vector<8x8xf32> -> vector<8x8xf32>
    %112 = arith.truncf %111 : vector<8x8xf32> to vector<8x8xbf16>
    %c1_66 = arith.constant 1 : index
    %c0_67 = arith.constant 0 : index
    %c0_68 = arith.constant 0 : index
    %113 = vector.load %arg9[%c1_66, %c0_67, %c0_68] : memref<4x8x32xf32, #tpu.memory_space<vmem>>, vector<1x8x32xf32>
    %114 = vector.shape_cast %113 : vector<1x8x32xf32> to vector<8x32xf32>
    %115 = arith.truncf %114 : vector<8x32xf32> to vector<8x32xbf16>
    %cst_69 = arith.constant dense<0.000000e+00> : vector<8x32xf32>
    %116 = tpu.matmul %112, %115, %cst_69 {dimension_numbers = #tpu.dot_dimension_numbers<[1], [0], [0], [1], [0, 0, 1, 1], [], []>} : vector<8x8xbf16>, vector<8x32xbf16>, vector<8x32xf32> -> vector<8x32xf32>
    %117 = arith.addf %67, %116 : vector<8x32xf32>
    %c2 = arith.constant 2 : index
    %c0_70 = arith.constant 0 : index
    %c0_71 = arith.constant 0 : index
    %118 = vector.load %arg3[%c2, %c0_70, %c0_71] : memref<4x32x8xf32, #tpu.memory_space<vmem>>, vector<1x32x8xf32>
    %119 = vector.shape_cast %118 : vector<1x32x8xf32> to vector<32x8xf32>
    %120 = arith.truncf %119 : vector<32x8xf32> to vector<32x8xbf16>
    %cst_72 = arith.constant dense<0.000000e+00> : vector<8x8xf32>
    %121 = tpu.matmul %15, %120, %cst_72 {dimension_numbers = #tpu.dot_dimension_numbers<[1], [0], [0], [1], [0, 0, 1, 1], [], []>} : vector<8x32xbf16>, vector<32x8xbf16>, vector<8x8xf32> -> vector<8x8xf32>
    %c2_73 = arith.constant 2 : index
    %c0_74 = arith.constant 0 : index
    %c0_75 = arith.constant 0 : index
    %122 = vector.load %arg4[%c2_73, %c0_74, %c0_75] : memref<4x1x8xf32, #tpu.memory_space<vmem>>, vector<1x1x8xf32>
    %123 = vector.shape_cast %122 : vector<1x1x8xf32> to vector<1x8xf32>
    %124 = vector.broadcast %123 : vector<1x8xf32> to vector<8x8xf32>
    %125 = arith.addf %121, %124 : vector<8x8xf32>
    %c2_76 = arith.constant 2 : index
    %c0_77 = arith.constant 0 : index
    %c0_78 = arith.constant 0 : index
    %126 = vector.load %arg5[%c2_76, %c0_77, %c0_78] : memref<4x32x8xf32, #tpu.memory_space<vmem>>, vector<1x32x8xf32>
    %127 = vector.shape_cast %126 : vector<1x32x8xf32> to vector<32x8xf32>
    %128 = arith.truncf %127 : vector<32x8xf32> to vector<32x8xbf16>
    %cst_79 = arith.constant dense<0.000000e+00> : vector<8x8xf32>
    %129 = tpu.matmul %16, %128, %cst_79 {dimension_numbers = #tpu.dot_dimension_numbers<[1], [0], [0], [1], [0, 0, 1, 1], [], []>} : vector<8x32xbf16>, vector<32x8xbf16>, vector<8x8xf32> -> vector<8x8xf32>
    %c2_80 = arith.constant 2 : index
    %c0_81 = arith.constant 0 : index
    %c0_82 = arith.constant 0 : index
    %130 = vector.load %arg6[%c2_80, %c0_81, %c0_82] : memref<4x1x8xf32, #tpu.memory_space<vmem>>, vector<1x1x8xf32>
    %131 = vector.shape_cast %130 : vector<1x1x8xf32> to vector<1x8xf32>
    %132 = vector.broadcast %131 : vector<1x8xf32> to vector<8x8xf32>
    %133 = arith.addf %129, %132 : vector<8x8xf32>
    %c2_83 = arith.constant 2 : index
    %c0_84 = arith.constant 0 : index
    %c0_85 = arith.constant 0 : index
    %134 = vector.load %arg7[%c2_83, %c0_84, %c0_85] : memref<4x32x8xf32, #tpu.memory_space<vmem>>, vector<1x32x8xf32>
    %135 = vector.shape_cast %134 : vector<1x32x8xf32> to vector<32x8xf32>
    %136 = arith.truncf %135 : vector<32x8xf32> to vector<32x8xbf16>
    %cst_86 = arith.constant dense<0.000000e+00> : vector<8x8xf32>
    %137 = tpu.matmul %16, %136, %cst_86 {dimension_numbers = #tpu.dot_dimension_numbers<[1], [0], [0], [1], [0, 0, 1, 1], [], []>} : vector<8x32xbf16>, vector<32x8xbf16>, vector<8x8xf32> -> vector<8x8xf32>
    %c2_87 = arith.constant 2 : index
    %c0_88 = arith.constant 0 : index
    %c0_89 = arith.constant 0 : index
    %138 = vector.load %arg8[%c2_87, %c0_88, %c0_89] : memref<4x1x8xf32, #tpu.memory_space<vmem>>, vector<1x1x8xf32>
    %139 = vector.shape_cast %138 : vector<1x1x8xf32> to vector<1x8xf32>
    %140 = vector.broadcast %139 : vector<1x8xf32> to vector<8x8xf32>
    %141 = arith.addf %137, %140 : vector<8x8xf32>
    %142 = arith.truncf %125 : vector<8x8xf32> to vector<8x8xbf16>
    %143 = arith.truncf %133 : vector<8x8xf32> to vector<8x8xbf16>
    %cst_90 = arith.constant dense<0.000000e+00> : vector<8x8xf32>
    %144 = tpu.matmul %142, %143, %cst_90 {dimension_numbers = #tpu.dot_dimension_numbers<[1], [1], [0], [0], [0, 0, 1, 0], [], []>} : vector<8x8xbf16>, vector<8x8xbf16>, vector<8x8xf32> -> vector<8x8xf32>
    %cst_91 = arith.constant 0.353553385 : f32
    %145 = vector.broadcast %cst_91 : f32 to vector<8x8xf32>
    %146 = arith.mulf %144, %145 : vector<8x8xf32>
    %c0_92 = arith.constant 0 : index
    %c0_93 = arith.constant 0 : index
    %147 = vector.load %arg11[%c0_92, %c0_93] : memref<8x8xf32, #tpu.memory_space<vmem>>, vector<8x8xf32>
    %148 = arith.addf %146, %147 : vector<8x8xf32>
    %cst_94 = arith.constant dense<0xFF800000> : vector<8xf32>
    %149 = vector.multi_reduction <maximumf>, %148, %cst_94 [1] : vector<8x8xf32> to vector<8xf32>
    %150 = vector.shape_cast %149 : vector<8xf32> to vector<8x1xf32>
    %151 = vector.broadcast %150 : vector<8x1xf32> to vector<8x8xf32>
    %152 = arith.subf %148, %151 : vector<8x8xf32>
    %153 = math.exp %152 : vector<8x8xf32>
    %cst_95 = arith.constant dense<0.000000e+00> : vector<8xf32>
    %154 = vector.multi_reduction <add>, %153, %cst_95 [1] : vector<8x8xf32> to vector<8xf32>
    %155 = vector.shape_cast %154 : vector<8xf32> to vector<8x1xf32>
    %156 = tpu.reciprocal %155 {approx = true} : vector<8x1xf32> -> vector<8x1xf32>
    %157 = vector.broadcast %156 : vector<8x1xf32> to vector<8x8xf32>
    %158 = arith.mulf %153, %157 : vector<8x8xf32>
    %159 = arith.truncf %158 : vector<8x8xf32> to vector<8x8xbf16>
    %160 = arith.truncf %141 : vector<8x8xf32> to vector<8x8xbf16>
    %cst_96 = arith.constant dense<0.000000e+00> : vector<8x8xf32>
    %161 = tpu.matmul %159, %160, %cst_96 {dimension_numbers = #tpu.dot_dimension_numbers<[1], [0], [0], [1], [0, 0, 1, 1], [], []>} : vector<8x8xbf16>, vector<8x8xbf16>, vector<8x8xf32> -> vector<8x8xf32>
    %162 = arith.truncf %161 : vector<8x8xf32> to vector<8x8xbf16>
    %c2_97 = arith.constant 2 : index
    %c0_98 = arith.constant 0 : index
    %c0_99 = arith.constant 0 : index
    %163 = vector.load %arg9[%c2_97, %c0_98, %c0_99] : memref<4x8x32xf32, #tpu.memory_space<vmem>>, vector<1x8x32xf32>
    %164 = vector.shape_cast %163 : vector<1x8x32xf32> to vector<8x32xf32>
    %165 = arith.truncf %164 : vector<8x32xf32> to vector<8x32xbf16>
    %cst_100 = arith.constant dense<0.000000e+00> : vector<8x32xf32>
    %166 = tpu.matmul %162, %165, %cst_100 {dimension_numbers = #tpu.dot_dimension_numbers<[1], [0], [0], [1], [0, 0, 1, 1], [], []>} : vector<8x8xbf16>, vector<8x32xbf16>, vector<8x32xf32> -> vector<8x32xf32>
    %167 = arith.addf %117, %166 : vector<8x32xf32>
    %c3 = arith.constant 3 : index
    %c0_101 = arith.constant 0 : index
    %c0_102 = arith.constant 0 : index
    %168 = vector.load %arg3[%c3, %c0_101, %c0_102] : memref<4x32x8xf32, #tpu.memory_space<vmem>>, vector<1x32x8xf32>
    %169 = vector.shape_cast %168 : vector<1x32x8xf32> to vector<32x8xf32>
    %170 = arith.truncf %169 : vector<32x8xf32> to vector<32x8xbf16>
    %cst_103 = arith.constant dense<0.000000e+00> : vector<8x8xf32>
    %171 = tpu.matmul %15, %170, %cst_103 {dimension_numbers = #tpu.dot_dimension_numbers<[1], [0], [0], [1], [0, 0, 1, 1], [], []>} : vector<8x32xbf16>, vector<32x8xbf16>, vector<8x8xf32> -> vector<8x8xf32>
    %c3_104 = arith.constant 3 : index
    %c0_105 = arith.constant 0 : index
    %c0_106 = arith.constant 0 : index
    %172 = vector.load %arg4[%c3_104, %c0_105, %c0_106] : memref<4x1x8xf32, #tpu.memory_space<vmem>>, vector<1x1x8xf32>
    %173 = vector.shape_cast %172 : vector<1x1x8xf32> to vector<1x8xf32>
    %174 = vector.broadcast %173 : vector<1x8xf32> to vector<8x8xf32>
    %175 = arith.addf %171, %174 : vector<8x8xf32>
    %c3_107 = arith.constant 3 : index
    %c0_108 = arith.constant 0 : index
    %c0_109 = arith.constant 0 : index
    %176 = vector.load %arg5[%c3_107, %c0_108, %c0_109] : memref<4x32x8xf32, #tpu.memory_space<vmem>>, vector<1x32x8xf32>
    %177 = vector.shape_cast %176 : vector<1x32x8xf32> to vector<32x8xf32>
    %178 = arith.truncf %177 : vector<32x8xf32> to vector<32x8xbf16>
    %cst_110 = arith.constant dense<0.000000e+00> : vector<8x8xf32>
    %179 = tpu.matmul %16, %178, %cst_110 {dimension_numbers = #tpu.dot_dimension_numbers<[1], [0], [0], [1], [0, 0, 1, 1], [], []>} : vector<8x32xbf16>, vector<32x8xbf16>, vector<8x8xf32> -> vector<8x8xf32>
    %c3_111 = arith.constant 3 : index
    %c0_112 = arith.constant 0 : index
    %c0_113 = arith.constant 0 : index
    %180 = vector.load %arg6[%c3_111, %c0_112, %c0_113] : memref<4x1x8xf32, #tpu.memory_space<vmem>>, vector<1x1x8xf32>
    %181 = vector.shape_cast %180 : vector<1x1x8xf32> to vector<1x8xf32>
    %182 = vector.broadcast %181 : vector<1x8xf32> to vector<8x8xf32>
    %183 = arith.addf %179, %182 : vector<8x8xf32>
    %c3_114 = arith.constant 3 : index
    %c0_115 = arith.constant 0 : index
    %c0_116 = arith.constant 0 : index
    %184 = vector.load %arg7[%c3_114, %c0_115, %c0_116] : memref<4x32x8xf32, #tpu.memory_space<vmem>>, vector<1x32x8xf32>
    %185 = vector.shape_cast %184 : vector<1x32x8xf32> to vector<32x8xf32>
    %186 = arith.truncf %185 : vector<32x8xf32> to vector<32x8xbf16>
    %cst_117 = arith.constant dense<0.000000e+00> : vector<8x8xf32>
    %187 = tpu.matmul %16, %186, %cst_117 {dimension_numbers = #tpu.dot_dimension_numbers<[1], [0], [0], [1], [0, 0, 1, 1], [], []>} : vector<8x32xbf16>, vector<32x8xbf16>, vector<8x8xf32> -> vector<8x8xf32>
    %c3_118 = arith.constant 3 : index
    %c0_119 = arith.constant 0 : index
    %c0_120 = arith.constant 0 : index
    %188 = vector.load %arg8[%c3_118, %c0_119, %c0_120] : memref<4x1x8xf32, #tpu.memory_space<vmem>>, vector<1x1x8xf32>
    %189 = vector.shape_cast %188 : vector<1x1x8xf32> to vector<1x8xf32>
    %190 = vector.broadcast %189 : vector<1x8xf32> to vector<8x8xf32>
    %191 = arith.addf %187, %190 : vector<8x8xf32>
    %192 = arith.truncf %175 : vector<8x8xf32> to vector<8x8xbf16>
    %193 = arith.truncf %183 : vector<8x8xf32> to vector<8x8xbf16>
    %cst_121 = arith.constant dense<0.000000e+00> : vector<8x8xf32>
    %194 = tpu.matmul %192, %193, %cst_121 {dimension_numbers = #tpu.dot_dimension_numbers<[1], [1], [0], [0], [0, 0, 1, 0], [], []>} : vector<8x8xbf16>, vector<8x8xbf16>, vector<8x8xf32> -> vector<8x8xf32>
    %cst_122 = arith.constant 0.353553385 : f32
    %195 = vector.broadcast %cst_122 : f32 to vector<8x8xf32>
    %196 = arith.mulf %194, %195 : vector<8x8xf32>
    %c0_123 = arith.constant 0 : index
    %c0_124 = arith.constant 0 : index
    %197 = vector.load %arg11[%c0_123, %c0_124] : memref<8x8xf32, #tpu.memory_space<vmem>>, vector<8x8xf32>
    %198 = arith.addf %196, %197 : vector<8x8xf32>
    %cst_125 = arith.constant dense<0xFF800000> : vector<8xf32>
    %199 = vector.multi_reduction <maximumf>, %198, %cst_125 [1] : vector<8x8xf32> to vector<8xf32>
    %200 = vector.shape_cast %199 : vector<8xf32> to vector<8x1xf32>
    %201 = vector.broadcast %200 : vector<8x1xf32> to vector<8x8xf32>
    %202 = arith.subf %198, %201 : vector<8x8xf32>
    %203 = math.exp %202 : vector<8x8xf32>
    %cst_126 = arith.constant dense<0.000000e+00> : vector<8xf32>
    %204 = vector.multi_reduction <add>, %203, %cst_126 [1] : vector<8x8xf32> to vector<8xf32>
    %205 = vector.shape_cast %204 : vector<8xf32> to vector<8x1xf32>
    %206 = tpu.reciprocal %205 {approx = true} : vector<8x1xf32> -> vector<8x1xf32>
    %207 = vector.broadcast %206 : vector<8x1xf32> to vector<8x8xf32>
    %208 = arith.mulf %203, %207 : vector<8x8xf32>
    %209 = arith.truncf %208 : vector<8x8xf32> to vector<8x8xbf16>
    %210 = arith.truncf %191 : vector<8x8xf32> to vector<8x8xbf16>
    %cst_127 = arith.constant dense<0.000000e+00> : vector<8x8xf32>
    %211 = tpu.matmul %209, %210, %cst_127 {dimension_numbers = #tpu.dot_dimension_numbers<[1], [0], [0], [1], [0, 0, 1, 1], [], []>} : vector<8x8xbf16>, vector<8x8xbf16>, vector<8x8xf32> -> vector<8x8xf32>
    %212 = arith.truncf %211 : vector<8x8xf32> to vector<8x8xbf16>
    %c3_128 = arith.constant 3 : index
    %c0_129 = arith.constant 0 : index
    %c0_130 = arith.constant 0 : index
    %213 = vector.load %arg9[%c3_128, %c0_129, %c0_130] : memref<4x8x32xf32, #tpu.memory_space<vmem>>, vector<1x8x32xf32>
    %214 = vector.shape_cast %213 : vector<1x8x32xf32> to vector<8x32xf32>
    %215 = arith.truncf %214 : vector<8x32xf32> to vector<8x32xbf16>
    %cst_131 = arith.constant dense<0.000000e+00> : vector<8x32xf32>
    %216 = tpu.matmul %212, %215, %cst_131 {dimension_numbers = #tpu.dot_dimension_numbers<[1], [0], [0], [1], [0, 0, 1, 1], [], []>} : vector<8x8xbf16>, vector<8x32xbf16>, vector<8x32xf32> -> vector<8x32xf32>
    %217 = arith.addf %167, %216 : vector<8x32xf32>
    %218 = arith.addf %1, %217 : vector<8x32xf32>
    %c0_132 = arith.constant 0 : index
    %c0_133 = arith.constant 0 : index
    %219 = vector.load %arg10[%c0_132, %c0_133] : memref<1x32xf32, #tpu.memory_space<vmem>>, vector<1x32xf32>
    %220 = vector.broadcast %219 : vector<1x32xf32> to vector<8x32xf32>
    %221 = arith.addf %218, %220 : vector<8x32xf32>
    %c0_134 = arith.constant 0 : index
    %c0_135 = arith.constant 0 : index
    %c0_136 = arith.constant 0 : index
    %222 = vector.load %arg12[%c0_134, %c0_135, %c0_136] : memref<1x8x32xf32, #tpu.memory_space<vmem>>, vector<1x8x32xf32>
    %223 = vector.shape_cast %222 : vector<1x8x32xf32> to vector<8x32xf32>
    %224 = vector.shape_cast %221 : vector<8x32xf32> to vector<1x8x32xf32>
    tpu.vector_store %arg12[%c0_134, %c0_135, %c0_136], %224 {strides = array<i32>} : memref<1x8x32xf32, #tpu.memory_space<vmem>>, vector<1x8x32xf32>,
    return
  }
  func.func @transform_0(%arg0: i32) -> (i32, i32, i32) {
    %c0_i32 = arith.constant 0 : i32
    %c0_i32_0 = arith.constant 0 : i32
    %c0_i32_1 = arith.constant 0 : i32
    return %arg0, %c0_i32, %c0_i32_0 : i32, i32, i32
  }
  func.func @transform_1(%arg0: i32) -> (i32, i32) {
    %c0_i32 = arith.constant 0 : i32
    %c0_i32_0 = arith.constant 0 : i32
    %c0_i32_1 = arith.constant 0 : i32
    return %c0_i32, %c0_i32_0 : i32, i32
  }
  func.func @transform_2(%arg0: i32) -> (i32, i32, i32) {
    %c0_i32 = arith.constant 0 : i32
    %c0_i32_0 = arith.constant 0 : i32
    %c0_i32_1 = arith.constant 0 : i32
    %c0_i32_2 = arith.constant 0 : i32
    return %c0_i32, %c0_i32_0, %c0_i32_1 : i32, i32, i32
  }
  func.func @transform_3(%arg0: i32) -> (i32, i32, i32) {
    %c0_i32 = arith.constant 0 : i32
    %c0_i32_0 = arith.constant 0 : i32
    %c0_i32_1 = arith.constant 0 : i32
    %c0_i32_2 = arith.constant 0 : i32
    return %c0_i32, %c0_i32_0, %c0_i32_1 : i32, i32, i32
  }
  func.func @transform_4(%arg0: i32) -> (i32, i32, i32) {
    %c0_i32 = arith.constant 0 : i32
    %c0_i32_0 = arith.constant 0 : i32
    %c0_i32_1 = arith.constant 0 : i32
    %c0_i32_2 = arith.constant 0 : i32
    return %c0_i32, %c0_i32_0, %c0_i32_1 : i32, i32, i32
  }
  func.func @transform_5(%arg0: i32) -> (i32, i32, i32) {
    %c0_i32 = arith.constant 0 : i32
    %c0_i32_0 = arith.constant 0 : i32
    %c0_i32_1 = arith.constant 0 : i32
    %c0_i32_2 = arith.constant 0 : i32
    return %c0_i32, %c0_i32_0, %c0_i32_1 : i32, i32, i32
  }
  func.func @transform_6(%arg0: i32) -> (i32, i32, i32) {
    %c0_i32 = arith.constant 0 : i32
    %c0_i32_0 = arith.constant 0 : i32
    %c0_i32_1 = arith.constant 0 : i32
    %c0_i32_2 = arith.constant 0 : i32
    return %c0_i32, %c0_i32_0, %c0_i32_1 : i32, i32, i32
  }
  func.func @transform_7(%arg0: i32) -> (i32, i32, i32) {
    %c0_i32 = arith.constant 0 : i32
    %c0_i32_0 = arith.constant 0 : i32
    %c0_i32_1 = arith.constant 0 : i32
    %c0_i32_2 = arith.constant 0 : i32
    return %c0_i32, %c0_i32_0, %c0_i32_1 : i32, i32, i32
  }
  func.func @transform_8(%arg0: i32) -> (i32, i32, i32) {
    %c0_i32 = arith.constant 0 : i32
    %c0_i32_0 = arith.constant 0 : i32
    %c0_i32_1 = arith.constant 0 : i32
    %c0_i32_2 = arith.constant 0 : i32
    return %c0_i32, %c0_i32_0, %c0_i32_1 : i32, i32, i32
  }
  func.func @transform_9(%arg0: i32) -> (i32, i32) {
    %c0_i32 = arith.constant 0 : i32
    %c0_i32_0 = arith.constant 0 : i32
    %c0_i32_1 = arith.constant 0 : i32
    return %c0_i32, %c0_i32_0 : i32, i32
  }
  func.func @transform_10(%arg0: i32) -> (i32, i32) {
    %c0_i32 = arith.constant 0 : i32
    %c0_i32_0 = arith.constant 0 : i32
    %c0_i32_1 = arith.constant 0 : i32
    return %c0_i32, %c0_i32_0 : i32, i32
  }
  func.func @transform_11(%arg0: i32) -> (i32, i32, i32) {
    %c0_i32 = arith.constant 0 : i32
    %c0_i32_0 = arith.constant 0 : i32
    %c0_i32_1 = arith.constant 0 : i32
    return %arg0, %c0_i32, %c0_i32_0 : i32, i32, i32
  }
}

module attributes {stable_mosaic.version = 11 : i64} {
  func.func @_attn_sublayer_kernel(%arg0: i32, %arg1: memref<1x8x32xf32, #tpu.memory_space<vmem>>, %arg2: memref<1x12x32xf32, #tpu.memory_space<vmem>>, %arg3: memref<1x32xf32, #tpu.memory_space<vmem>>, %arg4: memref<4x32x8xf32, #tpu.memory_space<vmem>>, %arg5: memref<4x1x8xf32, #tpu.memory_space<vmem>>, %arg6: memref<4x32x8xf32, #tpu.memory_space<vmem>>, %arg7: memref<4x1x8xf32, #tpu.memory_space<vmem>>, %arg8: memref<4x32x8xf32, #tpu.memory_space<vmem>>, %arg9: memref<4x1x8xf32, #tpu.memory_space<vmem>>, %arg10: memref<4x8x32xf32, #tpu.memory_space<vmem>>, %arg11: memref<1x32xf32, #tpu.memory_space<vmem>>, %arg12: memref<1x8x32xf32, #tpu.memory_space<vmem>>) attributes {dimension_semantics = [#tpu.dimension_semantics<parallel>], iteration_bounds = array<i64: 2>, scalar_prefetch = 0 : i64, scratch_operands = 0 : i64, tpu.core_type = #tpu.core_type<tc>, window_params = [{transform_indices = @transform_0, window_bounds = array<i64: 1, 8, 32>}, {transform_indices = @transform_1, window_bounds = array<i64: 1, 12, 32>}, {pipeline_mode = #tpu.pipeline_mode<synchronous>, transform_indices = @transform_2, window_bounds = array<i64: 1, 32>}, {pipeline_mode = #tpu.pipeline_mode<synchronous>, transform_indices = @transform_3, window_bounds = array<i64: 4, 32, 8>}, {pipeline_mode = #tpu.pipeline_mode<synchronous>, transform_indices = @transform_4, window_bounds = array<i64: 4, 1, 8>}, {pipeline_mode = #tpu.pipeline_mode<synchronous>, transform_indices = @transform_5, window_bounds = array<i64: 4, 32, 8>}, {pipeline_mode = #tpu.pipeline_mode<synchronous>, transform_indices = @transform_6, window_bounds = array<i64: 4, 1, 8>}, {pipeline_mode = #tpu.pipeline_mode<synchronous>, transform_indices = @transform_7, window_bounds = array<i64: 4, 32, 8>}, {pipeline_mode = #tpu.pipeline_mode<synchronous>, transform_indices = @transform_8, window_bounds = array<i64: 4, 1, 8>}, {pipeline_mode = #tpu.pipeline_mode<synchronous>, transform_indices = @transform_9, window_bounds = array<i64: 4, 8, 32>}, {pipeline_mode = #tpu.pipeline_mode<synchronous>, transform_indices = @transform_10, window_bounds = array<i64: 1, 32>}, {transform_indices = @transform_11, window_bounds = array<i64: 1, 8, 32>}]} {
    %c0 = arith.constant 0 : index
    %c0_0 = arith.constant 0 : index
    %c0_1 = arith.constant 0 : index
    %0 = vector.load %arg1[%c0, %c0_0, %c0_1] : memref<1x8x32xf32, #tpu.memory_space<vmem>>, vector<1x8x32xf32>
    %1 = vector.shape_cast %0 : vector<1x8x32xf32> to vector<8x32xf32>
    %c0_2 = arith.constant 0 : index
    %c0_3 = arith.constant 0 : index
    %2 = vector.load %arg3[%c0_2, %c0_3] : memref<1x32xf32, #tpu.memory_space<vmem>>, vector<1x32xf32>
    %3 = arith.mulf %1, %1 : vector<8x32xf32>
    %cst = arith.constant dense<0.000000e+00> : vector<8xf32>
    %4 = vector.multi_reduction <add>, %3, %cst [1] : vector<8x32xf32> to vector<8xf32>
    %5 = vector.shape_cast %4 : vector<8xf32> to vector<8x1xf32>
    %cst_4 = arith.constant 3.200000e+01 : f32
    %6 = vector.broadcast %cst_4 : f32 to vector<8x1xf32>
    %7 = arith.divf %5, %6 : vector<8x1xf32>
    %8 = vector.broadcast %2 : vector<1x32xf32> to vector<8x32xf32>
    %9 = arith.mulf %8, %1 : vector<8x32xf32>
    %cst_5 = arith.constant 9.99999974E-6 : f32
    %10 = vector.broadcast %cst_5 : f32 to vector<8x1xf32>
    %11 = arith.addf %7, %10 : vector<8x1xf32>
    %12 = math.rsqrt %11 : vector<8x1xf32>
    %13 = vector.broadcast %12 : vector<8x1xf32> to vector<8x32xf32>
    %14 = arith.mulf %9, %13 : vector<8x32xf32>
    %c0_6 = arith.constant 0 : index
    %c0_7 = arith.constant 0 : index
    %c0_8 = arith.constant 0 : index
    %15 = vector.load %arg2[%c0_6, %c0_7, %c0_8] : memref<1x12x32xf32, #tpu.memory_space<vmem>>, vector<1x12x32xf32>
    %16 = vector.shape_cast %15 : vector<1x12x32xf32> to vector<12x32xf32>
    %17 = arith.truncf %14 : vector<8x32xf32> to vector<8x32xbf16>
    %18 = arith.truncf %16 : vector<12x32xf32> to vector<12x32xbf16>
    %cst_9 = arith.constant 0.000000e+00 : f32
    %19 = vector.broadcast %cst_9 : f32 to vector<8x32xf32>
    %c0_10 = arith.constant 0 : index
    %c0_11 = arith.constant 0 : index
    %c0_12 = arith.constant 0 : index
    %20 = vector.load %arg4[%c0_10, %c0_11, %c0_12] : memref<4x32x8xf32, #tpu.memory_space<vmem>>, vector<1x32x8xf32>
    %21 = vector.shape_cast %20 : vector<1x32x8xf32> to vector<32x8xf32>
    %22 = arith.truncf %21 : vector<32x8xf32> to vector<32x8xbf16>
    %cst_13 = arith.constant dense<0.000000e+00> : vector<8x8xf32>
    %23 = tpu.matmul %17, %22, %cst_13 {dimension_numbers = #tpu.dot_dimension_numbers<[1], [0], [0], [1], [0, 0, 1, 1], [], []>} : vector<8x32xbf16>, vector<32x8xbf16>, vector<8x8xf32> -> vector<8x8xf32>
    %c0_14 = arith.constant 0 : index
    %c0_15 = arith.constant 0 : index
    %c0_16 = arith.constant 0 : index
    %24 = vector.load %arg5[%c0_14, %c0_15, %c0_16] : memref<4x1x8xf32, #tpu.memory_space<vmem>>, vector<1x1x8xf32>
    %25 = vector.shape_cast %24 : vector<1x1x8xf32> to vector<1x8xf32>
    %26 = vector.broadcast %25 : vector<1x8xf32> to vector<8x8xf32>
    %27 = arith.addf %23, %26 : vector<8x8xf32>
    %c0_17 = arith.constant 0 : index
    %c0_18 = arith.constant 0 : index
    %c0_19 = arith.constant 0 : index
    %28 = vector.load %arg6[%c0_17, %c0_18, %c0_19] : memref<4x32x8xf32, #tpu.memory_space<vmem>>, vector<1x32x8xf32>
    %29 = vector.shape_cast %28 : vector<1x32x8xf32> to vector<32x8xf32>
    %30 = arith.truncf %29 : vector<32x8xf32> to vector<32x8xbf16>
    %cst_20 = arith.constant dense<0.000000e+00> : vector<12x8xf32>
    %31 = tpu.matmul %18, %30, %cst_20 {dimension_numbers = #tpu.dot_dimension_numbers<[1], [0], [0], [1], [0, 0, 1, 1], [], []>} : vector<12x32xbf16>, vector<32x8xbf16>, vector<12x8xf32> -> vector<12x8xf32>
    %c0_21 = arith.constant 0 : index
    %c0_22 = arith.constant 0 : index
    %c0_23 = arith.constant 0 : index
    %32 = vector.load %arg7[%c0_21, %c0_22, %c0_23] : memref<4x1x8xf32, #tpu.memory_space<vmem>>, vector<1x1x8xf32>
    %33 = vector.shape_cast %32 : vector<1x1x8xf32> to vector<1x8xf32>
    %34 = vector.broadcast %33 : vector<1x8xf32> to vector<12x8xf32>
    %35 = arith.addf %31, %34 : vector<12x8xf32>
    %c0_24 = arith.constant 0 : index
    %c0_25 = arith.constant 0 : index
    %c0_26 = arith.constant 0 : index
    %36 = vector.load %arg8[%c0_24, %c0_25, %c0_26] : memref<4x32x8xf32, #tpu.memory_space<vmem>>, vector<1x32x8xf32>
    %37 = vector.shape_cast %36 : vector<1x32x8xf32> to vector<32x8xf32>
    %38 = arith.truncf %37 : vector<32x8xf32> to vector<32x8xbf16>
    %cst_27 = arith.constant dense<0.000000e+00> : vector<12x8xf32>
    %39 = tpu.matmul %18, %38, %cst_27 {dimension_numbers = #tpu.dot_dimension_numbers<[1], [0], [0], [1], [0, 0, 1, 1], [], []>} : vector<12x32xbf16>, vector<32x8xbf16>, vector<12x8xf32> -> vector<12x8xf32>
    %c0_28 = arith.constant 0 : index
    %c0_29 = arith.constant 0 : index
    %c0_30 = arith.constant 0 : index
    %40 = vector.load %arg9[%c0_28, %c0_29, %c0_30] : memref<4x1x8xf32, #tpu.memory_space<vmem>>, vector<1x1x8xf32>
    %41 = vector.shape_cast %40 : vector<1x1x8xf32> to vector<1x8xf32>
    %42 = vector.broadcast %41 : vector<1x8xf32> to vector<12x8xf32>
    %43 = arith.addf %39, %42 : vector<12x8xf32>
    %44 = arith.truncf %27 : vector<8x8xf32> to vector<8x8xbf16>
    %45 = arith.truncf %35 : vector<12x8xf32> to vector<12x8xbf16>
    %cst_31 = arith.constant dense<0.000000e+00> : vector<8x12xf32>
    %46 = tpu.matmul %44, %45, %cst_31 {dimension_numbers = #tpu.dot_dimension_numbers<[1], [1], [0], [0], [0, 0, 1, 0], [], []>} : vector<8x8xbf16>, vector<12x8xbf16>, vector<8x12xf32> -> vector<8x12xf32>
    %cst_32 = arith.constant 0.353553385 : f32
    %47 = vector.broadcast %cst_32 : f32 to vector<8x12xf32>
    %48 = arith.mulf %46, %47 : vector<8x12xf32>
    %cst_33 = arith.constant dense<0xFF800000> : vector<8xf32>
    %49 = vector.multi_reduction <maximumf>, %48, %cst_33 [1] : vector<8x12xf32> to vector<8xf32>
    %50 = vector.shape_cast %49 : vector<8xf32> to vector<8x1xf32>
    %51 = vector.broadcast %50 : vector<8x1xf32> to vector<8x12xf32>
    %52 = arith.subf %48, %51 : vector<8x12xf32>
    %53 = math.exp %52 : vector<8x12xf32>
    %cst_34 = arith.constant dense<0.000000e+00> : vector<8xf32>
    %54 = vector.multi_reduction <add>, %53, %cst_34 [1] : vector<8x12xf32> to vector<8xf32>
    %55 = vector.shape_cast %54 : vector<8xf32> to vector<8x1xf32>
    %56 = tpu.reciprocal %55 {approx = true} : vector<8x1xf32> -> vector<8x1xf32>
    %57 = vector.broadcast %56 : vector<8x1xf32> to vector<8x12xf32>
    %58 = arith.mulf %53, %57 : vector<8x12xf32>
    %59 = arith.truncf %58 : vector<8x12xf32> to vector<8x12xbf16>
    %60 = arith.truncf %43 : vector<12x8xf32> to vector<12x8xbf16>
    %cst_35 = arith.constant dense<0.000000e+00> : vector<8x8xf32>
    %61 = tpu.matmul %59, %60, %cst_35 {dimension_numbers = #tpu.dot_dimension_numbers<[1], [0], [0], [1], [0, 0, 1, 1], [], []>} : vector<8x12xbf16>, vector<12x8xbf16>, vector<8x8xf32> -> vector<8x8xf32>
    %62 = arith.truncf %61 : vector<8x8xf32> to vector<8x8xbf16>
    %c0_36 = arith.constant 0 : index
    %c0_37 = arith.constant 0 : index
    %c0_38 = arith.constant 0 : index
    %63 = vector.load %arg10[%c0_36, %c0_37, %c0_38] : memref<4x8x32xf32, #tpu.memory_space<vmem>>, vector<1x8x32xf32>
    %64 = vector.shape_cast %63 : vector<1x8x32xf32> to vector<8x32xf32>
    %65 = arith.truncf %64 : vector<8x32xf32> to vector<8x32xbf16>
    %cst_39 = arith.constant dense<0.000000e+00> : vector<8x32xf32>
    %66 = tpu.matmul %62, %65, %cst_39 {dimension_numbers = #tpu.dot_dimension_numbers<[1], [0], [0], [1], [0, 0, 1, 1], [], []>} : vector<8x8xbf16>, vector<8x32xbf16>, vector<8x32xf32> -> vector<8x32xf32>
    %67 = arith.addf %19, %66 : vector<8x32xf32>
    %c1 = arith.constant 1 : index
    %c0_40 = arith.constant 0 : index
    %c0_41 = arith.constant 0 : index
    %68 = vector.load %arg4[%c1, %c0_40, %c0_41] : memref<4x32x8xf32, #tpu.memory_space<vmem>>, vector<1x32x8xf32>
    %69 = vector.shape_cast %68 : vector<1x32x8xf32> to vector<32x8xf32>
    %70 = arith.truncf %69 : vector<32x8xf32> to vector<32x8xbf16>
    %cst_42 = arith.constant dense<0.000000e+00> : vector<8x8xf32>
    %71 = tpu.matmul %17, %70, %cst_42 {dimension_numbers = #tpu.dot_dimension_numbers<[1], [0], [0], [1], [0, 0, 1, 1], [], []>} : vector<8x32xbf16>, vector<32x8xbf16>, vector<8x8xf32> -> vector<8x8xf32>
    %c1_43 = arith.constant 1 : index
    %c0_44 = arith.constant 0 : index
    %c0_45 = arith.constant 0 : index
    %72 = vector.load %arg5[%c1_43, %c0_44, %c0_45] : memref<4x1x8xf32, #tpu.memory_space<vmem>>, vector<1x1x8xf32>
    %73 = vector.shape_cast %72 : vector<1x1x8xf32> to vector<1x8xf32>
    %74 = vector.broadcast %73 : vector<1x8xf32> to vector<8x8xf32>
    %75 = arith.addf %71, %74 : vector<8x8xf32>
    %c1_46 = arith.constant 1 : index
    %c0_47 = arith.constant 0 : index
    %c0_48 = arith.constant 0 : index
    %76 = vector.load %arg6[%c1_46, %c0_47, %c0_48] : memref<4x32x8xf32, #tpu.memory_space<vmem>>, vector<1x32x8xf32>
    %77 = vector.shape_cast %76 : vector<1x32x8xf32> to vector<32x8xf32>
    %78 = arith.truncf %77 : vector<32x8xf32> to vector<32x8xbf16>
    %cst_49 = arith.constant dense<0.000000e+00> : vector<12x8xf32>
    %79 = tpu.matmul %18, %78, %cst_49 {dimension_numbers = #tpu.dot_dimension_numbers<[1], [0], [0], [1], [0, 0, 1, 1], [], []>} : vector<12x32xbf16>, vector<32x8xbf16>, vector<12x8xf32> -> vector<12x8xf32>
    %c1_50 = arith.constant 1 : index
    %c0_51 = arith.constant 0 : index
    %c0_52 = arith.constant 0 : index
    %80 = vector.load %arg7[%c1_50, %c0_51, %c0_52] : memref<4x1x8xf32, #tpu.memory_space<vmem>>, vector<1x1x8xf32>
    %81 = vector.shape_cast %80 : vector<1x1x8xf32> to vector<1x8xf32>
    %82 = vector.broadcast %81 : vector<1x8xf32> to vector<12x8xf32>
    %83 = arith.addf %79, %82 : vector<12x8xf32>
    %c1_53 = arith.constant 1 : index
    %c0_54 = arith.constant 0 : index
    %c0_55 = arith.constant 0 : index
    %84 = vector.load %arg8[%c1_53, %c0_54, %c0_55] : memref<4x32x8xf32, #tpu.memory_space<vmem>>, vector<1x32x8xf32>
    %85 = vector.shape_cast %84 : vector<1x32x8xf32> to vector<32x8xf32>
    %86 = arith.truncf %85 : vector<32x8xf32> to vector<32x8xbf16>
    %cst_56 = arith.constant dense<0.000000e+00> : vector<12x8xf32>
    %87 = tpu.matmul %18, %86, %cst_56 {dimension_numbers = #tpu.dot_dimension_numbers<[1], [0], [0], [1], [0, 0, 1, 1], [], []>} : vector<12x32xbf16>, vector<32x8xbf16>, vector<12x8xf32> -> vector<12x8xf32>
    %c1_57 = arith.constant 1 : index
    %c0_58 = arith.constant 0 : index
    %c0_59 = arith.constant 0 : index
    %88 = vector.load %arg9[%c1_57, %c0_58, %c0_59] : memref<4x1x8xf32, #tpu.memory_space<vmem>>, vector<1x1x8xf32>
    %89 = vector.shape_cast %88 : vector<1x1x8xf32> to vector<1x8xf32>
    %90 = vector.broadcast %89 : vector<1x8xf32> to vector<12x8xf32>
    %91 = arith.addf %87, %90 : vector<12x8xf32>
    %92 = arith.truncf %75 : vector<8x8xf32> to vector<8x8xbf16>
    %93 = arith.truncf %83 : vector<12x8xf32> to vector<12x8xbf16>
    %cst_60 = arith.constant dense<0.000000e+00> : vector<8x12xf32>
    %94 = tpu.matmul %92, %93, %cst_60 {dimension_numbers = #tpu.dot_dimension_numbers<[1], [1], [0], [0], [0, 0, 1, 0], [], []>} : vector<8x8xbf16>, vector<12x8xbf16>, vector<8x12xf32> -> vector<8x12xf32>
    %cst_61 = arith.constant 0.353553385 : f32
    %95 = vector.broadcast %cst_61 : f32 to vector<8x12xf32>
    %96 = arith.mulf %94, %95 : vector<8x12xf32>
    %cst_62 = arith.constant dense<0xFF800000> : vector<8xf32>
    %97 = vector.multi_reduction <maximumf>, %96, %cst_62 [1] : vector<8x12xf32> to vector<8xf32>
    %98 = vector.shape_cast %97 : vector<8xf32> to vector<8x1xf32>
    %99 = vector.broadcast %98 : vector<8x1xf32> to vector<8x12xf32>
    %100 = arith.subf %96, %99 : vector<8x12xf32>
    %101 = math.exp %100 : vector<8x12xf32>
    %cst_63 = arith.constant dense<0.000000e+00> : vector<8xf32>
    %102 = vector.multi_reduction <add>, %101, %cst_63 [1] : vector<8x12xf32> to vector<8xf32>
    %103 = vector.shape_cast %102 : vector<8xf32> to vector<8x1xf32>
    %104 = tpu.reciprocal %103 {approx = true} : vector<8x1xf32> -> vector<8x1xf32>
    %105 = vector.broadcast %104 : vector<8x1xf32> to vector<8x12xf32>
    %106 = arith.mulf %101, %105 : vector<8x12xf32>
    %107 = arith.truncf %106 : vector<8x12xf32> to vector<8x12xbf16>
    %108 = arith.truncf %91 : vector<12x8xf32> to vector<12x8xbf16>
    %cst_64 = arith.constant dense<0.000000e+00> : vector<8x8xf32>
    %109 = tpu.matmul %107, %108, %cst_64 {dimension_numbers = #tpu.dot_dimension_numbers<[1], [0], [0], [1], [0, 0, 1, 1], [], []>} : vector<8x12xbf16>, vector<12x8xbf16>, vector<8x8xf32> -> vector<8x8xf32>
    %110 = arith.truncf %109 : vector<8x8xf32> to vector<8x8xbf16>
    %c1_65 = arith.constant 1 : index
    %c0_66 = arith.constant 0 : index
    %c0_67 = arith.constant 0 : index
    %111 = vector.load %arg10[%c1_65, %c0_66, %c0_67] : memref<4x8x32xf32, #tpu.memory_space<vmem>>, vector<1x8x32xf32>
    %112 = vector.shape_cast %111 : vector<1x8x32xf32> to vector<8x32xf32>
    %113 = arith.truncf %112 : vector<8x32xf32> to vector<8x32xbf16>
    %cst_68 = arith.constant dense<0.000000e+00> : vector<8x32xf32>
    %114 = tpu.matmul %110, %113, %cst_68 {dimension_numbers = #tpu.dot_dimension_numbers<[1], [0], [0], [1], [0, 0, 1, 1], [], []>} : vector<8x8xbf16>, vector<8x32xbf16>, vector<8x32xf32> -> vector<8x32xf32>
    %115 = arith.addf %67, %114 : vector<8x32xf32>
    %c2 = arith.constant 2 : index
    %c0_69 = arith.constant 0 : index
    %c0_70 = arith.constant 0 : index
    %116 = vector.load %arg4[%c2, %c0_69, %c0_70] : memref<4x32x8xf32, #tpu.memory_space<vmem>>, vector<1x32x8xf32>
    %117 = vector.shape_cast %116 : vector<1x32x8xf32> to vector<32x8xf32>
    %118 = arith.truncf %117 : vector<32x8xf32> to vector<32x8xbf16>
    %cst_71 = arith.constant dense<0.000000e+00> : vector<8x8xf32>
    %119 = tpu.matmul %17, %118, %cst_71 {dimension_numbers = #tpu.dot_dimension_numbers<[1], [0], [0], [1], [0, 0, 1, 1], [], []>} : vector<8x32xbf16>, vector<32x8xbf16>, vector<8x8xf32> -> vector<8x8xf32>
    %c2_72 = arith.constant 2 : index
    %c0_73 = arith.constant 0 : index
    %c0_74 = arith.constant 0 : index
    %120 = vector.load %arg5[%c2_72, %c0_73, %c0_74] : memref<4x1x8xf32, #tpu.memory_space<vmem>>, vector<1x1x8xf32>
    %121 = vector.shape_cast %120 : vector<1x1x8xf32> to vector<1x8xf32>
    %122 = vector.broadcast %121 : vector<1x8xf32> to vector<8x8xf32>
    %123 = arith.addf %119, %122 : vector<8x8xf32>
    %c2_75 = arith.constant 2 : index
    %c0_76 = arith.constant 0 : index
    %c0_77 = arith.constant 0 : index
    %124 = vector.load %arg6[%c2_75, %c0_76, %c0_77] : memref<4x32x8xf32, #tpu.memory_space<vmem>>, vector<1x32x8xf32>
    %125 = vector.shape_cast %124 : vector<1x32x8xf32> to vector<32x8xf32>
    %126 = arith.truncf %125 : vector<32x8xf32> to vector<32x8xbf16>
    %cst_78 = arith.constant dense<0.000000e+00> : vector<12x8xf32>
    %127 = tpu.matmul %18, %126, %cst_78 {dimension_numbers = #tpu.dot_dimension_numbers<[1], [0], [0], [1], [0, 0, 1, 1], [], []>} : vector<12x32xbf16>, vector<32x8xbf16>, vector<12x8xf32> -> vector<12x8xf32>
    %c2_79 = arith.constant 2 : index
    %c0_80 = arith.constant 0 : index
    %c0_81 = arith.constant 0 : index
    %128 = vector.load %arg7[%c2_79, %c0_80, %c0_81] : memref<4x1x8xf32, #tpu.memory_space<vmem>>, vector<1x1x8xf32>
    %129 = vector.shape_cast %128 : vector<1x1x8xf32> to vector<1x8xf32>
    %130 = vector.broadcast %129 : vector<1x8xf32> to vector<12x8xf32>
    %131 = arith.addf %127, %130 : vector<12x8xf32>
    %c2_82 = arith.constant 2 : index
    %c0_83 = arith.constant 0 : index
    %c0_84 = arith.constant 0 : index
    %132 = vector.load %arg8[%c2_82, %c0_83, %c0_84] : memref<4x32x8xf32, #tpu.memory_space<vmem>>, vector<1x32x8xf32>
    %133 = vector.shape_cast %132 : vector<1x32x8xf32> to vector<32x8xf32>
    %134 = arith.truncf %133 : vector<32x8xf32> to vector<32x8xbf16>
    %cst_85 = arith.constant dense<0.000000e+00> : vector<12x8xf32>
    %135 = tpu.matmul %18, %134, %cst_85 {dimension_numbers = #tpu.dot_dimension_numbers<[1], [0], [0], [1], [0, 0, 1, 1], [], []>} : vector<12x32xbf16>, vector<32x8xbf16>, vector<12x8xf32> -> vector<12x8xf32>
    %c2_86 = arith.constant 2 : index
    %c0_87 = arith.constant 0 : index
    %c0_88 = arith.constant 0 : index
    %136 = vector.load %arg9[%c2_86, %c0_87, %c0_88] : memref<4x1x8xf32, #tpu.memory_space<vmem>>, vector<1x1x8xf32>
    %137 = vector.shape_cast %136 : vector<1x1x8xf32> to vector<1x8xf32>
    %138 = vector.broadcast %137 : vector<1x8xf32> to vector<12x8xf32>
    %139 = arith.addf %135, %138 : vector<12x8xf32>
    %140 = arith.truncf %123 : vector<8x8xf32> to vector<8x8xbf16>
    %141 = arith.truncf %131 : vector<12x8xf32> to vector<12x8xbf16>
    %cst_89 = arith.constant dense<0.000000e+00> : vector<8x12xf32>
    %142 = tpu.matmul %140, %141, %cst_89 {dimension_numbers = #tpu.dot_dimension_numbers<[1], [1], [0], [0], [0, 0, 1, 0], [], []>} : vector<8x8xbf16>, vector<12x8xbf16>, vector<8x12xf32> -> vector<8x12xf32>
    %cst_90 = arith.constant 0.353553385 : f32
    %143 = vector.broadcast %cst_90 : f32 to vector<8x12xf32>
    %144 = arith.mulf %142, %143 : vector<8x12xf32>
    %cst_91 = arith.constant dense<0xFF800000> : vector<8xf32>
    %145 = vector.multi_reduction <maximumf>, %144, %cst_91 [1] : vector<8x12xf32> to vector<8xf32>
    %146 = vector.shape_cast %145 : vector<8xf32> to vector<8x1xf32>
    %147 = vector.broadcast %146 : vector<8x1xf32> to vector<8x12xf32>
    %148 = arith.subf %144, %147 : vector<8x12xf32>
    %149 = math.exp %148 : vector<8x12xf32>
    %cst_92 = arith.constant dense<0.000000e+00> : vector<8xf32>
    %150 = vector.multi_reduction <add>, %149, %cst_92 [1] : vector<8x12xf32> to vector<8xf32>
    %151 = vector.shape_cast %150 : vector<8xf32> to vector<8x1xf32>
    %152 = tpu.reciprocal %151 {approx = true} : vector<8x1xf32> -> vector<8x1xf32>
    %153 = vector.broadcast %152 : vector<8x1xf32> to vector<8x12xf32>
    %154 = arith.mulf %149, %153 : vector<8x12xf32>
    %155 = arith.truncf %154 : vector<8x12xf32> to vector<8x12xbf16>
    %156 = arith.truncf %139 : vector<12x8xf32> to vector<12x8xbf16>
    %cst_93 = arith.constant dense<0.000000e+00> : vector<8x8xf32>
    %157 = tpu.matmul %155, %156, %cst_93 {dimension_numbers = #tpu.dot_dimension_numbers<[1], [0], [0], [1], [0, 0, 1, 1], [], []>} : vector<8x12xbf16>, vector<12x8xbf16>, vector<8x8xf32> -> vector<8x8xf32>
    %158 = arith.truncf %157 : vector<8x8xf32> to vector<8x8xbf16>
    %c2_94 = arith.constant 2 : index
    %c0_95 = arith.constant 0 : index
    %c0_96 = arith.constant 0 : index
    %159 = vector.load %arg10[%c2_94, %c0_95, %c0_96] : memref<4x8x32xf32, #tpu.memory_space<vmem>>, vector<1x8x32xf32>
    %160 = vector.shape_cast %159 : vector<1x8x32xf32> to vector<8x32xf32>
    %161 = arith.truncf %160 : vector<8x32xf32> to vector<8x32xbf16>
    %cst_97 = arith.constant dense<0.000000e+00> : vector<8x32xf32>
    %162 = tpu.matmul %158, %161, %cst_97 {dimension_numbers = #tpu.dot_dimension_numbers<[1], [0], [0], [1], [0, 0, 1, 1], [], []>} : vector<8x8xbf16>, vector<8x32xbf16>, vector<8x32xf32> -> vector<8x32xf32>
    %163 = arith.addf %115, %162 : vector<8x32xf32>
    %c3 = arith.constant 3 : index
    %c0_98 = arith.constant 0 : index
    %c0_99 = arith.constant 0 : index
    %164 = vector.load %arg4[%c3, %c0_98, %c0_99] : memref<4x32x8xf32, #tpu.memory_space<vmem>>, vector<1x32x8xf32>
    %165 = vector.shape_cast %164 : vector<1x32x8xf32> to vector<32x8xf32>
    %166 = arith.truncf %165 : vector<32x8xf32> to vector<32x8xbf16>
    %cst_100 = arith.constant dense<0.000000e+00> : vector<8x8xf32>
    %167 = tpu.matmul %17, %166, %cst_100 {dimension_numbers = #tpu.dot_dimension_numbers<[1], [0], [0], [1], [0, 0, 1, 1], [], []>} : vector<8x32xbf16>, vector<32x8xbf16>, vector<8x8xf32> -> vector<8x8xf32>
    %c3_101 = arith.constant 3 : index
    %c0_102 = arith.constant 0 : index
    %c0_103 = arith.constant 0 : index
    %168 = vector.load %arg5[%c3_101, %c0_102, %c0_103] : memref<4x1x8xf32, #tpu.memory_space<vmem>>, vector<1x1x8xf32>
    %169 = vector.shape_cast %168 : vector<1x1x8xf32> to vector<1x8xf32>
    %170 = vector.broadcast %169 : vector<1x8xf32> to vector<8x8xf32>
    %171 = arith.addf %167, %170 : vector<8x8xf32>
    %c3_104 = arith.constant 3 : index
    %c0_105 = arith.constant 0 : index
    %c0_106 = arith.constant 0 : index
    %172 = vector.load %arg6[%c3_104, %c0_105, %c0_106] : memref<4x32x8xf32, #tpu.memory_space<vmem>>, vector<1x32x8xf32>
    %173 = vector.shape_cast %172 : vector<1x32x8xf32> to vector<32x8xf32>
    %174 = arith.truncf %173 : vector<32x8xf32> to vector<32x8xbf16>
    %cst_107 = arith.constant dense<0.000000e+00> : vector<12x8xf32>
    %175 = tpu.matmul %18, %174, %cst_107 {dimension_numbers = #tpu.dot_dimension_numbers<[1], [0], [0], [1], [0, 0, 1, 1], [], []>} : vector<12x32xbf16>, vector<32x8xbf16>, vector<12x8xf32> -> vector<12x8xf32>
    %c3_108 = arith.constant 3 : index
    %c0_109 = arith.constant 0 : index
    %c0_110 = arith.constant 0 : index
    %176 = vector.load %arg7[%c3_108, %c0_109, %c0_110] : memref<4x1x8xf32, #tpu.memory_space<vmem>>, vector<1x1x8xf32>
    %177 = vector.shape_cast %176 : vector<1x1x8xf32> to vector<1x8xf32>
    %178 = vector.broadcast %177 : vector<1x8xf32> to vector<12x8xf32>
    %179 = arith.addf %175, %178 : vector<12x8xf32>
    %c3_111 = arith.constant 3 : index
    %c0_112 = arith.constant 0 : index
    %c0_113 = arith.constant 0 : index
    %180 = vector.load %arg8[%c3_111, %c0_112, %c0_113] : memref<4x32x8xf32, #tpu.memory_space<vmem>>, vector<1x32x8xf32>
    %181 = vector.shape_cast %180 : vector<1x32x8xf32> to vector<32x8xf32>
    %182 = arith.truncf %181 : vector<32x8xf32> to vector<32x8xbf16>
    %cst_114 = arith.constant dense<0.000000e+00> : vector<12x8xf32>
    %183 = tpu.matmul %18, %182, %cst_114 {dimension_numbers = #tpu.dot_dimension_numbers<[1], [0], [0], [1], [0, 0, 1, 1], [], []>} : vector<12x32xbf16>, vector<32x8xbf16>, vector<12x8xf32> -> vector<12x8xf32>
    %c3_115 = arith.constant 3 : index
    %c0_116 = arith.constant 0 : index
    %c0_117 = arith.constant 0 : index
    %184 = vector.load %arg9[%c3_115, %c0_116, %c0_117] : memref<4x1x8xf32, #tpu.memory_space<vmem>>, vector<1x1x8xf32>
    %185 = vector.shape_cast %184 : vector<1x1x8xf32> to vector<1x8xf32>
    %186 = vector.broadcast %185 : vector<1x8xf32> to vector<12x8xf32>
    %187 = arith.addf %183, %186 : vector<12x8xf32>
    %188 = arith.truncf %171 : vector<8x8xf32> to vector<8x8xbf16>
    %189 = arith.truncf %179 : vector<12x8xf32> to vector<12x8xbf16>
    %cst_118 = arith.constant dense<0.000000e+00> : vector<8x12xf32>
    %190 = tpu.matmul %188, %189, %cst_118 {dimension_numbers = #tpu.dot_dimension_numbers<[1], [1], [0], [0], [0, 0, 1, 0], [], []>} : vector<8x8xbf16>, vector<12x8xbf16>, vector<8x12xf32> -> vector<8x12xf32>
    %cst_119 = arith.constant 0.353553385 : f32
    %191 = vector.broadcast %cst_119 : f32 to vector<8x12xf32>
    %192 = arith.mulf %190, %191 : vector<8x12xf32>
    %cst_120 = arith.constant dense<0xFF800000> : vector<8xf32>
    %193 = vector.multi_reduction <maximumf>, %192, %cst_120 [1] : vector<8x12xf32> to vector<8xf32>
    %194 = vector.shape_cast %193 : vector<8xf32> to vector<8x1xf32>
    %195 = vector.broadcast %194 : vector<8x1xf32> to vector<8x12xf32>
    %196 = arith.subf %192, %195 : vector<8x12xf32>
    %197 = math.exp %196 : vector<8x12xf32>
    %cst_121 = arith.constant dense<0.000000e+00> : vector<8xf32>
    %198 = vector.multi_reduction <add>, %197, %cst_121 [1] : vector<8x12xf32> to vector<8xf32>
    %199 = vector.shape_cast %198 : vector<8xf32> to vector<8x1xf32>
    %200 = tpu.reciprocal %199 {approx = true} : vector<8x1xf32> -> vector<8x1xf32>
    %201 = vector.broadcast %200 : vector<8x1xf32> to vector<8x12xf32>
    %202 = arith.mulf %197, %201 : vector<8x12xf32>
    %203 = arith.truncf %202 : vector<8x12xf32> to vector<8x12xbf16>
    %204 = arith.truncf %187 : vector<12x8xf32> to vector<12x8xbf16>
    %cst_122 = arith.constant dense<0.000000e+00> : vector<8x8xf32>
    %205 = tpu.matmul %203, %204, %cst_122 {dimension_numbers = #tpu.dot_dimension_numbers<[1], [0], [0], [1], [0, 0, 1, 1], [], []>} : vector<8x12xbf16>, vector<12x8xbf16>, vector<8x8xf32> -> vector<8x8xf32>
    %206 = arith.truncf %205 : vector<8x8xf32> to vector<8x8xbf16>
    %c3_123 = arith.constant 3 : index
    %c0_124 = arith.constant 0 : index
    %c0_125 = arith.constant 0 : index
    %207 = vector.load %arg10[%c3_123, %c0_124, %c0_125] : memref<4x8x32xf32, #tpu.memory_space<vmem>>, vector<1x8x32xf32>
    %208 = vector.shape_cast %207 : vector<1x8x32xf32> to vector<8x32xf32>
    %209 = arith.truncf %208 : vector<8x32xf32> to vector<8x32xbf16>
    %cst_126 = arith.constant dense<0.000000e+00> : vector<8x32xf32>
    %210 = tpu.matmul %206, %209, %cst_126 {dimension_numbers = #tpu.dot_dimension_numbers<[1], [0], [0], [1], [0, 0, 1, 1], [], []>} : vector<8x8xbf16>, vector<8x32xbf16>, vector<8x32xf32> -> vector<8x32xf32>
    %211 = arith.addf %163, %210 : vector<8x32xf32>
    %212 = arith.addf %1, %211 : vector<8x32xf32>
    %c0_127 = arith.constant 0 : index
    %c0_128 = arith.constant 0 : index
    %213 = vector.load %arg11[%c0_127, %c0_128] : memref<1x32xf32, #tpu.memory_space<vmem>>, vector<1x32xf32>
    %214 = vector.broadcast %213 : vector<1x32xf32> to vector<8x32xf32>
    %215 = arith.addf %212, %214 : vector<8x32xf32>
    %c0_129 = arith.constant 0 : index
    %c0_130 = arith.constant 0 : index
    %c0_131 = arith.constant 0 : index
    %216 = vector.load %arg12[%c0_129, %c0_130, %c0_131] : memref<1x8x32xf32, #tpu.memory_space<vmem>>, vector<1x8x32xf32>
    %217 = vector.shape_cast %216 : vector<1x8x32xf32> to vector<8x32xf32>
    %218 = vector.shape_cast %215 : vector<8x32xf32> to vector<1x8x32xf32>
    tpu.vector_store %arg12[%c0_129, %c0_130, %c0_131], %218 {strides = array<i32>} : memref<1x8x32xf32, #tpu.memory_space<vmem>>, vector<1x8x32xf32>,
    return
  }
  func.func @transform_0(%arg0: i32) -> (i32, i32, i32) {
    %c0_i32 = arith.constant 0 : i32
    %c0_i32_0 = arith.constant 0 : i32
    %c0_i32_1 = arith.constant 0 : i32
    return %arg0, %c0_i32, %c0_i32_0 : i32, i32, i32
  }
  func.func @transform_1(%arg0: i32) -> (i32, i32, i32) {
    %c0_i32 = arith.constant 0 : i32
    %c0_i32_0 = arith.constant 0 : i32
    %c0_i32_1 = arith.constant 0 : i32
    return %arg0, %c0_i32, %c0_i32_0 : i32, i32, i32
  }
  func.func @transform_2(%arg0: i32) -> (i32, i32) {
    %c0_i32 = arith.constant 0 : i32
    %c0_i32_0 = arith.constant 0 : i32
    %c0_i32_1 = arith.constant 0 : i32
    return %c0_i32, %c0_i32_0 : i32, i32
  }
  func.func @transform_3(%arg0: i32) -> (i32, i32, i32) {
    %c0_i32 = arith.constant 0 : i32
    %c0_i32_0 = arith.constant 0 : i32
    %c0_i32_1 = arith.constant 0 : i32
    %c0_i32_2 = arith.constant 0 : i32
    return %c0_i32, %c0_i32_0, %c0_i32_1 : i32, i32, i32
  }
  func.func @transform_4(%arg0: i32) -> (i32, i32, i32) {
    %c0_i32 = arith.constant 0 : i32
    %c0_i32_0 = arith.constant 0 : i32
    %c0_i32_1 = arith.constant 0 : i32
    %c0_i32_2 = arith.constant 0 : i32
    return %c0_i32, %c0_i32_0, %c0_i32_1 : i32, i32, i32
  }
  func.func @transform_5(%arg0: i32) -> (i32, i32, i32) {
    %c0_i32 = arith.constant 0 : i32
    %c0_i32_0 = arith.constant 0 : i32
    %c0_i32_1 = arith.constant 0 : i32
    %c0_i32_2 = arith.constant 0 : i32
    return %c0_i32, %c0_i32_0, %c0_i32_1 : i32, i32, i32
  }
  func.func @transform_6(%arg0: i32) -> (i32, i32, i32) {
    %c0_i32 = arith.constant 0 : i32
    %c0_i32_0 = arith.constant 0 : i32
    %c0_i32_1 = arith.constant 0 : i32
    %c0_i32_2 = arith.constant 0 : i32
    return %c0_i32, %c0_i32_0, %c0_i32_1 : i32, i32, i32
  }
  func.func @transform_7(%arg0: i32) -> (i32, i32, i32) {
    %c0_i32 = arith.constant 0 : i32
    %c0_i32_0 = arith.constant 0 : i32
    %c0_i32_1 = arith.constant 0 : i32
    %c0_i32_2 = arith.constant 0 : i32
    return %c0_i32, %c0_i32_0, %c0_i32_1 : i32, i32, i32
  }
  func.func @transform_8(%arg0: i32) -> (i32, i32, i32) {
    %c0_i32 = arith.constant 0 : i32
    %c0_i32_0 = arith.constant 0 : i32
    %c0_i32_1 = arith.constant 0 : i32
    %c0_i32_2 = arith.constant 0 : i32
    return %c0_i32, %c0_i32_0, %c0_i32_1 : i32, i32, i32
  }
  func.func @transform_9(%arg0: i32) -> (i32, i32, i32) {
    %c0_i32 = arith.constant 0 : i32
    %c0_i32_0 = arith.constant 0 : i32
    %c0_i32_1 = arith.constant 0 : i32
    %c0_i32_2 = arith.constant 0 : i32
    return %c0_i32, %c0_i32_0, %c0_i32_1 : i32, i32, i32
  }
  func.func @transform_10(%arg0: i32) -> (i32, i32) {
    %c0_i32 = arith.constant 0 : i32
    %c0_i32_0 = arith.constant 0 : i32
    %c0_i32_1 = arith.constant 0 : i32
    return %c0_i32, %c0_i32_0 : i32, i32
  }
  func.func @transform_11(%arg0: i32) -> (i32, i32, i32) {
    %c0_i32 = arith.constant 0 : i32
    %c0_i32_0 = arith.constant 0 : i32
    %c0_i32_1 = arith.constant 0 : i32
    return %arg0, %c0_i32, %c0_i32_0 : i32, i32, i32
  }
}

module attributes {stable_mosaic.version = 11 : i64} {
  func.func @_mlp_sublayer_kernel(%arg0: i32, %arg1: memref<16x32xf32, #tpu.memory_space<vmem>>, %arg2: memref<1x32xf32, #tpu.memory_space<vmem>>, %arg3: memref<32x128xf32, #tpu.memory_space<vmem>>, %arg4: memref<1x128xf32, #tpu.memory_space<vmem>>, %arg5: memref<128x32xf32, #tpu.memory_space<vmem>>, %arg6: memref<1x32xf32, #tpu.memory_space<vmem>>, %arg7: memref<16x32xf32, #tpu.memory_space<vmem>>) attributes {dimension_semantics = [#tpu.dimension_semantics<parallel>], iteration_bounds = array<i64: 1>, scalar_prefetch = 0 : i64, scratch_operands = 0 : i64, tpu.core_type = #tpu.core_type<tc>, window_params = [{transform_indices = @transform_0, window_bounds = array<i64: 16, 32>}, {pipeline_mode = #tpu.pipeline_mode<synchronous>, transform_indices = @transform_1, window_bounds = array<i64: 1, 32>}, {pipeline_mode = #tpu.pipeline_mode<synchronous>, transform_indices = @transform_2, window_bounds = array<i64: 32, 128>}, {pipeline_mode = #tpu.pipeline_mode<synchronous>, transform_indices = @transform_3, window_bounds = array<i64: 1, 128>}, {pipeline_mode = #tpu.pipeline_mode<synchronous>, transform_indices = @transform_4, window_bounds = array<i64: 128, 32>}, {pipeline_mode = #tpu.pipeline_mode<synchronous>, transform_indices = @transform_5, window_bounds = array<i64: 1, 32>}, {transform_indices = @transform_6, window_bounds = array<i64: 16, 32>}]} {
    %c0 = arith.constant 0 : index
    %c0_0 = arith.constant 0 : index
    %0 = vector.load %arg1[%c0, %c0_0] : memref<16x32xf32, #tpu.memory_space<vmem>>, vector<16x32xf32>
    %c0_1 = arith.constant 0 : index
    %c0_2 = arith.constant 0 : index
    %1 = vector.load %arg2[%c0_1, %c0_2] : memref<1x32xf32, #tpu.memory_space<vmem>>, vector<1x32xf32>
    %2 = arith.mulf %0, %0 : vector<16x32xf32>
    %cst = arith.constant dense<0.000000e+00> : vector<16xf32>
    %3 = vector.multi_reduction <add>, %2, %cst [1] : vector<16x32xf32> to vector<16xf32>
    %4 = vector.shape_cast %3 : vector<16xf32> to vector<16x1xf32>
    %cst_3 = arith.constant 3.200000e+01 : f32
    %5 = vector.broadcast %cst_3 : f32 to vector<16x1xf32>
    %6 = arith.divf %4, %5 : vector<16x1xf32>
    %7 = vector.broadcast %1 : vector<1x32xf32> to vector<16x32xf32>
    %8 = arith.mulf %7, %0 : vector<16x32xf32>
    %cst_4 = arith.constant 9.99999974E-6 : f32
    %9 = vector.broadcast %cst_4 : f32 to vector<16x1xf32>
    %10 = arith.addf %6, %9 : vector<16x1xf32>
    %11 = math.rsqrt %10 : vector<16x1xf32>
    %12 = vector.broadcast %11 : vector<16x1xf32> to vector<16x32xf32>
    %13 = arith.mulf %8, %12 : vector<16x32xf32>
    %14 = arith.truncf %13 : vector<16x32xf32> to vector<16x32xbf16>
    %c0_5 = arith.constant 0 : index
    %c0_6 = arith.constant 0 : index
    %15 = vector.load %arg3[%c0_5, %c0_6] : memref<32x128xf32, #tpu.memory_space<vmem>>, vector<32x128xf32>
    %16 = arith.truncf %15 : vector<32x128xf32> to vector<32x128xbf16>
    %cst_7 = arith.constant dense<0.000000e+00> : vector<16x128xf32>
    %17 = tpu.matmul %14, %16, %cst_7 {dimension_numbers = #tpu.dot_dimension_numbers<[1], [0], [0], [1], [0, 0, 1, 1], [], []>} : vector<16x32xbf16>, vector<32x128xbf16>, vector<16x128xf32> -> vector<16x128xf32>
    %c0_8 = arith.constant 0 : index
    %c0_9 = arith.constant 0 : index
    %18 = vector.load %arg4[%c0_8, %c0_9] : memref<1x128xf32, #tpu.memory_space<vmem>>, vector<1x128xf32>
    %19 = vector.broadcast %18 : vector<1x128xf32> to vector<16x128xf32>
    %20 = arith.addf %17, %19 : vector<16x128xf32>
    %cst_10 = arith.constant 5.000000e-01 : f32
    %21 = vector.broadcast %cst_10 : f32 to vector<16x128xf32>
    %22 = arith.mulf %21, %20 : vector<16x128xf32>
    %cst_11 = arith.constant 0.707106769 : f32
    %23 = vector.broadcast %cst_11 : f32 to vector<16x128xf32>
    %24 = arith.mulf %20, %23 : vector<16x128xf32>
    %25 = math.erf %24 : vector<16x128xf32>
    %cst_12 = arith.constant 1.000000e+00 : f32
    %26 = vector.broadcast %cst_12 : f32 to vector<16x128xf32>
    %27 = arith.addf %26, %25 : vector<16x128xf32>
    %28 = arith.mulf %22, %27 : vector<16x128xf32>
    %29 = arith.truncf %28 : vector<16x128xf32> to vector<16x128xbf16>
    %c0_13 = arith.constant 0 : index
    %c0_14 = arith.constant 0 : index
    %30 = vector.load %arg5[%c0_13, %c0_14] : memref<128x32xf32, #tpu.memory_space<vmem>>, vector<128x32xf32>
    %31 = arith.truncf %30 : vector<128x32xf32> to vector<128x32xbf16>
    %cst_15 = arith.constant dense<0.000000e+00> : vector<16x32xf32>
    %32 = tpu.matmul %29, %31, %cst_15 {dimension_numbers = #tpu.dot_dimension_numbers<[1], [0], [0], [1], [0, 0, 1, 1], [], []>} : vector<16x128xbf16>, vector<128x32xbf16>, vector<16x32xf32> -> vector<16x32xf32>
    %c0_16 = arith.constant 0 : index
    %c0_17 = arith.constant 0 : index
    %33 = vector.load %arg6[%c0_16, %c0_17] : memref<1x32xf32, #tpu.memory_space<vmem>>, vector<1x32xf32>
    %34 = vector.broadcast %33 : vector<1x32xf32> to vector<16x32xf32>
    %35 = arith.addf %32, %34 : vector<16x32xf32>
    %36 = arith.addf %0, %35 : vector<16x32xf32>
    %c0_18 = arith.constant 0 : index
    %c0_19 = arith.constant 0 : index
    %37 = vector.load %arg7[%c0_18, %c0_19] : memref<16x32xf32, #tpu.memory_space<vmem>>, vector<16x32xf32>
    tpu.vector_store %arg7[%c0_18, %c0_19], %36 {strides = array<i32>} : memref<16x32xf32, #tpu.memory_space<vmem>>, vector<16x32xf32>,
    return
  }
  func.func @transform_0(%arg0: i32) -> (i32, i32) {
    %c0_i32 = arith.constant 0 : i32
    %c0_i32_0 = arith.constant 0 : i32
    return %arg0, %c0_i32 : i32, i32
  }
  func.func @transform_1(%arg0: i32) -> (i32, i32) {
    %c0_i32 = arith.constant 0 : i32
    %c0_i32_0 = arith.constant 0 : i32
    %c0_i32_1 = arith.constant 0 : i32
    return %c0_i32, %c0_i32_0 : i32, i32
  }
  func.func @transform_2(%arg0: i32) -> (i32, i32) {
    %c0_i32 = arith.constant 0 : i32
    %c0_i32_0 = arith.constant 0 : i32
    %c0_i32_1 = arith.constant 0 : i32
    return %c0_i32, %c0_i32_0 : i32, i32
  }
  func.func @transform_3(%arg0: i32) -> (i32, i32) {
    %c0_i32 = arith.constant 0 : i32
    %c0_i32_0 = arith.constant 0 : i32
    %c0_i32_1 = arith.constant 0 : i32
    return %c0_i32, %c0_i32_0 : i32, i32
  }
  func.func @transform_4(%arg0: i32) -> (i32, i32) {
    %c0_i32 = arith.constant 0 : i32
    %c0_i32_0 = arith.constant 0 : i32
    %c0_i32_1 = arith.constant 0 : i32
    return %c0_i32, %c0_i32_0 : i32, i32
  }
  func.func @transform_5(%arg0: i32) -> (i32, i32) {
    %c0_i32 = arith.constant 0 : i32
    %c0_i32_0 = arith.constant 0 : i32
    %c0_i32_1 = arith.constant 0 : i32
    return %c0_i32, %c0_i32_0 : i32, i32
  }
  func.func @transform_6(%arg0: i32) -> (i32, i32) {
    %c0_i32 = arith.constant 0 : i32
    %c0_i32_0 = arith.constant 0 : i32
    return %arg0, %c0_i32 : i32, i32
  }
}

</mosaic_0001>

<bundles_post_ra>
// kernel: decoder_block.5
= control target key start
LH: loop header
LB: loop body
LE: loop exit
PB: predicated region body
PF: predicated region fallthrough
CT: control target
= control target key end

     0   :  { %vm30_vm0 = vcmask 261120   ;;  %s440_s0 = inlined_call_operand.vmem [shape: f32[16,32], index: 0, kind: input, shape index: {}]   ;;  %s441_s1 = inlined_call_operand.vmem [shape: f32[1,32], index: 1, kind: input, shape index: {}]   ;;  %s442_s2 = inlined_call_operand.vmem [shape: f32[32,128], index: 2, kind: input, shape index: {}]   ;;  %s443_s3 = inlined_call_operand.vmem [shape: f32[1,128], index: 3, kind: input, shape index: {}]   ;;  %s444_s4 = inlined_call_operand.vmem [shape: f32[128,32], index: 4, kind: input, shape index: {}]   ;;  %s445_s5 = inlined_call_operand.vmem [shape: f32[1,32], index: 5, kind: input, shape index: {}]   ;;  %s446_s6 = inlined_call_operand.hbm [shape: f32[16,32], index: 6, kind: output, shape index: {}]  }
   0x1   :  { %v339_v0 = vld [vmem:[%s440_s0] sm:$0xff]  ;;  %v344_v1 = vld [vmem:[%s440_s0 + $0x8] sm:$0xff] }
   0x2   :  { %v28_v2 = vmul.f32 %v339_v0, %v339_v0  ;;  %v29_v3 = vmul.f32 %v344_v1, %v344_v1 }
   0x3   :  { %11 = vsyncpa [#allocation3], 0  ;;  %v55_v6 = vld [vmem:[%s442_s2] sm:$0xff]  ;;  %v56_v7 = vld [vmem:[%s442_s2 + $0x8] sm:$0xff]  ;;  %v296_v9 = vmov 0.0   ;;  %vm297_vm1 = vmmov 0  }
   0x4   :  { %v31_v4 = vsel %vm30_vm0, %v28_v2, 0.0  ;;  %v34_v5 = vsel %vm30_vm0, %v29_v3, 0.0  ;;  %v57_v8 = vld [vmem:[%s442_s2 + $0x10] sm:$0xff]  ;;  %231 = vmatprep.subr.bf16.mxu0 %v296_v9  ;;  %v59_v10 = vpack.c.bf16 %v56_v7, %v55_v6  ;;  %v58_v11 = vld [vmem:[%s442_s2 + $0x18] sm:$0xff]  ;;  %235 = vmatprep.mubr.msk.bf16.mxu0 %vm297_vm1, %v296_v9  ;;  %v123_v13 = vld [vmem:[%s444_s4] sm:$0xff]  ;;  %s298_s16 = smov [#allocation2]  }
   0x5   :  { %32 = vadd.xlane.f32.xlu0 %v31_v4  ;;  %239 = vmatprep.subr.bf16.mxu1 %v296_v9  ;;  %v60_v12 = vpack.c.bf16 %v58_v11, %v57_v8  ;;  %v124_v14 = vld [vmem:[%s444_s4 + $0x8] sm:$0xff]  ;;  %v125_v15 = vld [vmem:[%s444_s4 + $0x10] sm:$0xff]  ;;  %v126_v17 = vld [vmem:[%s444_s4 + $0x18] sm:$0xff]  ;;  %s204_s17 = sshll.u32 %s298_s16, 4  ;;  %s205_s17 = int_to_ptr.vmem [resolvable:$true] %s204_s17 }
   0x6   :  { %255 = vmatprep.mubr.msk.bf16.mxu1 %vm297_vm1, %v296_v9  ;;  %232 = vmatpush3.bf16.msra.mxu0 %v59_v10  ;;  %v139_v16 = vpack.c.bf16 %v124_v14, %v123_v13  ;;  %v140_v18 = vpack.c.bf16 %v126_v17, %v125_v15  ;;  %v215_v25 = vld [vmem:[%s441_s1] ss:$0 sm:$0xff]  ;;  %v128_v34 = vld [vmem:[%s444_s4 + $0x28] sm:$0xff]  ;;  %v129_v36 = vld [vmem:[%s444_s4 + $0x30] sm:$0xff]  ;;  %s272_s18 = scalar_lea.vmem %s205_s17, 256  ;;  %p277_p1 = scmp.lt.s32.totalorder %s205_s17, %s205_s17 }
   0x7   :  { %233 = vmatprep.subr.bf16.mxu0 %v296_v9  ;;  %v46_v26 = vmul.f32 %v215_v25, %v339_v0  ;;  %v47_v27 = vmul.f32 %v215_v25, %v344_v1  ;;  %v127_v33 = vld [vmem:[%s444_s4 + $0x20] sm:$0xff]  ;;  %v130_v37 = vld [vmem:[%s444_s4 + $0x38] sm:$0xff]  ;;  %v132_v40 = vld [vmem:[%s444_s4 + $0x48] sm:$0xff]  ;;  %p273_p0 = scmp.ne.s32.totalorder %s205_s17, %s272_s18  ;;  %p278_p2 = scmp.lt.s32.totalorder %s272_s18, %s272_s18 }
   0x8   :  { %240 = vmatpush3.bf16.msra.mxu1 %v139_v16  ;;  %v141_v35 = vpack.c.bf16 %v128_v34, %v127_v33  ;;  %v142_v38 = vpack.c.bf16 %v130_v37, %v129_v36  ;;  %v131_v39 = vld [vmem:[%s444_s4 + $0x40] sm:$0xff]  ;;  %v133_v42 = vld [vmem:[%s444_s4 + $0x50] sm:$0xff]  ;;  %v134_v43 = vld [vmem:[%s444_s4 + $0x58] sm:$0xff] }
   0x9   :  { %35 = vadd.xlane.f32.xlu0 %v34_v5  ;;  %241 = vmatprep.subr.bf16.mxu1 %v296_v9  ;;  %v143_v41 = vpack.c.bf16 %v132_v40, %v131_v39  ;;  %v144_v44 = vpack.c.bf16 %v134_v43, %v133_v42  ;;  %v135_v45 = vld [vmem:[%s444_s4 + $0x60] sm:$0xff]  ;;  %v136_v46 = vld [vmem:[%s444_s4 + $0x68] sm:$0xff]  ;;  %v137_v48 = vld [vmem:[%s444_s4 + $0x70] sm:$0xff]  ;;  %p279_p3 = por %p278_p2, %p277_p1 }
   0xa   :  { %234 = vmatpush3.bf16.msra.mxu0 %v60_v12  ;;  %v145_v47 = vpack.c.bf16 %v136_v46, %v135_v45  ;;  %v138_v49 = vld [vmem:[%s444_s4 + $0x78] sm:$0xff]  ;;  %v216_v51 = vld [vmem:[%s443_s3] ss:$0 sm:$0xff] }
   0xb   :  { %v146_v50 = vpack.c.bf16 %v138_v49, %v137_v48  ;;  %v218_v7 = vld [vmem:[%s445_s5] ss:$0 sm:$0xff]  ;;  %p280_p4 = pnand %p279_p3, %p273_p0 }
   0xc   :  { %242 = vmatpush3.bf16.msra.mxu1 %v140_v18 }
   0xd   :  { %243 = vmatprep.subr.bf16.mxu1 %v296_v9 }
  0x10   :  { %244 = vmatpush3.bf16.msra.mxu1 %v141_v35 }
  0x11   :  { %245 = vmatprep.subr.bf16.mxu1 %v296_v9 }
  0x14   :  { %246 = vmatpush3.bf16.msra.mxu1 %v142_v38 }
  0x15   :  { %247 = vmatprep.subr.bf16.mxu1 %v296_v9 }
  0x18   :  { %248 = vmatpush3.bf16.msra.mxu1 %v143_v41 }
  0x19   :  { %249 = vmatprep.subr.bf16.mxu1 %v296_v9 }
  0x1c   :  { %250 = vmatpush3.bf16.msra.mxu1 %v144_v44 }
  0x1d   :  { %251 = vmatprep.subr.bf16.mxu1 %v296_v9 }
  0x20   :  { %252 = vmatpush3.bf16.msra.mxu1 %v145_v47 }
  0x21   :  { %253 = vmatprep.subr.bf16.mxu1 %v296_v9 }
  0x24   :  { %254 = vmatpush3.bf16.msra.mxu1 %v146_v50 }
  0x92   :  { %v33_v19 = vpop.xlane.xlu0 %32 }
  0x93   :  { %v38_v20 = vmul.f32 0.03125, %v33_v19 }
  0x95   :  { %v48_v21 = vadd.f32 1e-05, %v38_v20 }
  0x96   :  { %v36_v22 = vpop.xlane.xlu0 %35 }
  0x97   :  { %v39_v23 = vmul.f32 0.03125, %v36_v22  ;;  %264 = vrsqrt.f32 %v48_v21 }
  0x99   :  { %v49_v24 = vadd.f32 1e-05, %v39_v23 }
  0x9b   :  { %266 = vrsqrt.f32 %v49_v24 }
  0xa1   :  { %v265_v28 = vpop.eup %264 }
  0xa2   :  { %v52_v30 = vmul.f32 %v265_v28, %v46_v26 }
  0xa5   :  { %v267_v29 = vpop.eup %266 }
  0xa6   :  { %v53_v31 = vmul.f32 %v267_v29, %v47_v27 }
  0xa8   :  { %v54_v32 = vpack.c.bf16 %v53_v31, %v52_v30 }
  0xaa   :  { %236 = vmatmul.mubr.msk.bf16.vlgmr.msra.gmra.mrb[0].mxu0 %vm30_vm0, %v54_v32 }
 0x17d   :  { %v105_v52 = vpop.f32.mrb[0].mxu0 }
 0x17e   :  { %v106_v53 = vadd.f32 %v216_v51, %v105_v52  ;;  %v237_v54 = vpop.f32.mrb[1].mxu0 }
 0x17f   :  { %v108_v55 = vpop.f32.mrb[2].mxu0 }
 0x180   :  { %v114_v56 = vmul.f32 0.70710677, %v106_v53  ;;  %v109_v57 = vadd.f32 %v216_v51, %v108_v55  ;;  %v238_v58 = vpop.f32.mrb[3].mxu0  ;;  %v112_v63 = vmul.f32 0.5, %v106_v53 }
 0x182   :  { %268 = verf.f32 %v114_v56  ;;  %v115_v59 = vmul.f32 0.70710677, %v109_v57  ;;  %v113_v2 = vmul.f32 0.5, %v109_v57 }
 0x184   :  { %270 = verf.f32 %v115_v59 }
 0x18c   :  { %v269_v60 = vpop.eup %268 }
 0x18d   :  { %v118_v61 = vadd.f32 1.0, %v269_v60 }
 0x18e   :  { %v271_v62 = vpop.eup %270 }
 0x18f   :  { %v119_v3 = vadd.f32 1.0, %v271_v62  ;;  %v120_v4 = vmul.f32 %v118_v61, %v112_v63 }
 0x191   :  { %v121_v5 = vmul.f32 %v119_v3, %v113_v2 }
 0x193   :  { %v122_v6 = vpack.c.bf16 %v121_v5, %v120_v4 }
 0x195   :  { %256 = vmatmul.mubr.bf16.vlgmr.msra.gmra.mrb[0].mxu1 %v122_v6 }
 0x268   :  { %v188_v8 = vpop.f32.mrb[0].mxu1 }
 0x269   :  { %v189_v9 = vadd.f32 %v218_v7, %v188_v8  ;;  %v257_v10 = vpop.f32.mrb[1].mxu1 }
 0x26a   :  { %v191_v11 = vpop.f32.mrb[2].mxu1 }
 0x26b   :  { %v195_v12 = vadd.f32 %v189_v9, %v339_v0  ;;  %v192_v13 = vadd.f32 %v218_v7, %v191_v11  ;;  %v258_v14 = vpop.f32.mrb[3].mxu1 }
 0x26d   :  { %197 = vst.msk [vmem:[#allocation2] sm:$0xff] %vm30_vm0, %v195_v12  ;;  %v196_v15 = vadd.f32 %v192_v13, %v344_v1 }
 0x26f   :  { %198 = vst.msk [vmem:[#allocation2 + $0x8] sm:$0xff] %vm30_vm0, %v196_v15 }
 0x270   :  { %283 = shalt.err (!%p280_p4)
}
 0x271   :  { %s284_s20 = scalar_lea.hbm %s446_s6, 256 }
 0x272   :  { %p285_p5 = scmp.ne.s32.totalorder %s446_s6, %s284_s20  ;;  %p288_p6 = scmp.lt.u32.totalorder %s284_s20, %s446_s6 }
 0x274   :  { %p290_p7 = pnand %p288_p6, %p285_p5 }
 0x276   :  { %293 = shalt.err (!%p290_p7)
}
 0x277   :  { %s299_s24 = smov 128   ;;  %s300_s25 = smov 8  }
 0x278   :  { %210 = dma.vmem_to_hbm [thread:$0]  %s205_s17, 256, %s446_s6, [#allocation3], %s299_s24, %s299_s24, %s300_s25  }
 0x279   :  { %294 = dma.done.wait [#allocation3], 256  }
 0x27a   :  { %295 = vsyncadd [#allocation3], 4294967040 }
 0x27b   :  { %214 = vsyncpa [#allocation3], 1 }

// kernel: decoder_block.3
= control target key start
LH: loop header
LB: loop body
LE: loop exit
PB: predicated region body
PF: predicated region fallthrough
CT: control target
= control target key end

     0   :  { %s2184_s17 = smov 0   ;;  %s2568_s0 = inlined_call_operand.vmem [shape: f32[2,8,32], index: 0, kind: input, shape index: {}]   ;;  %s2569_s1 = inlined_call_operand.vmem [shape: f32[1,32], index: 1, kind: input, shape index: {}]   ;;  %s2570_s2 = inlined_call_operand.vmem [shape: f32[4,32,8], index: 2, kind: input, shape index: {}]   ;;  %s2571_s3 = inlined_call_operand.vmem [shape: f32[4,1,8], index: 3, kind: input, shape index: {}]   ;;  %s2572_s4 = inlined_call_operand.vmem [shape: f32[4,32,8], index: 4, kind: input, shape index: {}]   ;;  %s2573_s5 = inlined_call_operand.vmem [shape: f32[4,1,8], index: 5, kind: input, shape index: {}]   ;;  %s2574_s6 = inlined_call_operand.vmem [shape: f32[4,32,8], index: 6, kind: input, shape index: {}]   ;;  %s2575_s7 = inlined_call_operand.vmem [shape: f32[4,1,8], index: 7, kind: input, shape index: {}]   ;;  %s2576_s8 = inlined_call_operand.vmem [shape: f32[4,8,32], index: 8, kind: input, shape index: {}]   ;;  %s2577_s9 = inlined_call_operand.vmem [shape: f32[1,32], index: 9, kind: input, shape index: {}]   ;;  %s2578_s10 = inlined_call_operand.vmem [shape: f32[8,8], index: 10, kind: input, shape index: {}]   ;;  %s2579_s11 = inlined_call_operand.vmem [shape: f32[2,8,32], index: 11, kind: output, shape index: {}]  }
   0x1 LB: > { %s1763_s18 = sadd.s32 4294967295, %s2120_s17   ;;  %p1767_p0 = scmp.ge.s32.totalorder %s2120_s17, 1  ;;  %s2120_s17 = sphi %s2184_s17, %s21_s17  }
   0x2   : > { %p336_p1 = scmp.lt.s32.totalorder %s2120_s17, 3 }
   0x4   : > { %p337_p2 = pnand %p1767_p0, %p336_p1 }
   0x5   : > { %p374_p3 = scmp.lt.s32.totalorder (!%p337_p2), %s1763_s18, 1  ;;  %vm386_vm0 = vcmask (!%p337_p2), 261120   ;;  %v403_v3 = vld [vmem:[%s2570_s2] sm:$0xff] (!%p337_p2)  ;;  %v404_v4 = vld [vmem:[%s2570_s2 + $0x8] sm:$0xff] (!%p337_p2)  ;;  %v2122_v8 = vmov (!%p337_p2), 0.0   ;;  %v405_v10 = vld [vmem:[%s2570_s2 + $0x10] sm:$0xff] (!%p337_p2) }
   0x6   : > { %340 = sbr.rel (%p337_p2) target bundleno = 4082 (0xff2), region = 64  ;;  %v459_v5 = vld [vmem:[%s2572_s4] sm:$0xff] (!%p337_p2)  ;;  %v407_v6 = vpack.c.bf16 (!%p337_p2), %v404_v4, %v403_v3  ;;  %v460_v7 = vld [vmem:[%s2572_s4 + $0x8] sm:$0xff] (!%p337_p2)  ;;  %1918 = vmatprep.subr.bf16.mxu0 (!%p337_p2), %v2122_v8  ;;  %1926 = vmatprep.subr.bf16.mxu1 (!%p337_p2), %v2122_v8  ;;  %v406_v11 = vld [vmem:[%s2570_s2 + $0x18] sm:$0xff] (!%p337_p2)  ;;  %vm2123_vm1 = vmmov (!%p337_p2), 0   ;;  %vm567_vm2 = vcmask (!%p337_p2), 64512  }
   0x7   : > { %v463_v9 = vpack.c.bf16 (!%p337_p2), %v460_v7, %v459_v5  ;;  %v461_v12 = vld [vmem:[%s2572_s4 + $0x10] sm:$0xff] (!%p337_p2)  ;;  %v408_v13 = vpack.c.bf16 (!%p337_p2), %v406_v11, %v405_v10  ;;  %v462_v14 = vld [vmem:[%s2572_s4 + $0x18] sm:$0xff] (!%p337_p2)  ;;  %1922 = vmatprep.mubr.msk.bf16.mxu0 (!%p337_p2), %vm2123_vm1, %v2122_v8  ;;  %1930 = vmatprep.mubr.msk.bf16.mxu1 (!%p337_p2), %vm2123_vm1, %v2122_v8  ;;  %v1770_v19 = vld [vmem:[%s2569_s1] ss:$0 sm:$0xff] (!%p337_p2)  ;;  %vm633_vm3 = vcmask (!%p337_p2), 1043456  }
   0x8   : > { %1919 = vmatpush3.bf16.msra.mxu0 (!%p337_p2), %v407_v6  ;;  %v464_v15 = vpack.c.bf16 (!%p337_p2), %v462_v14, %v461_v12  ;;  %v512_v21 = vld [vmem:[%s2574_s6] sm:$0xff] (!%p337_p2)  ;;  %v513_v22 = vld [vmem:[%s2574_s6 + $0x8] sm:$0xff] (!%p337_p2)  ;;  %v514_v27 = vld [vmem:[%s2574_s6 + $0x10] sm:$0xff] (!%p337_p2) }
   0x9   : > { %1927 = vmatpush3.bf16.msra.mxu1 (!%p337_p2), %v463_v9  ;;  %1920 = vmatprep.subr.bf16.mxu0 (!%p337_p2), %v2122_v8  ;;  %v516_v25 = vpack.c.bf16 (!%p337_p2), %v513_v22, %v512_v21  ;;  %v515_v28 = vld [vmem:[%s2574_s6 + $0x18] sm:$0xff] (!%p337_p2)  ;;  %v1773_v30 = vld [vmem:[%s2573_s5] ss:$0 sm:$0xff] (!%p337_p2)  ;;  %v1780_v46 = vld [vmem:[%s2570_s2 + $0x28] sm:$0xff] (!%p337_p2) }
   0xa   : > { %1928 = vmatprep.subr.bf16.mxu1 (!%p337_p2), %v2122_v8  ;;  %v517_v29 = vpack.c.bf16 (!%p337_p2), %v515_v28, %v514_v27  ;;  %v1771_v41 = vld [vmem:[%s2571_s3] ss:$0 sm:$0xff] (!%p337_p2)  ;;  %v1781_v55 = vld [vmem:[%s2570_s2 + $0x30] sm:$0xff] (!%p337_p2)  ;;  %v1782_v56 = vld [vmem:[%s2570_s2 + $0x38] sm:$0xff] (!%p337_p2) }
   0xb   : > { %v1775_v43 = vld [vmem:[%s2575_s7] ss:$0 sm:$0xff] (!%p337_p2)  ;;  %v686_v58 = vpack.c.bf16 (!%p337_p2), %v1782_v56, %v1781_v55  ;;  %v1794_v60 = vld [vmem:[%s2574_s6 + $0x28] sm:$0xff] (!%p337_p2)  ;;  %v1795_v62 = vld [vmem:[%s2574_s6 + $0x30] sm:$0xff] (!%p337_p2) }
   0xc   : > { %1921 = vmatpush3.bf16.msra.mxu0 (!%p337_p2), %v408_v13  ;;  %v1779_v45 = vld [vmem:[%s2570_s2 + $0x20] sm:$0xff] (!%p337_p2)  ;;  %v1796_v63 = vld [vmem:[%s2574_s6 + $0x38] sm:$0xff] (!%p337_p2) }
   0xd   : > { %s2581_s18 = smov (!%p374_p3, %s1763_s18), 1  ;;  %1929 = vmatpush3.bf16.msra.mxu1 %v464_v15  ;;  %1934 = vmatprep.subr.bf16.mxu0 %v2122_v8  ;;  %v685_v51 = vpack.c.bf16 %v1780_v46, %v1779_v45  ;;  %v1793_v59 = vld [vmem:[%s2574_s6 + $0x20] sm:$0xff] }
   0xe   : > { %s1768_s19 = sshll.u32 %s2581_s18, 3  ;;  %1942 = vmatprep.subr.bf16.mxu1 %v2122_v8  ;;  %v795_v61 = vpack.c.bf16 %v1794_v60, %v1793_v59  ;;  %v2326_v3 = vld [vmem:[%s2578_s10] sm:$0xff] }
   0xf   : > { %s377_s22 = scalar_lea.vmem %s2568_s0, %s1768_s19  ;;  %v1798_v15 = vld [vmem:[%s2575_s7 + $0x1] ss:$0 sm:$0xff]  ;;  %s381_s12 = scalar_lea.vmem %s2579_s11, %s1768_s19 }
  0x10   : > { %v2200_v0 = vld [vmem:[%s377_s22] sm:$0xff] }
  0x11   : > { %v385_v1 = vmul.f32 %v2200_v0, %v2200_v0  ;;  %v398_v20 = vmul.f32 %v1770_v19, %v2200_v0 }
  0x13   : > { %v387_v2 = vsel %vm386_vm0, %v385_v1, 0.0  ;;  %v796_v1 = vpack.c.bf16 %v1796_v63, %v1795_v62 }
  0x14   : > { %388 = vadd.xlane.f32.xlu0 %v387_v2 }
  0xa1   : > { %v389_v16 = vpop.xlane.xlu0 %388 }
  0xa2   : > { %v391_v17 = vmul.f32 0.03125, %v389_v16 }
  0xa4   : > { %v399_v18 = vadd.f32 1e-05, %v391_v17 }
  0xa6   : > { %2096 = vrsqrt.f32 %v399_v18 }
  0xb0   : > { %v2097_v23 = vpop.eup %2096 }
  0xb1   : > { %v401_v24 = vmul.f32 %v2097_v23, %v398_v20 }
  0xb3   : > { %v2249_v26 = vpack.c.bf16 %v401_v24, %v401_v24 }
  0xb5   : > { %1923 = vmatmul.mubr.msk.bf16.vlgmr.msra.gmra.mrb[0].mxu0 %vm386_vm0, %v2249_v26  ;;  %1931 = vmatmul.mubr.msk.bf16.vlgmr.msra.gmra.mrb[0].mxu1 %vm386_vm0, %v2249_v26 }
  0xb6   : > { %1935 = vmatpush3.bf16.msra.mxu0 %v516_v25  ;;  %1938 = vmatprep.mubr.msk.bf16.mxu0 %vm2123_vm1, %v2122_v8 }
  0xb7   : > { %1936 = vmatprep.subr.bf16.mxu0 %v2122_v8  ;;  %1944 = vmatprep.mubr.msk.bf16.mxu1 %vm2123_vm1, %v2122_v8 }
  0xba   : > { %1937 = vmatpush3.bf16.msra.mxu0 %v517_v29 }
  0xbb   : > { %1948 = vmatprep.subr.bf16.mxu0 %v2122_v8 }
  0xbd   : > { %1939 = vmatmul.mubr.msk.bf16.vlgmr.msra.gmra.mrb[4].mxu0 %vm386_vm0, %v2249_v26 }
  0xbe   : > { %1950 = vmatprep.mubr.msk.bf16.mxu0 %vm2123_vm1, %v2122_v8 }
 0x188   : > { %v453_v31 = vpop.f32.mrb[0].mxu0  ;;  %v506_v32 = vpop.f32.mrb[0].mxu1 }
 0x189   : > { %v507_v33 = vadd.f32 %v1773_v30, %v506_v32  ;;  %v1924_v34 = vpop.f32.mrb[1].mxu0  ;;  %v1932_v35 = vpop.f32.mrb[1].mxu1  ;;  %v454_v44 = vadd.f32 %v1771_v41, %v453_v31  ;;  %v1786_v30 = vld [vmem:[%s2572_s4 + $0x20] sm:$0xff]  ;;  %v1787_v31 = vld [vmem:[%s2572_s4 + $0x28] sm:$0xff] }
 0x18a   : > { %v456_v36 = vpop.f32.mrb[2].mxu0  ;;  %v509_v37 = vpop.f32.mrb[2].mxu1  ;;  %v740_v34 = vpack.c.bf16 %v1787_v31, %v1786_v30  ;;  %v1808_v30 = vld [vmem:[%s2570_s2 + $0x58] sm:$0xff] }
 0x18b   : > { %v566_v38 = vpack.c.bf16 %v507_v33, %v507_v33  ;;  %v1925_v39 = vpop.f32.mrb[3].mxu0  ;;  %v1933_v40 = vpop.f32.mrb[3].mxu1  ;;  %v565_v52 = vpack.c.bf16 %v454_v44, %v454_v44  ;;  %v1788_v36 = vld [vmem:[%s2572_s4 + $0x30] sm:$0xff]  ;;  %v1789_v37 = vld [vmem:[%s2572_s4 + $0x38] sm:$0xff] }
 0x18d   : > { %v572_v42 = vsel %vm567_vm2, %v566_v38, 0  ;;  %v741_v38 = vpack.c.bf16 %v1789_v37, %v1788_v36 }
 0x18e   : > { %1943 = vmatpush3.bf16.xpose.msra.mxu1 %v572_v42 }
 0x18f   : > { %1954 = vmatprep.subr.bf16.mxu1 %v2122_v8 }
 0x190   : > { %v559_v47 = vpop.f32.mrb[4].mxu0 }
 0x191   : > { %v560_v48 = vadd.f32 %v1775_v43, %v559_v47  ;;  %v1940_v49 = vpop.f32.mrb[5].mxu0  ;;  %v1791_v43 = vld [vmem:[%s2573_s5 + $0x1] ss:$0 sm:$0xff] }
 0x192   : > { %v562_v50 = vpop.f32.mrb[6].mxu0 }
 0x193   : > { %v629_v53 = vpack.c.bf16 %v560_v48, %v560_v48  ;;  %v1941_v54 = vpop.f32.mrb[7].mxu0  ;;  %v1784_v50 = vld [vmem:[%s2571_s3 + $0x1] ss:$0 sm:$0xff] }
 0x195   : > { %v635_v57 = vsel %vm633_vm3, %v629_v53, 0  ;;  %1945 = vmatmul.mubr.msk.bf16.vlgmr.msra.gmra.mrb[4].mxu1 %vm567_vm2, %v565_v52 }
 0x196   : > { %1949 = vmatpush3.bf16.msra.mxu0 %v635_v57  ;;  %1955 = vmatpush3.bf16.msra.mxu1 %v685_v51 }
 0x197   : > { %1956 = vmatprep.subr.bf16.mxu1 %v2122_v8  ;;  %1958 = vmatprep.mubr.msk.bf16.mxu1 %vm2123_vm1, %v2122_v8 }
 0x198   : > { %1962 = vmatprep.subr.bf16.mxu0 %v2122_v8 }
 0x19a   : > { %1957 = vmatpush3.bf16.msra.mxu1 %v686_v58 }
 0x19b   : > { %1970 = vmatprep.subr.bf16.mxu1 %v2122_v8 }
 0x19d   : > { %1959 = vmatmul.mubr.msk.bf16.vlgmr.msra.gmra.mrb[8].mxu1 %vm386_vm0, %v2249_v26 }
 0x19e   : > { %1971 = vmatpush3.bf16.msra.mxu1 %v795_v61  ;;  %1974 = vmatprep.mubr.msk.bf16.mxu1 %vm2123_vm1, %v2122_v8 }
 0x19f   : > { %1972 = vmatprep.subr.bf16.mxu1 %v2122_v8 }
 0x1a2   : > { %1973 = vmatpush3.bf16.msra.mxu1 %v796_v1 }
 0x1a3   : > { %1984 = vmatprep.subr.bf16.mxu1 %v2122_v8 }
 0x1a5   : > { %1975 = vmatmul.mubr.msk.bf16.vlgmr.msra.gmra.mrb[12].mxu1 %vm386_vm0, %v2249_v26 }
 0x1a6   : > { %1986 = vmatprep.mubr.msk.bf16.mxu1 %vm2123_vm1, %v2122_v8 }
 0x268   : > { %v608_v2 = vpop.f32.mrb[4].mxu1 }
 0x269   : > { %v614_v4 = vmul.f32 0.35355338, %v608_v2  ;;  %v1946_v5 = vpop.f32.mrb[5].mxu1 }
 0x26a   : > { %v611_v6 = vpop.f32.mrb[6].mxu1 }
 0x26b   : > { %v1947_v7 = vpop.f32.mrb[7].mxu1  ;;  %v616_v9 = vadd.f32 %v2326_v3, %v614_v4  ;;  %v1802_v4 = vld [vmem:[%s2576_s8 + $0x8] sm:$0xff] }
 0x26c   : > { %v957_v5 = vpack.c.bf16 %v1802_v4, %v1802_v4 }
 0x26d   : > { %v617_v10 = vsel %vm567_vm2, %v616_v9, -inf }
 0x26e   : > { %618 = vmax.xlane.f32.xlu0 %v617_v10  ;;  %v962_v6 = vsel %vm633_vm3, %v957_v5, 0 }
 0x270   : > { %v729_v11 = vpop.f32.mrb[8].mxu1 }
 0x271   : > { %v1960_v12 = vpop.f32.mrb[9].mxu1  ;;  %v730_v52 = vadd.f32 %v1784_v50, %v729_v11 }
 0x272   : > { %v732_v13 = vpop.f32.mrb[10].mxu1 }
 0x273   : > { %v1961_v14 = vpop.f32.mrb[11].mxu1  ;;  %v845_v53 = vpack.c.bf16 %v730_v52, %v730_v52 }
 0x278   : > { %v839_v16 = vpop.f32.mrb[12].mxu1 }
 0x279   : > { %v840_v17 = vadd.f32 %v1798_v15, %v839_v16  ;;  %v1976_v18 = vpop.f32.mrb[13].mxu1  ;;  %v1812_v15 = vld [vmem:[%s2572_s4 + $0x40] sm:$0xff]  ;;  %v1813_v16 = vld [vmem:[%s2572_s4 + $0x48] sm:$0xff] }
 0x27a   : > { %v842_v19 = vpop.f32.mrb[14].mxu1 }
 0x27b   : > { %v907_v20 = vpack.c.bf16 %v840_v17, %v840_v17  ;;  %v1977_v21 = vpop.f32.mrb[15].mxu1  ;;  %v1110_v17 = vpack.c.bf16 %v1813_v16, %v1812_v15  ;;  %v1814_v19 = vld [vmem:[%s2572_s4 + $0x50] sm:$0xff] }
 0x27d   : > { %v912_v22 = vsel %vm633_vm3, %v907_v20, 0  ;;  %v1815_v20 = vld [vmem:[%s2572_s4 + $0x58] sm:$0xff] }
 0x27e   : > { %1985 = vmatpush3.bf16.msra.mxu1 %v912_v22  ;;  %v1111_v21 = vpack.c.bf16 %v1815_v20, %v1814_v19  ;;  %v1805_v22 = vld [vmem:[%s2570_s2 + $0x40] sm:$0xff] }
 0x27f   : > { %1996 = vmatprep.subr.bf16.mxu1 %v2122_v8 }
 0x2fb   : > { %v619_v23 = vpop.xlane.xlu0 %618 }
 0x2fc   : > { %v620_v24 = vsub.f32 %v616_v9, %v619_v23  ;;  %v678_v9 = vld [vmem:[%s2576_s8] sm:$0xff]  ;;  %v1806_v23 = vld [vmem:[%s2570_s2 + $0x48] sm:$0xff] }
 0x2fd   : > { %v679_v10 = vpack.c.bf16 %v678_v9, %v678_v9 }
 0x2fe   : > { %v621_v25 = vmul.f32 1.442695, %v620_v24 }
 0x2ff   : > { %v1008_v14 = vsel %vm633_vm3, %v679_v10, 0 }
 0x300   : > { %2098 = vpow2.f32 %v621_v25  ;;  %v1055_v25 = vpack.c.bf16 %v1806_v23, %v1805_v22  ;;  %v1828_v23 = vld [vmem:[%s2576_s8 + $0x10] sm:$0xff] }
 0x30a   : > { %v2099_v27 = vpop.eup %2098 }
 0x30b   : > { %v623_v28 = vsel %vm567_vm2, %v2099_v27, 0.0 }
 0x30c   : > { %624 = vadd.xlane.f32.xlu1 %v623_v28 }
 0x399   : > { %v625_v29 = vpop.xlane.xlu1 %624 }
 0x39a   : > { %2100 = vrcp.f32 %v625_v29  ;;  %v1807_v29 = vld [vmem:[%s2570_s2 + $0x50] sm:$0xff] }
 0x3a4   : > { %v2101_v32 = vpop.eup %2100 }
 0x3a5   : > { %v627_v33 = vmul.f32 %v2101_v32, %v2099_v27 }
 0x3a7   : > { %v628_v35 = vpack.c.bf16 %v627_v33, %v627_v33  ;;  %v1056_v33 = vpack.c.bf16 %v1808_v30, %v1807_v29  ;;  %v1831_v29 = vld [vmem:[%s2570_s2 + $0x68] sm:$0xff] }
 0x3a9   : > { %1951 = vmatmul.mubr.msk.bf16.vlgmr.msra.gmra.mrb[8].mxu0 %vm567_vm2, %v628_v35  ;;  %v1820_v35 = vld [vmem:[%s2574_s6 + $0x48] sm:$0xff] }
 0x3aa   : > { %1963 = vmatpush3.bf16.msra.mxu0 %v740_v34  ;;  %1966 = vmatprep.mubr.msk.bf16.mxu0 %vm2123_vm1, %v2122_v8  ;;  %v1819_v34 = vld [vmem:[%s2574_s6 + $0x40] sm:$0xff] }
 0x3ab   : > { %1964 = vmatprep.subr.bf16.mxu0 %v2122_v8  ;;  %v1165_v37 = vpack.c.bf16 %v1820_v35, %v1819_v34  ;;  %v1832_v34 = vld [vmem:[%s2570_s2 + $0x70] sm:$0xff]  ;;  %v1833_v35 = vld [vmem:[%s2570_s2 + $0x78] sm:$0xff] }
 0x3ae   : > { %1965 = vmatpush3.bf16.msra.mxu0 %v741_v38 }
 0x3af   : > { %1978 = vmatprep.subr.bf16.mxu0 %v2122_v8 }
 0x3b1   : > { %1967 = vmatmul.mubr.msk.bf16.vlgmr.msra.gmra.mrb[12].mxu0 %vm386_vm0, %v2249_v26 }
 0x3b2   : > { %1980 = vmatprep.mubr.msk.bf16.mxu0 %vm2123_vm1, %v2122_v8 }
 0x47c   : > { %v671_v39 = vpop.f32.mrb[8].mxu0 }
 0x47d   : > { %v1952_v40 = vpop.f32.mrb[9].mxu0  ;;  %v677_v18 = vpack.c.bf16 %v671_v39, %v671_v39  ;;  %v1821_v39 = vld [vmem:[%s2574_s6 + $0x50] sm:$0xff] }
 0x47e   : > { %v674_v41 = vpop.f32.mrb[10].mxu0  ;;  %v1822_v40 = vld [vmem:[%s2574_s6 + $0x58] sm:$0xff] }
 0x47f   : > { %v1953_v42 = vpop.f32.mrb[11].mxu0 }
 0x484   : > { %v784_v44 = vpop.f32.mrb[12].mxu0 }
 0x485   : > { %v785_v45 = vadd.f32 %v1791_v43, %v784_v44  ;;  %v1968_v46 = vpop.f32.mrb[13].mxu0  ;;  %v1166_v43 = vpack.c.bf16 %v1822_v40, %v1821_v39  ;;  %v1817_v44 = vld [vmem:[%s2573_s5 + $0x2] ss:$0 sm:$0xff]  ;;  %v1846_v40 = vld [vmem:[%s2574_s6 + $0x70] sm:$0xff] }
 0x486   : > { %v787_v47 = vpop.f32.mrb[14].mxu0 }
 0x487   : > { %v846_v48 = vpack.c.bf16 %v785_v45, %v785_v45  ;;  %v1969_v49 = vpop.f32.mrb[15].mxu0 }
 0x489   : > { %v851_v51 = vsel %vm567_vm2, %v846_v48, 0 }
 0x48a   : > { %1979 = vmatpush3.bf16.xpose.msra.mxu0 %v851_v51 }
 0x48b   : > { %1990 = vmatprep.subr.bf16.mxu0 %v2122_v8 }
 0x491   : > { %1981 = vmatmul.mubr.msk.bf16.vlgmr.msra.gmra.mrb[16].mxu0 %vm567_vm2, %v845_v53 }
 0x492   : > { %1992 = vmatprep.mubr.msk.bf16.mxu0 %vm2123_vm1, %v2122_v8  ;;  %1991 = vmatpush3.bf16.msra.mxu0 %v962_v6 }
 0x493   : > { %2002 = vmatprep.subr.bf16.mxu0 %v2122_v8 }
 0x564   : > { %v887_v54 = vpop.f32.mrb[16].mxu0 }
 0x565   : > { %v893_v55 = vmul.f32 0.35355338, %v887_v54  ;;  %v1982_v56 = vpop.f32.mrb[17].mxu0 }
 0x566   : > { %v890_v57 = vpop.f32.mrb[18].mxu0 }
 0x567   : > { %v1983_v58 = vpop.f32.mrb[19].mxu0  ;;  %v894_v59 = vadd.f32 %v893_v55, %v2326_v3  ;;  %v1810_v57 = vld [vmem:[%s2571_s3 + $0x2] ss:$0 sm:$0xff] }
 0x569   : > { %v895_v60 = vsel %vm567_vm2, %v894_v59, -inf }
 0x56a   : > { %896 = vmax.xlane.f32.xlu1 %v895_v60 }
 0x5f7   : > { %v897_v61 = vpop.xlane.xlu1 %896 }
 0x5f8   : > { %v898_v62 = vsub.f32 %v894_v59, %v897_v61 }
 0x5fa   : > { %v899_v63 = vmul.f32 1.442695, %v898_v62 }
 0x5fc   : > { %2102 = vpow2.f32 %v899_v63 }
 0x606   : > { %v2103_v1 = vpop.eup %2102 }
 0x607   : > { %v901_v2 = vsel %vm567_vm2, %v2103_v1, 0.0 }
 0x608   : > { %902 = vadd.xlane.f32.xlu0 %v901_v2 }
 0x695   : > { %v903_v7 = vpop.xlane.xlu0 %902 }
 0x696   : > { %2104 = vrcp.f32 %v903_v7 }
 0x6a0   : > { %v2105_v11 = vpop.eup %2104 }
 0x6a1   : > { %v905_v12 = vmul.f32 %v2105_v11, %v2103_v1  ;;  %v1824_v1 = vld [vmem:[%s2575_s7 + $0x2] ss:$0 sm:$0xff] }
 0x6a3   : > { %v906_v13 = vpack.c.bf16 %v905_v12, %v905_v12 }
 0x6a5   : > { %1987 = vmatmul.mubr.msk.bf16.vlgmr.msra.gmra.mrb[16].mxu1 %vm567_vm2, %v906_v13 }
 0x6a6   : > { %1997 = vmatpush3.bf16.msra.mxu1 %v1008_v14  ;;  %1998 = vmatprep.mubr.msk.bf16.mxu1 %vm2123_vm1, %v2122_v8 }
 0x6a7   : > { %2010 = vmatprep.subr.bf16.mxu1 %v2122_v8 }
 0x6ad   : > { %1999 = vmatmul.mubr.msk.bf16.vlgmr.msra.gmra.mrb[20].mxu1 %vm567_vm2, %v677_v18 }
 0x6ae   : > { %2011 = vmatpush3.bf16.msra.mxu1 %v1110_v17  ;;  %2014 = vmatprep.mubr.msk.bf16.mxu1 %vm2123_vm1, %v2122_v8 }
 0x6af   : > { %2012 = vmatprep.subr.bf16.mxu1 %v2122_v8 }
 0x6b2   : > { %2013 = vmatpush3.bf16.msra.mxu1 %v1111_v21 }
 0x6b3   : > { %2026 = vmatprep.subr.bf16.mxu1 %v2122_v8 }
 0x6b5   : > { %2015 = vmatmul.mubr.msk.bf16.vlgmr.msra.gmra.mrb[24].mxu1 %vm386_vm0, %v2249_v26 }
 0x6b6   : > { %2028 = vmatprep.mubr.msk.bf16.mxu1 %vm2123_vm1, %v2122_v8 }
 0x778   : > { %v948_v24 = vpop.f32.mrb[16].mxu1 }
 0x779   : > { %v954_v27 = vpack.c.bf16 %v948_v24, %v948_v24  ;;  %v1988_v28 = vpop.f32.mrb[17].mxu1  ;;  %v1327_v24 = vpack.c.bf16 %v1828_v23, %v1828_v23 }
 0x77a   : > { %v951_v31 = vpop.f32.mrb[18].mxu1  ;;  %v1830_v28 = vld [vmem:[%s2570_s2 + $0x60] sm:$0xff] }
 0x77b   : > { %v1989_v32 = vpop.f32.mrb[19].mxu1  ;;  %1993 = vmatmul.mubr.msk.bf16.vlgmr.msra.gmra.mrb[20].mxu0 %vm567_vm2, %v954_v27 }
 0x77c   : > { %2003 = vmatpush3.bf16.msra.mxu0 %v1055_v25  ;;  %2006 = vmatprep.mubr.msk.bf16.mxu0 %vm2123_vm1, %v2122_v8  ;;  %v1332_v25 = vsel %vm633_vm3, %v1327_v24, 0  ;;  %v1380_v32 = vpack.c.bf16 %v1831_v29, %v1830_v28 }
 0x77d   : > { %2004 = vmatprep.subr.bf16.mxu0 %v2122_v8 }
 0x780   : > { %v1044_v36 = vpop.f32.mrb[20].mxu1  ;;  %2005 = vmatpush3.bf16.msra.mxu0 %v1056_v33 }
 0x781   : > { %v2000_v38 = vpop.f32.mrb[21].mxu1  ;;  %2018 = vmatprep.subr.bf16.mxu0 %v2122_v8 }
 0x782   : > { %v1047_v41 = vpop.f32.mrb[22].mxu1  ;;  %v1845_v38 = vld [vmem:[%s2574_s6 + $0x68] sm:$0xff] }
 0x783   : > { %v2001_v42 = vpop.f32.mrb[23].mxu1  ;;  %2007 = vmatmul.mubr.msk.bf16.vlgmr.msra.gmra.mrb[24].mxu0 %vm386_vm0, %v2249_v26  ;;  %v1847_v41 = vld [vmem:[%s2574_s6 + $0x78] sm:$0xff] }
 0x784   : > { %2019 = vmatpush3.bf16.msra.mxu0 %v1165_v37  ;;  %2022 = vmatprep.mubr.msk.bf16.mxu0 %vm2123_vm1, %v2122_v8  ;;  %v1844_v37 = vld [vmem:[%s2574_s6 + $0x60] sm:$0xff]  ;;  %v1491_v42 = vpack.c.bf16 %v1847_v41, %v1846_v40 }
 0x785   : > { %2020 = vmatprep.subr.bf16.mxu0 %v2122_v8  ;;  %v1490_v39 = vpack.c.bf16 %v1845_v38, %v1844_v37 }
 0x788   : > { %v1154_v45 = vpop.f32.mrb[24].mxu1  ;;  %2021 = vmatpush3.bf16.msra.mxu0 %v1166_v43  ;;  %v1837_v43 = vld [vmem:[%s2572_s4 + $0x60] sm:$0xff] }
 0x789   : > { %v1155_v46 = vadd.f32 %v1817_v44, %v1154_v45  ;;  %v2016_v47 = vpop.f32.mrb[25].mxu1  ;;  %2032 = vmatprep.subr.bf16.mxu0 %v2122_v8  ;;  %v1838_v44 = vld [vmem:[%s2572_s4 + $0x68] sm:$0xff] }
 0x78a   : > { %v1157_v48 = vpop.f32.mrb[26].mxu1 }
 0x78b   : > { %v1216_v49 = vpack.c.bf16 %v1155_v46, %v1155_v46  ;;  %v2017_v50 = vpop.f32.mrb[27].mxu1  ;;  %2023 = vmatmul.mubr.msk.bf16.vlgmr.msra.gmra.mrb[28].mxu0 %vm386_vm0, %v2249_v26  ;;  %v1435_v46 = vpack.c.bf16 %v1838_v44, %v1837_v43 }
 0x78c   : > { %2034 = vmatprep.mubr.msk.bf16.mxu0 %vm2123_vm1, %v2122_v8  ;;  %v1840_v50 = vld [vmem:[%s2572_s4 + $0x78] sm:$0xff] }
 0x78d   : > { %v1221_v51 = vsel %vm567_vm2, %v1216_v49, 0  ;;  %v1839_v49 = vld [vmem:[%s2572_s4 + $0x70] sm:$0xff] }
 0x78e   : > { %2027 = vmatpush3.bf16.xpose.msra.mxu1 %v1221_v51 }
 0x78f   : > { %2038 = vmatprep.subr.bf16.mxu1 %v2122_v8 }
 0x84e   : > { %v998_v52 = vpop.f32.mrb[20].mxu0 }
 0x84f   : > { %v2449_v53 = vadd.f32 %v1044_v36, %v998_v52  ;;  %v1994_v54 = vpop.f32.mrb[21].mxu0  ;;  %v1381_v36 = vpack.c.bf16 %v1833_v35, %v1832_v34 }
 0x850   : > { %v1001_v55 = vpop.f32.mrb[22].mxu0  ;;  %v1436_v54 = vpack.c.bf16 %v1840_v50, %v1839_v49 }
 0x851   : > { %v1995_v56 = vpop.f32.mrb[23].mxu0 }
 0x856   : > { %v1099_v58 = vpop.f32.mrb[24].mxu0 }
 0x857   : > { %v1100_v59 = vadd.f32 %v1810_v57, %v1099_v58  ;;  %v2008_v60 = vpop.f32.mrb[25].mxu0 }
 0x858   : > { %v1102_v61 = vpop.f32.mrb[26].mxu0 }
 0x859   : > { %v1215_v62 = vpack.c.bf16 %v1100_v59, %v1100_v59  ;;  %v2009_v63 = vpop.f32.mrb[27].mxu0  ;;  %v1849_v59 = vld [vmem:[%s2575_s7 + $0x3] ss:$0 sm:$0xff] }
 0x85b   : > { %2029 = vmatmul.mubr.msk.bf16.vlgmr.msra.gmra.mrb[28].mxu1 %vm567_vm2, %v1215_v62 }
 0x85c   : > { %2040 = vmatprep.mubr.msk.bf16.mxu1 %vm2123_vm1, %v2122_v8  ;;  %2039 = vmatpush3.bf16.msra.mxu1 %v1332_v25 }
 0x85d   : > { %2052 = vmatprep.subr.bf16.mxu1 %v2122_v8 }
 0x85e   : > { %v1209_v2 = vpop.f32.mrb[28].mxu0 }
 0x85f   : > { %v1210_v4 = vadd.f32 %v1824_v1, %v1209_v2  ;;  %v2024_v5 = vpop.f32.mrb[29].mxu0 }
 0x860   : > { %v1212_v6 = vpop.f32.mrb[30].mxu0 }
 0x861   : > { %v1277_v7 = vpack.c.bf16 %v1210_v4, %v1210_v4  ;;  %v2025_v9 = vpop.f32.mrb[31].mxu0 }
 0x863   : > { %v1282_v10 = vsel %vm633_vm3, %v1277_v7, 0 }
 0x864   : > { %2033 = vmatpush3.bf16.msra.mxu0 %v1282_v10  ;;  %v1842_v10 = vld [vmem:[%s2573_s5 + $0x3] ss:$0 sm:$0xff] }
 0x865   : > { %2044 = vmatprep.subr.bf16.mxu0 %v2122_v8 }
 0x92e   : > { %v1257_v11 = vpop.f32.mrb[28].mxu1 }
 0x92f   : > { %v1263_v12 = vmul.f32 0.35355338, %v1257_v11  ;;  %v2030_v13 = vpop.f32.mrb[29].mxu1 }
 0x930   : > { %v1260_v14 = vpop.f32.mrb[30].mxu1 }
 0x931   : > { %v2031_v15 = vpop.f32.mrb[31].mxu1  ;;  %v1264_v16 = vadd.f32 %v1263_v12, %v2326_v3 }
 0x933   : > { %v1265_v17 = vsel %vm567_vm2, %v1264_v16, -inf }
 0x934   : > { %1266 = vmax.xlane.f32.xlu1 %v1265_v17  ;;  %v1835_v17 = vld [vmem:[%s2571_s3 + $0x3] ss:$0 sm:$0xff] }
 0x9c1   : > { %v1267_v18 = vpop.xlane.xlu1 %1266 }
 0x9c2   : > { %v1268_v19 = vsub.f32 %v1264_v16, %v1267_v18 }
 0x9c4   : > { %v1269_v20 = vmul.f32 1.442695, %v1268_v19 }
 0x9c6   : > { %2106 = vpow2.f32 %v1269_v20 }
 0x9d0   : > { %v2107_v21 = vpop.eup %2106 }
 0x9d1   : > { %v1271_v22 = vsel %vm567_vm2, %v2107_v21, 0.0 }
 0x9d2   : > { %1272 = vadd.xlane.f32.xlu0 %v1271_v22 }
 0xa5f   : > { %v1273_v27 = vpop.xlane.xlu0 %1272 }
 0xa60   : > { %2108 = vrcp.f32 %v1273_v27 }
 0xa6a   : > { %v2109_v30 = vpop.eup %2108 }
 0xa6b   : > { %v1275_v31 = vmul.f32 %v2109_v30, %v2107_v21 }
 0xa6d   : > { %v1276_v33 = vpack.c.bf16 %v1275_v31, %v1275_v31 }
 0xa6f   : > { %2035 = vmatmul.mubr.msk.bf16.vlgmr.msra.gmra.mrb[32].mxu0 %vm567_vm2, %v1276_v33 }
 0xa70   : > { %2045 = vmatpush3.bf16.msra.mxu0 %v1380_v32  ;;  %2048 = vmatprep.mubr.msk.bf16.mxu0 %vm2123_vm1, %v2122_v8 }
 0xa71   : > { %2046 = vmatprep.subr.bf16.mxu0 %v2122_v8 }
 0xa74   : > { %2047 = vmatpush3.bf16.msra.mxu0 %v1381_v36 }
 0xa75   : > { %2060 = vmatprep.subr.bf16.mxu0 %v2122_v8 }
 0xa77   : > { %2049 = vmatmul.mubr.msk.bf16.vlgmr.msra.gmra.mrb[36].mxu0 %vm386_vm0, %v2249_v26 }
 0xa78   : > { %2061 = vmatpush3.bf16.msra.mxu0 %v1490_v39  ;;  %2064 = vmatprep.mubr.msk.bf16.mxu0 %vm2123_vm1, %v2122_v8 }
 0xa79   : > { %2062 = vmatprep.subr.bf16.mxu0 %v2122_v8 }
 0xa7c   : > { %2063 = vmatpush3.bf16.msra.mxu0 %v1491_v42 }
 0xa7d   : > { %2074 = vmatprep.subr.bf16.mxu0 %v2122_v8 }
 0xa7f   : > { %2065 = vmatmul.mubr.msk.bf16.vlgmr.msra.gmra.mrb[40].mxu0 %vm386_vm0, %v2249_v26 }
 0xa80   : > { %2076 = vmatprep.mubr.msk.bf16.mxu0 %vm2123_vm1, %v2122_v8 }
 0xb42   : > { %v1318_v45 = vpop.f32.mrb[32].mxu0 }
 0xb43   : > { %v1324_v47 = vpack.c.bf16 %v1318_v45, %v1318_v45  ;;  %v2036_v48 = vpop.f32.mrb[33].mxu0 }
 0xb44   : > { %v1321_v51 = vpop.f32.mrb[34].mxu0 }
 0xb45   : > { %v2037_v52 = vpop.f32.mrb[35].mxu0  ;;  %2041 = vmatmul.mubr.msk.bf16.vlgmr.msra.gmra.mrb[32].mxu1 %vm567_vm2, %v1324_v47 }
 0xb46   : > { %2053 = vmatpush3.bf16.msra.mxu1 %v1435_v46  ;;  %2056 = vmatprep.mubr.msk.bf16.mxu1 %vm2123_vm1, %v2122_v8  ;;  %v1855_v46 = vld [vmem:[%s2577_s9] ss:$0 sm:$0xff] }
 0xb47   : > { %2054 = vmatprep.subr.bf16.mxu1 %v2122_v8 }
 0xb4a   : > { %v1424_v55 = vpop.f32.mrb[36].mxu0  ;;  %2055 = vmatpush3.bf16.msra.mxu1 %v1436_v54 }
 0xb4b   : > { %v2050_v56 = vpop.f32.mrb[37].mxu0  ;;  %2068 = vmatprep.subr.bf16.mxu1 %v2122_v8 }
 0xb4c   : > { %v1427_v57 = vpop.f32.mrb[38].mxu0 }
 0xb4d   : > { %v2051_v58 = vpop.f32.mrb[39].mxu0  ;;  %2057 = vmatmul.mubr.msk.bf16.vlgmr.msra.gmra.mrb[36].mxu1 %vm386_vm0, %v2249_v26 }
 0xb4e   : > { %2070 = vmatprep.mubr.msk.bf16.mxu1 %vm2123_vm1, %v2122_v8 }
 0xb52   : > { %v1534_v60 = vpop.f32.mrb[40].mxu0 }
 0xb53   : > { %v1535_v61 = vadd.f32 %v1849_v59, %v1534_v60  ;;  %v2066_v62 = vpop.f32.mrb[41].mxu0 }
 0xb54   : > { %v1537_v63 = vpop.f32.mrb[42].mxu0 }
 0xb55   : > { %v1602_v1 = vpack.c.bf16 %v1535_v61, %v1535_v61  ;;  %v2067_v2 = vpop.f32.mrb[43].mxu0 }
 0xb57   : > { %v1607_v4 = vsel %vm633_vm3, %v1602_v1, 0 }
 0xb58   : > { %2075 = vmatpush3.bf16.msra.mxu0 %v1607_v4 }
 0xc18   : > { %v1368_v5 = vpop.f32.mrb[32].mxu1 }
 0xc19   : > { %v1374_v6 = vadd.f32 %v1368_v5, %v2449_v53  ;;  %v2042_v26 = vpop.f32.mrb[33].mxu1  ;;  %v1425_v53 = vadd.f32 %v1835_v17, %v1424_v55 }
 0xc1a   : > { %v1371_v7 = vpop.f32.mrb[34].mxu1 }
 0xc1b   : > { %v2043_v9 = vpop.f32.mrb[35].mxu1  ;;  %v1540_v19 = vpack.c.bf16 %v1425_v53, %v1425_v53 }
 0xc20   : > { %v1479_v11 = vpop.f32.mrb[36].mxu1 }
 0xc21   : > { %v1480_v12 = vadd.f32 %v1842_v10, %v1479_v11  ;;  %v2058_v13 = vpop.f32.mrb[37].mxu1 }
 0xc22   : > { %v1482_v14 = vpop.f32.mrb[38].mxu1 }
 0xc23   : > { %v1541_v15 = vpack.c.bf16 %v1480_v12, %v1480_v12  ;;  %v2059_v16 = vpop.f32.mrb[39].mxu1 }
 0xc25   : > { %v1546_v18 = vsel %vm567_vm2, %v1541_v15, 0 }
 0xc26   : > { %2069 = vmatpush3.bf16.xpose.msra.mxu1 %v1546_v18 }
 0xc27   : > { %2080 = vmatprep.subr.bf16.mxu1 %v2122_v8 }
 0xc2d   : > { %2071 = vmatmul.mubr.msk.bf16.vlgmr.msra.gmra.mrb[40].mxu1 %vm567_vm2, %v1540_v19 }
 0xc2e   : > { %2082 = vmatprep.mubr.msk.bf16.mxu1 %vm2123_vm1, %v2122_v8  ;;  %v1853_v8 = vld [vmem:[%s2576_s8 + $0x18] sm:$0xff] }
 0xc2f   : > { %v1652_v33 = vpack.c.bf16 %v1853_v8, %v1853_v8 }
 0xc31   : > { %v1657_v34 = vsel %vm633_vm3, %v1652_v33, 0 }
 0xc32   : > { %2081 = vmatpush3.bf16.msra.mxu1 %v1657_v34 }
 0xd00   : > { %v1582_v20 = vpop.f32.mrb[40].mxu1 }
 0xd01   : > { %v1588_v21 = vmul.f32 0.35355338, %v1582_v20  ;;  %v2072_v22 = vpop.f32.mrb[41].mxu1 }
 0xd02   : > { %v1585_v23 = vpop.f32.mrb[42].mxu1 }
 0xd03   : > { %v2073_v24 = vpop.f32.mrb[43].mxu1  ;;  %v1589_v25 = vadd.f32 %v1588_v21, %v2326_v3 }
 0xd05   : > { %v1590_v27 = vsel %vm567_vm2, %v1589_v25, -inf }
 0xd06   : > { %1591 = vmax.xlane.f32.xlu1 %v1590_v27 }
 0xd93   : > { %v1592_v28 = vpop.xlane.xlu1 %1591 }
 0xd94   : > { %v1593_v29 = vsub.f32 %v1589_v25, %v1592_v28 }
 0xd96   : > { %v1594_v30 = vmul.f32 1.442695, %v1593_v29 }
 0xd98   : > { %2110 = vpow2.f32 %v1594_v30 }
 0xda2   : > { %v2111_v31 = vpop.eup %2110 }
 0xda3   : > { %v1596_v32 = vsel %vm567_vm2, %v2111_v31, 0.0 }
 0xda4   : > { %1597 = vadd.xlane.f32.xlu0 %v1596_v32 }
 0xe31   : > { %v1598_v3 = vpop.xlane.xlu0 %1597 }
 0xe32   : > { %2112 = vrcp.f32 %v1598_v3 }
 0xe3c   : > { %v2113_v35 = vpop.eup %2112 }
 0xe3d   : > { %v1600_v36 = vmul.f32 %v2113_v35, %v2111_v31 }
 0xe3f   : > { %v1601_v37 = vpack.c.bf16 %v1600_v36, %v1600_v36 }
 0xe41   : > { %2077 = vmatmul.mubr.msk.bf16.vlgmr.msra.gmra.mrb[44].mxu0 %vm567_vm2, %v1601_v37 }
 0xf14   : > { %v1643_v38 = vpop.f32.mrb[44].mxu0 }
 0xf15   : > { %v1649_v39 = vpack.c.bf16 %v1643_v38, %v1643_v38  ;;  %v2078_v40 = vpop.f32.mrb[45].mxu0 }
 0xf16   : > { %v1646_v41 = vpop.f32.mrb[46].mxu0 }
 0xf17   : > { %v2079_v42 = vpop.f32.mrb[47].mxu0  ;;  %2083 = vmatmul.mubr.msk.bf16.vlgmr.msra.gmra.mrb[44].mxu1 %vm567_vm2, %v1649_v39 }
 0xfea   : > { %v1693_v43 = vpop.f32.mrb[44].mxu1 }
 0xfeb   : > { %v1699_v44 = vadd.f32 %v1693_v43, %v1374_v6  ;;  %v2084_v45 = vpop.f32.mrb[45].mxu1 }
 0xfec   : > { %v1696_v47 = vpop.f32.mrb[46].mxu1 }
 0xfed   : > { %v1700_v48 = vadd.f32 %v1699_v44, %v2200_v0  ;;  %v2085_v49 = vpop.f32.mrb[47].mxu1 }
 0xfef   : > { %v1708_v50 = vadd.f32 %v1855_v46, %v1700_v48 }
 0xff1   : > { %1709 = vst.msk [vmem:[%s381_s12] sm:$0xff] %vm386_vm0, %v1708_v50 }
 0xff2 PF: > { %s21_s17 = sadd.s32 1, %s2120_s17  }
 0xff3   : > { %p18_p4 = scmp.ge.s32.totalorder %s21_s17, 4  }
 0xff5   :  { %20 = sbr.rel (!%p18_p4) target bundleno = 1 (0x1), region = 115 }

// kernel: decoder_block.4
= control target key start
LH: loop header
LB: loop body
LE: loop exit
PB: predicated region body
PF: predicated region fallthrough
CT: control target
= control target key end

     0   :  { %s2230_s17 = smov 0   ;;  %s2618_s0 = inlined_call_operand.vmem [shape: f32[2,8,32], index: 0, kind: input, shape index: {}]   ;;  %s2619_s1 = inlined_call_operand.vmem [shape: f32[2,12,32], index: 1, kind: input, shape index: {}]   ;;  %s2620_s2 = inlined_call_operand.vmem [shape: f32[1,32], index: 2, kind: input, shape index: {}]   ;;  %s2621_s3 = inlined_call_operand.vmem [shape: f32[4,32,8], index: 3, kind: input, shape index: {}]   ;;  %s2622_s4 = inlined_call_operand.vmem [shape: f32[4,1,8], index: 4, kind: input, shape index: {}]   ;;  %s2623_s5 = inlined_call_operand.vmem [shape: f32[4,32,8], index: 5, kind: input, shape index: {}]   ;;  %s2624_s6 = inlined_call_operand.vmem [shape: f32[4,1,8], index: 6, kind: input, shape index: {}]   ;;  %s2625_s7 = inlined_call_operand.vmem [shape: f32[4,32,8], index: 7, kind: input, shape index: {}]   ;;  %s2626_s8 = inlined_call_operand.vmem [shape: f32[4,1,8], index: 8, kind: input, shape index: {}]   ;;  %s2627_s9 = inlined_call_operand.vmem [shape: f32[4,8,32], index: 9, kind: input, shape index: {}]   ;;  %s2628_s10 = inlined_call_operand.vmem [shape: f32[1,32], index: 10, kind: input, shape index: {}]   ;;  %s2629_s11 = inlined_call_operand.vmem [shape: f32[2,8,32], index: 11, kind: output, shape index: {}]  }
   0x1 LB: > { %s1806_s18 = sadd.s32 4294967295, %s2166_s17   ;;  %p1810_p0 = scmp.ge.s32.totalorder %s2166_s17, 1  ;;  %s2166_s17 = sphi %s2230_s17, %s21_s17  }
   0x2   : > { %p346_p1 = scmp.lt.s32.totalorder %s2166_s17, 3 }
   0x4   : > { %p347_p2 = pnand %p1810_p0, %p346_p1 }
   0x5   : > { %p389_p3 = scmp.lt.s32.totalorder (!%p347_p2), %s1806_s18, 1  ;;  %v482_v0 = vld [vmem:[%s2623_s5] sm:$0xff] (!%p347_p2)  ;;  %v2168_v1 = vmov (!%p347_p2), 0.0   ;;  %v483_v2 = vld [vmem:[%s2623_s5 + $0x8] sm:$0xff] (!%p347_p2)  ;;  %vm406_vm0 = vcmask (!%p347_p2), 261120   ;;  %v484_v9 = vld [vmem:[%s2623_s5 + $0x10] sm:$0xff] (!%p347_p2) }
   0x6   : > { %350 = sbr.rel (%p347_p2) target bundleno = 4070 (0xfe6), region = 64  ;;  %1972 = vmatprep.subr.bf16.mxu1 (!%p347_p2), %v2168_v1  ;;  %1964 = vmatprep.subr.bf16.mxu0 (!%p347_p2), %v2168_v1  ;;  %v486_v3 = vpack.c.bf16 (!%p347_p2), %v483_v2, %v482_v0  ;;  %v485_v10 = vld [vmem:[%s2623_s5 + $0x18] sm:$0xff] (!%p347_p2)  ;;  %v426_v13 = vld [vmem:[%s2621_s3] sm:$0xff] (!%p347_p2)  ;;  %v427_v14 = vld [vmem:[%s2621_s3 + $0x8] sm:$0xff] (!%p347_p2)  ;;  %vm2169_vm1 = vmmov (!%p347_p2), 0   ;;  %vm595_vm2 = vcmask (!%p347_p2), 64512  }
   0x7   : > { %v487_v11 = vpack.c.bf16 (!%p347_p2), %v485_v10, %v484_v9  ;;  %v428_v15 = vld [vmem:[%s2621_s3 + $0x10] sm:$0xff] (!%p347_p2)  ;;  %1976 = vmatprep.mubr.msk.bf16.mxu1 (!%p347_p2), %vm2169_vm1, %v2168_v1  ;;  %v430_v16 = vpack.c.bf16 (!%p347_p2), %v427_v14, %v426_v13  ;;  %v429_v17 = vld [vmem:[%s2621_s3 + $0x18] sm:$0xff] (!%p347_p2)  ;;  %1968 = vmatprep.mubr.msk.bf16.mxu0 (!%p347_p2), %vm2169_vm1, %v2168_v1  ;;  %v1815_v22 = vld [vmem:[%s2620_s2] ss:$0 sm:$0xff] (!%p347_p2)  ;;  %vm643_vm3 = vcmask (!%p347_p2), 97280   ;;  %vm660_vm4 = vcmask (!%p347_p2), 1045504  }
   0x8   : > { %1973 = vmatpush3.bf16.msra.mxu1 (!%p347_p2), %v486_v3  ;;  %v431_v18 = vpack.c.bf16 (!%p347_p2), %v429_v17, %v428_v15  ;;  %v1818_v27 = vld [vmem:[%s2624_s6] ss:$0 sm:$0xff] (!%p347_p2)  ;;  %v1825_v38 = vld [vmem:[%s2621_s3 + $0x28] sm:$0xff] (!%p347_p2)  ;;  %v1826_v46 = vld [vmem:[%s2621_s3 + $0x30] sm:$0xff] (!%p347_p2)  ;;  %vm989_vm5 = vcmask (!%p347_p2), 1043456  }
   0x9   : > { %1974 = vmatprep.subr.bf16.mxu1 (!%p347_p2), %v2168_v1  ;;  %1965 = vmatpush3.bf16.msra.mxu0 (!%p347_p2), %v430_v16  ;;  %v1816_v36 = vld [vmem:[%s2622_s4] ss:$0 sm:$0xff] (!%p347_p2)  ;;  %v1827_v47 = vld [vmem:[%s2621_s3 + $0x38] sm:$0xff] (!%p347_p2)  ;;  %v540_v50 = vld [vmem:[%s2625_s7 + $0x8] sm:$0xff] (!%p347_p2) }
   0xa   : > { %1966 = vmatprep.subr.bf16.mxu0 (!%p347_p2), %v2168_v1  ;;  %v1824_v37 = vld [vmem:[%s2621_s3 + $0x20] sm:$0xff] (!%p347_p2)  ;;  %v713_v48 = vpack.c.bf16 (!%p347_p2), %v1827_v47, %v1826_v46  ;;  %v541_v51 = vld [vmem:[%s2625_s7 + $0x10] sm:$0xff] (!%p347_p2)  ;;  %v542_v53 = vld [vmem:[%s2625_s7 + $0x18] sm:$0xff] (!%p347_p2) }
   0xb   : > { %v712_v43 = vpack.c.bf16 (!%p347_p2), %v1825_v38, %v1824_v37  ;;  %v539_v49 = vld [vmem:[%s2625_s7] sm:$0xff] (!%p347_p2)  ;;  %v544_v54 = vpack.c.bf16 (!%p347_p2), %v542_v53, %v541_v51  ;;  %v1839_v46 = vld [vmem:[%s2625_s7 + $0x28] sm:$0xff] (!%p347_p2)  ;;  %v1840_v47 = vld [vmem:[%s2625_s7 + $0x30] sm:$0xff] (!%p347_p2) }
   0xc   : > { %1975 = vmatpush3.bf16.msra.mxu1 (!%p347_p2), %v487_v11  ;;  %v543_v52 = vpack.c.bf16 (!%p347_p2), %v540_v50, %v539_v49  ;;  %v1820_v10 = vld [vmem:[%s2626_s8] ss:$0 sm:$0xff] (!%p347_p2)  ;;  %v1841_v49 = vld [vmem:[%s2625_s7 + $0x38] sm:$0xff] (!%p347_p2) }
   0xd   : > { %s2631_s18 = smov (!%p389_p3, %s1806_s18), 1  ;;  %1988 = vmatprep.subr.bf16.mxu1 %v2168_v1  ;;  %1967 = vmatpush3.bf16.msra.mxu0 %v431_v18  ;;  %v824_v50 = vpack.c.bf16 %v1841_v49, %v1840_v47 }
   0xe   : > { %s1811_s23 = sshll.u32 %s2631_s18, 3  ;;  %s1903_s27 = sshll.u32 %s2631_s18, 4  ;;  %1980 = vmatprep.subr.bf16.mxu0 %v2168_v1 }
   0xf   : > { %s392_s26 = scalar_lea.vmem %s2618_s0, %s1811_s23  ;;  %s397_s30 = scalar_lea.vmem %s2619_s1, %s1903_s27 }
  0x10   : > { %v2255_v4 = vld [vmem:[%s392_s26] sm:$0xff]  ;;  %v423_v8 = vld [vmem:[%s397_s30 + $0x8] sm:$0xf]  ;;  %s401_s14 = scalar_lea.vmem %s2629_s11, %s1811_s23 }
  0x11   : > { %v405_v5 = vmul.f32 %v2255_v4, %v2255_v4  ;;  %v422_v7 = vld [vmem:[%s397_s30] sm:$0xff]  ;;  %v418_v23 = vmul.f32 %v1815_v22, %v2255_v4 }
  0x12   : > { %v2270_v12 = vpack.c.bf16 %v423_v8, %v422_v7 }
  0x13   : > { %v407_v6 = vsel %vm406_vm0, %v405_v5, 0.0 }
  0x14   : > { %408 = vadd.xlane.f32.xlu0 %v407_v6  ;;  %1977 = vmatmul.mubr.msk.bf16.vlgmr.msra.gmra.mrb[0].mxu1 %vm406_vm0, %v2270_v12 }
  0x15   : > { %1990 = vmatprep.mubr.msk.bf16.mxu1 %vm2169_vm1, %v2168_v1 }
  0xa1   : > { %v409_v19 = vpop.xlane.xlu0 %408 }
  0xa2   : > { %v411_v20 = vmul.f32 0.03125, %v409_v19  ;;  %v1831_v19 = vld [vmem:[%s2623_s5 + $0x20] sm:$0xff] }
  0xa4   : > { %v419_v21 = vadd.f32 1e-05, %v411_v20  ;;  %v1832_v20 = vld [vmem:[%s2623_s5 + $0x28] sm:$0xff] }
  0xa6   : > { %2142 = vrsqrt.f32 %v419_v21 }
  0xb0   : > { %v2143_v24 = vpop.eup %2142 }
  0xb1   : > { %v421_v25 = vmul.f32 %v2143_v24, %v418_v23  ;;  %v767_v23 = vpack.c.bf16 %v1832_v20, %v1831_v19  ;;  %v1857_v20 = vld [vmem:[%s2623_s5 + $0x40] sm:$0xff] }
  0xb3   : > { %v2299_v26 = vpack.c.bf16 %v421_v25, %v421_v25  ;;  %v1833_v25 = vld [vmem:[%s2623_s5 + $0x30] sm:$0xff] }
  0xb5   : > { %1969 = vmatmul.mubr.msk.bf16.vlgmr.msra.gmra.mrb[0].mxu0 %vm406_vm0, %v2299_v26 }
  0xb6   : > { %1984 = vmatprep.mubr.msk.bf16.mxu0 %vm2169_vm1, %v2168_v1  ;;  %1981 = vmatpush3.bf16.msra.mxu0 %v543_v52 }
  0xb7   : > { %1982 = vmatprep.subr.bf16.mxu0 %v2168_v1 }
  0xba   : > { %1983 = vmatpush3.bf16.msra.mxu0 %v544_v54 }
  0xbb   : > { %1994 = vmatprep.subr.bf16.mxu0 %v2168_v1 }
  0xbd   : > { %1985 = vmatmul.mubr.msk.bf16.vlgmr.msra.gmra.mrb[4].mxu0 %vm406_vm0, %v2270_v12 }
  0xbe   : > { %1996 = vmatprep.mubr.msk.bf16.mxu0 %vm2169_vm1, %v2168_v1 }
  0xe7   : > { %v532_v28 = vpop.f32.mrb[0].mxu1 }
  0xe8   : > { %v533_v29 = vadd.f32 %v1818_v27, %v532_v28  ;;  %v1978_v30 = vpop.f32.mrb[1].mxu1 }
  0xe9   : > { %v535_v31 = vpop.f32.mrb[2].mxu1 }
  0xea   : > { %v536_v32 = vadd.f32 %v1818_v27, %v535_v31  ;;  %v1979_v33 = vpop.f32.mrb[3].mxu1  ;;  %v1834_v27 = vld [vmem:[%s2623_s5 + $0x38] sm:$0xff] }
  0xeb   : > { %v768_v28 = vpack.c.bf16 %v1834_v27, %v1833_v25  ;;  %v1836_v33 = vld [vmem:[%s2624_s6 + $0x1] ss:$0 sm:$0xff]  ;;  %v1860_v25 = vld [vmem:[%s2623_s5 + $0x58] sm:$0xff] }
  0xec   : > { %v594_v34 = vpack.c.bf16 %v536_v32, %v533_v29 }
  0xee   : > { %v600_v35 = vsel %vm595_vm2, %v594_v34, 0 }
  0xef   : > { %1989 = vmatpush3.bf16.xpose.msra.mxu1 %v600_v35 }
  0xf0   : > { %2000 = vmatprep.subr.bf16.mxu1 %v2168_v1 }
 0x188   : > { %v476_v39 = vpop.f32.mrb[0].mxu0 }
 0x189   : > { %v477_v40 = vadd.f32 %v1816_v36, %v476_v39  ;;  %v1970_v41 = vpop.f32.mrb[1].mxu0 }
 0x18a   : > { %v479_v42 = vpop.f32.mrb[2].mxu0  ;;  %v1829_v41 = vld [vmem:[%s2622_s4 + $0x1] ss:$0 sm:$0xff] }
 0x18b   : > { %v593_v44 = vpack.c.bf16 %v477_v40, %v477_v40  ;;  %v1971_v45 = vpop.f32.mrb[3].mxu0 }
 0x18c   : > { %v1838_v45 = vld [vmem:[%s2625_s7 + $0x20] sm:$0xff] }
 0x18d   : > { %1991 = vmatmul.mubr.msk.bf16.vlgmr.msra.gmra.mrb[4].mxu1 %vm595_vm2, %v593_v44 }
 0x18e   : > { %2001 = vmatpush3.bf16.msra.mxu1 %v712_v43  ;;  %2004 = vmatprep.mubr.msk.bf16.mxu1 %vm2169_vm1, %v2168_v1 }
 0x18f   : > { %2002 = vmatprep.subr.bf16.mxu1 %v2168_v1 }
 0x190   : > { %v586_v2 = vpop.f32.mrb[4].mxu0 }
 0x191   : > { %v1986_v3 = vpop.f32.mrb[5].mxu0  ;;  %v587_v11 = vadd.f32 %v1820_v10, %v586_v2 }
 0x192   : > { %2003 = vmatpush3.bf16.msra.mxu1 %v713_v48  ;;  %v589_v13 = vpop.f32.mrb[6].mxu0  ;;  %v823_v48 = vpack.c.bf16 %v1839_v46, %v1838_v45 }
 0x193   : > { %2016 = vmatprep.subr.bf16.mxu1 %v2168_v1  ;;  %v1987_v14 = vpop.f32.mrb[7].mxu0  ;;  %v590_v15 = vadd.f32 %v1820_v10, %v589_v13 }
 0x194   : > { %v705_v14 = vld [vmem:[%s2627_s9] sm:$0xff] }
 0x195   : > { %2005 = vmatmul.mubr.msk.bf16.vlgmr.msra.gmra.mrb[8].mxu1 %vm406_vm0, %v2299_v26  ;;  %v656_v16 = vpack.c.bf16 %v590_v15, %v587_v11  ;;  %v706_v15 = vpack.c.bf16 %v705_v14, %v705_v14 }
 0x196   : > { %2020 = vmatprep.mubr.msk.bf16.mxu1 %vm2169_vm1, %v2168_v1  ;;  %2017 = vmatpush3.bf16.msra.mxu1 %v823_v48 }
 0x197   : > { %v662_v17 = vsel %vm660_vm4, %v656_v16, 0  ;;  %2018 = vmatprep.subr.bf16.mxu1 %v2168_v1  ;;  %v1037_v19 = vsel %vm989_vm5, %v706_v15, 0 }
 0x198   : > { %1995 = vmatpush3.bf16.msra.mxu0 %v662_v17 }
 0x199   : > { %2008 = vmatprep.subr.bf16.mxu0 %v2168_v1 }
 0x19a   : > { %2019 = vmatpush3.bf16.msra.mxu1 %v824_v50 }
 0x19b   : > { %2030 = vmatprep.subr.bf16.mxu1 %v2168_v1 }
 0x19d   : > { %2021 = vmatmul.mubr.msk.bf16.vlgmr.msra.gmra.mrb[12].mxu1 %vm406_vm0, %v2270_v12 }
 0x19e   : > { %2032 = vmatprep.mubr.msk.bf16.mxu1 %vm2169_vm1, %v2168_v1 }
 0x260   : > { %v636_v55 = vpop.f32.mrb[4].mxu1 }
 0x261   : > { %v642_v56 = vmul.f32 0.35355338, %v636_v55  ;;  %v1992_v57 = vpop.f32.mrb[5].mxu1 }
 0x262   : > { %v639_v58 = vpop.f32.mrb[6].mxu1  ;;  %v1843_v57 = vld [vmem:[%s2626_s8 + $0x1] ss:$0 sm:$0xff] }
 0x263   : > { %v1993_v59 = vpop.f32.mrb[7].mxu1  ;;  %v644_v60 = vsel %vm643_vm3, %v642_v56, -inf }
 0x264   : > { %645 = vmax.xlane.f32.xlu0 %v644_v60 }
 0x268   : > { %v756_v61 = vpop.f32.mrb[8].mxu1 }
 0x269   : > { %v2006_v62 = vpop.f32.mrb[9].mxu1  ;;  %v757_v43 = vadd.f32 %v1829_v41, %v756_v61 }
 0x26a   : > { %v759_v63 = vpop.f32.mrb[10].mxu1 }
 0x26b   : > { %v2007_v0 = vpop.f32.mrb[11].mxu1  ;;  %v874_v44 = vpack.c.bf16 %v757_v43, %v757_v43  ;;  %v1862_v43 = vld [vmem:[%s2624_s6 + $0x2] ss:$0 sm:$0xff] }
 0x270   : > { %v867_v58 = vpop.f32.mrb[12].mxu1 }
 0x271   : > { %v868_v59 = vadd.f32 %v1843_v57, %v867_v58  ;;  %v2022_v60 = vpop.f32.mrb[13].mxu1 }
 0x272   : > { %v870_v61 = vpop.f32.mrb[14].mxu1 }
 0x273   : > { %v871_v62 = vadd.f32 %v1843_v57, %v870_v61  ;;  %v2023_v63 = vpop.f32.mrb[15].mxu1  ;;  %v1855_v57 = vld [vmem:[%s2622_s4 + $0x2] ss:$0 sm:$0xff] }
 0x275   : > { %v935_v0 = vpack.c.bf16 %v871_v62, %v868_v59 }
 0x2f1   : > { %v646_v5 = vpop.xlane.xlu0 %645 }
 0x2f2   : > { %v647_v6 = vsub.f32 %v642_v56, %v646_v5 }
 0x2f4   : > { %v648_v7 = vmul.f32 1.442695, %v647_v6 }
 0x2f6   : > { %2144 = vpow2.f32 %v648_v7 }
 0x300   : > { %v2145_v8 = vpop.eup %2144 }
 0x301   : > { %v650_v9 = vsel %vm643_vm3, %v2145_v8, 0.0 }
 0x302   : > { %651 = vadd.xlane.f32.xlu1 %v650_v9  ;;  %v1847_v9 = vld [vmem:[%s2627_s9 + $0x8] sm:$0xff] }
 0x303   : > { %v985_v10 = vpack.c.bf16 %v1847_v9, %v1847_v9 }
 0x305   : > { %v991_v11 = vsel %vm989_vm5, %v985_v10, 0 }
 0x38f   : > { %v652_v18 = vpop.xlane.xlu1 %651 }
 0x390   : > { %2146 = vrcp.f32 %v652_v18 }
 0x39a   : > { %v2147_v21 = vpop.eup %2146 }
 0x39b   : > { %v654_v22 = vmul.f32 %v2147_v21, %v2145_v8  ;;  %v940_v8 = vsel %vm660_vm4, %v935_v0, 0  ;;  %v1858_v21 = vld [vmem:[%s2623_s5 + $0x48] sm:$0xff]  ;;  %v1864_v0 = vld [vmem:[%s2625_s7 + $0x40] sm:$0xff] }
 0x39c   : > { %2031 = vmatpush3.bf16.msra.mxu1 %v940_v8 }
 0x39d   : > { %v655_v24 = vpack.c.bf16 %v654_v22, %v654_v22  ;;  %2042 = vmatprep.subr.bf16.mxu1 %v2168_v1  ;;  %v1139_v22 = vpack.c.bf16 %v1858_v21, %v1857_v20 }
 0x39f   : > { %1997 = vmatmul.mubr.msk.bf16.vlgmr.msra.gmra.mrb[8].mxu0 %vm643_vm3, %v655_v24  ;;  %v1859_v24 = vld [vmem:[%s2623_s5 + $0x50] sm:$0xff] }
 0x3a0   : > { %2009 = vmatpush3.bf16.msra.mxu0 %v767_v23  ;;  %2012 = vmatprep.mubr.msk.bf16.mxu0 %vm2169_vm1, %v2168_v1  ;;  %v1140_v27 = vpack.c.bf16 %v1860_v25, %v1859_v24 }
 0x3a1   : > { %2010 = vmatprep.subr.bf16.mxu0 %v2168_v1 }
 0x3a4   : > { %2011 = vmatpush3.bf16.msra.mxu0 %v768_v28  ;;  %v1850_v28 = vld [vmem:[%s2621_s3 + $0x40] sm:$0xff] }
 0x3a5   : > { %2024 = vmatprep.subr.bf16.mxu0 %v2168_v1 }
 0x3a7   : > { %2013 = vmatmul.mubr.msk.bf16.vlgmr.msra.gmra.mrb[12].mxu0 %vm406_vm0, %v2270_v12 }
 0x3a8   : > { %2026 = vmatprep.mubr.msk.bf16.mxu0 %vm2169_vm1, %v2168_v1 }
 0x472   : > { %v2380_v29 = vpop.f32.mrb[8].mxu0 }
 0x473   : > { %v1998_v30 = vpop.f32.mrb[9].mxu0  ;;  %v704_v23 = vpack.c.bf16 %v2380_v29, %v2380_v29  ;;  %v1851_v29 = vld [vmem:[%s2621_s3 + $0x48] sm:$0xff] }
 0x474   : > { %v701_v31 = vpop.f32.mrb[10].mxu0 }
 0x475   : > { %v1999_v32 = vpop.f32.mrb[11].mxu0  ;;  %v1084_v31 = vpack.c.bf16 %v1851_v29, %v1850_v28 }
 0x47a   : > { %v811_v34 = vpop.f32.mrb[12].mxu0 }
 0x47b   : > { %v2014_v35 = vpop.f32.mrb[13].mxu0  ;;  %v812_v37 = vadd.f32 %v1836_v33, %v811_v34  ;;  %v1852_v34 = vld [vmem:[%s2621_s3 + $0x50] sm:$0xff] }
 0x47c   : > { %v814_v36 = vpop.f32.mrb[14].mxu0  ;;  %v1853_v35 = vld [vmem:[%s2621_s3 + $0x58] sm:$0xff] }
 0x47d   : > { %v815_v38 = vadd.f32 %v1836_v33, %v814_v36  ;;  %v2015_v39 = vpop.f32.mrb[15].mxu0 }
 0x47f   : > { %v875_v40 = vpack.c.bf16 %v815_v38, %v812_v37  ;;  %v1085_v38 = vpack.c.bf16 %v1853_v35, %v1852_v34  ;;  %v1875_v34 = vld [vmem:[%s2621_s3 + $0x60] sm:$0xff]  ;;  %v1876_v35 = vld [vmem:[%s2621_s3 + $0x68] sm:$0xff] }
 0x481   : > { %v880_v42 = vsel %vm595_vm2, %v875_v40, 0 }
 0x482   : > { %2025 = vmatpush3.bf16.xpose.msra.mxu0 %v880_v42 }
 0x483   : > { %2036 = vmatprep.subr.bf16.mxu0 %v2168_v1 }
 0x489   : > { %2027 = vmatmul.mubr.msk.bf16.vlgmr.msra.gmra.mrb[16].mxu0 %vm595_vm2, %v874_v44 }
 0x48a   : > { %2038 = vmatprep.mubr.msk.bf16.mxu0 %vm2169_vm1, %v2168_v1  ;;  %2037 = vmatpush3.bf16.msra.mxu0 %v991_v11 }
 0x48b   : > { %2048 = vmatprep.subr.bf16.mxu0 %v2168_v1 }
 0x55c   : > { %v916_v51 = vpop.f32.mrb[16].mxu0 }
 0x55d   : > { %v922_v52 = vmul.f32 0.35355338, %v916_v51  ;;  %v2028_v53 = vpop.f32.mrb[17].mxu0 }
 0x55e   : > { %v919_v54 = vpop.f32.mrb[18].mxu0 }
 0x55f   : > { %v2029_v55 = vpop.f32.mrb[19].mxu0  ;;  %v923_v56 = vsel %vm643_vm3, %v922_v52, -inf }
 0x560   : > { %924 = vmax.xlane.f32.xlu1 %v923_v56 }
 0x5ed   : > { %v925_v2 = vpop.xlane.xlu1 %924 }
 0x5ee   : > { %v926_v3 = vsub.f32 %v922_v52, %v925_v2  ;;  %v1865_v2 = vld [vmem:[%s2625_s7 + $0x48] sm:$0xff] }
 0x5f0   : > { %v927_v5 = vmul.f32 1.442695, %v926_v3  ;;  %v1866_v3 = vld [vmem:[%s2625_s7 + $0x50] sm:$0xff] }
 0x5f2   : > { %2148 = vpow2.f32 %v927_v5  ;;  %v1195_v5 = vpack.c.bf16 %v1865_v2, %v1864_v0 }
 0x5fc   : > { %v2149_v6 = vpop.eup %2148 }
 0x5fd   : > { %v929_v7 = vsel %vm643_vm3, %v2149_v6, 0.0 }
 0x5fe   : > { %930 = vadd.xlane.f32.xlu0 %v929_v7 }
 0x68b   : > { %v931_v13 = vpop.xlane.xlu0 %930 }
 0x68c   : > { %2150 = vrcp.f32 %v931_v13 }
 0x696   : > { %v2151_v16 = vpop.eup %2150 }
 0x697   : > { %v933_v17 = vmul.f32 %v2151_v16, %v2149_v6  ;;  %v1867_v6 = vld [vmem:[%s2625_s7 + $0x58] sm:$0xff] }
 0x698   : > { %v1196_v7 = vpack.c.bf16 %v1867_v6, %v1866_v3 }
 0x699   : > { %v934_v18 = vpack.c.bf16 %v933_v17, %v933_v17 }
 0x69b   : > { %2033 = vmatmul.mubr.msk.bf16.vlgmr.msra.gmra.mrb[16].mxu1 %vm643_vm3, %v934_v18 }
 0x69c   : > { %2043 = vmatpush3.bf16.msra.mxu1 %v1037_v19  ;;  %2044 = vmatprep.mubr.msk.bf16.mxu1 %vm2169_vm1, %v2168_v1 }
 0x69d   : > { %2056 = vmatprep.subr.bf16.mxu1 %v2168_v1 }
 0x6a3   : > { %2045 = vmatmul.mubr.msk.bf16.vlgmr.msra.gmra.mrb[20].mxu1 %vm595_vm2, %v704_v23 }
 0x6a4   : > { %2057 = vmatpush3.bf16.msra.mxu1 %v1139_v22  ;;  %2060 = vmatprep.mubr.msk.bf16.mxu1 %vm2169_vm1, %v2168_v1  ;;  %v1869_v22 = vld [vmem:[%s2626_s8 + $0x2] ss:$0 sm:$0xff] }
 0x6a5   : > { %2058 = vmatprep.subr.bf16.mxu1 %v2168_v1 }
 0x6a8   : > { %2059 = vmatpush3.bf16.msra.mxu1 %v1140_v27 }
 0x6a9   : > { %2072 = vmatprep.subr.bf16.mxu1 %v2168_v1 }
 0x6ab   : > { %2061 = vmatmul.mubr.msk.bf16.vlgmr.msra.gmra.mrb[24].mxu1 %vm406_vm0, %v2270_v12 }
 0x6ac   : > { %2074 = vmatprep.mubr.msk.bf16.mxu1 %vm2169_vm1, %v2168_v1 }
 0x76e   : > { %v976_v30 = vpop.f32.mrb[16].mxu1 }
 0x76f   : > { %v982_v32 = vpack.c.bf16 %v976_v30, %v976_v30  ;;  %v2034_v33 = vpop.f32.mrb[17].mxu1  ;;  %v1873_v30 = vld [vmem:[%s2627_s9 + $0x10] sm:$0xff] }
 0x770   : > { %v979_v36 = vpop.f32.mrb[18].mxu1 }
 0x771   : > { %v2035_v37 = vpop.f32.mrb[19].mxu1  ;;  %2039 = vmatmul.mubr.msk.bf16.vlgmr.msra.gmra.mrb[20].mxu0 %vm595_vm2, %v982_v32 }
 0x772   : > { %2049 = vmatpush3.bf16.msra.mxu0 %v1084_v31  ;;  %2052 = vmatprep.mubr.msk.bf16.mxu0 %vm2169_vm1, %v2168_v1  ;;  %v1357_v31 = vpack.c.bf16 %v1873_v30, %v1873_v30 }
 0x773   : > { %2050 = vmatprep.subr.bf16.mxu0 %v2168_v1 }
 0x774   : > { %v1362_v32 = vsel %vm989_vm5, %v1357_v31, 0 }
 0x776   : > { %v1073_v39 = vpop.f32.mrb[20].mxu1  ;;  %2051 = vmatpush3.bf16.msra.mxu0 %v1085_v38  ;;  %v1410_v38 = vpack.c.bf16 %v1876_v35, %v1875_v34 }
 0x777   : > { %v2046_v40 = vpop.f32.mrb[21].mxu1  ;;  %2064 = vmatprep.subr.bf16.mxu0 %v2168_v1 }
 0x778   : > { %v1076_v41 = vpop.f32.mrb[22].mxu1  ;;  %v1877_v40 = vld [vmem:[%s2621_s3 + $0x70] sm:$0xff] }
 0x779   : > { %v2047_v42 = vpop.f32.mrb[23].mxu1  ;;  %2053 = vmatmul.mubr.msk.bf16.vlgmr.msra.gmra.mrb[24].mxu0 %vm406_vm0, %v2299_v26  ;;  %v1878_v41 = vld [vmem:[%s2621_s3 + $0x78] sm:$0xff] }
 0x77a   : > { %2068 = vmatprep.mubr.msk.bf16.mxu0 %vm2169_vm1, %v2168_v1  ;;  %2065 = vmatpush3.bf16.msra.mxu0 %v1195_v5  ;;  %v1411_v42 = vpack.c.bf16 %v1878_v41, %v1877_v40 }
 0x77b   : > { %2066 = vmatprep.subr.bf16.mxu0 %v2168_v1 }
 0x77e   : > { %v1183_v44 = vpop.f32.mrb[24].mxu1  ;;  %2067 = vmatpush3.bf16.msra.mxu0 %v1196_v7 }
 0x77f   : > { %v1184_v45 = vadd.f32 %v1862_v43, %v1183_v44  ;;  %v2062_v46 = vpop.f32.mrb[25].mxu1  ;;  %2078 = vmatprep.subr.bf16.mxu0 %v2168_v1  ;;  %v1883_v44 = vld [vmem:[%s2623_s5 + $0x68] sm:$0xff] }
 0x780   : > { %v1186_v47 = vpop.f32.mrb[26].mxu1 }
 0x781   : > { %v1187_v48 = vadd.f32 %v1862_v43, %v1186_v47  ;;  %v2063_v49 = vpop.f32.mrb[27].mxu1  ;;  %2069 = vmatmul.mubr.msk.bf16.vlgmr.msra.gmra.mrb[28].mxu0 %vm406_vm0, %v2270_v12  ;;  %v1882_v43 = vld [vmem:[%s2623_s5 + $0x60] sm:$0xff] }
 0x782   : > { %2080 = vmatprep.mubr.msk.bf16.mxu0 %vm2169_vm1, %v2168_v1  ;;  %v1465_v46 = vpack.c.bf16 %v1883_v44, %v1882_v43  ;;  %v1884_v49 = vld [vmem:[%s2623_s5 + $0x70] sm:$0xff] }
 0x783   : > { %v1247_v50 = vpack.c.bf16 %v1187_v48, %v1184_v45 }
 0x785   : > { %v1252_v51 = vsel %vm595_vm2, %v1247_v50, 0 }
 0x786   : > { %2073 = vmatpush3.bf16.xpose.msra.mxu1 %v1252_v51 }
 0x787   : > { %2084 = vmatprep.subr.bf16.mxu1 %v2168_v1 }
 0x844   : > { %v1027_v52 = vpop.f32.mrb[20].mxu0 }
 0x845   : > { %v2480_v53 = vadd.f32 %v1073_v39, %v1027_v52  ;;  %v2040_v54 = vpop.f32.mrb[21].mxu0 }
 0x846   : > { %v1030_v55 = vpop.f32.mrb[22].mxu0 }
 0x847   : > { %v2041_v56 = vpop.f32.mrb[23].mxu0 }
 0x84c   : > { %v1128_v58 = vpop.f32.mrb[24].mxu0 }
 0x84d   : > { %v1129_v59 = vadd.f32 %v1855_v57, %v1128_v58  ;;  %v2054_v60 = vpop.f32.mrb[25].mxu0 }
 0x84e   : > { %v1131_v61 = vpop.f32.mrb[26].mxu0 }
 0x84f   : > { %v1246_v62 = vpack.c.bf16 %v1129_v59, %v1129_v59  ;;  %v2055_v63 = vpop.f32.mrb[27].mxu0 }
 0x850   : > { %v1887_v63 = vld [vmem:[%s2624_s6 + $0x3] ss:$0 sm:$0xff] }
 0x851   : > { %2075 = vmatmul.mubr.msk.bf16.vlgmr.msra.gmra.mrb[28].mxu1 %vm595_vm2, %v1246_v62 }
 0x852   : > { %2086 = vmatprep.mubr.msk.bf16.mxu1 %vm2169_vm1, %v2168_v1  ;;  %2085 = vmatpush3.bf16.msra.mxu1 %v1362_v32 }
 0x853   : > { %2098 = vmatprep.subr.bf16.mxu1 %v2168_v1 }
 0x854   : > { %v1239_v15 = vpop.f32.mrb[28].mxu0 }
 0x855   : > { %v2070_v16 = vpop.f32.mrb[29].mxu0  ;;  %v1240_v23 = vadd.f32 %v1869_v22, %v1239_v15  ;;  %v1891_v15 = vld [vmem:[%s2625_s7 + $0x70] sm:$0xff] }
 0x856   : > { %v1242_v24 = vpop.f32.mrb[30].mxu0 }
 0x857   : > { %v2071_v25 = vpop.f32.mrb[31].mxu0  ;;  %v1243_v27 = vadd.f32 %v1869_v22, %v1242_v24 }
 0x859   : > { %v1307_v28 = vpack.c.bf16 %v1243_v27, %v1240_v23 }
 0x85b   : > { %v1312_v29 = vsel %vm660_vm4, %v1307_v28, 0 }
 0x85c   : > { %2079 = vmatpush3.bf16.msra.mxu0 %v1312_v29 }
 0x85d   : > { %2090 = vmatprep.subr.bf16.mxu0 %v2168_v1 }
 0x924   : > { %v1288_v8 = vpop.f32.mrb[28].mxu1 }
 0x925   : > { %v1294_v9 = vmul.f32 0.35355338, %v1288_v8  ;;  %v2076_v10 = vpop.f32.mrb[29].mxu1 }
 0x926   : > { %v1291_v11 = vpop.f32.mrb[30].mxu1 }
 0x927   : > { %v2077_v13 = vpop.f32.mrb[31].mxu1  ;;  %v1295_v14 = vsel %vm643_vm3, %v1294_v9, -inf }
 0x928   : > { %1296 = vmax.xlane.f32.xlu1 %v1295_v14  ;;  %v1889_v13 = vld [vmem:[%s2625_s7 + $0x60] sm:$0xff]  ;;  %v1890_v14 = vld [vmem:[%s2625_s7 + $0x68] sm:$0xff] }
 0x929   : > { %v1521_v16 = vpack.c.bf16 %v1890_v14, %v1889_v13 }
 0x9b5   : > { %v1297_v17 = vpop.xlane.xlu1 %1296 }
 0x9b6   : > { %v1298_v18 = vsub.f32 %v1294_v9, %v1297_v17  ;;  %v1880_v9 = vld [vmem:[%s2622_s4 + $0x3] ss:$0 sm:$0xff]  ;;  %v1892_v17 = vld [vmem:[%s2625_s7 + $0x78] sm:$0xff] }
 0x9b8   : > { %v1299_v19 = vmul.f32 1.442695, %v1298_v18  ;;  %v1522_v18 = vpack.c.bf16 %v1892_v17, %v1891_v15 }
 0x9ba   : > { %2152 = vpow2.f32 %v1299_v19 }
 0x9c4   : > { %v2153_v20 = vpop.eup %2152 }
 0x9c5   : > { %v1301_v21 = vsel %vm643_vm3, %v2153_v20, 0.0 }
 0x9c6   : > { %1302 = vadd.xlane.f32.xlu0 %v1301_v21 }
 0xa53   : > { %v1303_v33 = vpop.xlane.xlu0 %1302 }
 0xa54   : > { %2154 = vrcp.f32 %v1303_v33 }
 0xa5e   : > { %v2155_v36 = vpop.eup %2154 }
 0xa5f   : > { %v1305_v37 = vmul.f32 %v2155_v36, %v2153_v20 }
 0xa61   : > { %v1306_v39 = vpack.c.bf16 %v1305_v37, %v1305_v37 }
 0xa63   : > { %2081 = vmatmul.mubr.msk.bf16.vlgmr.msra.gmra.mrb[32].mxu0 %vm643_vm3, %v1306_v39 }
 0xa64   : > { %2091 = vmatpush3.bf16.msra.mxu0 %v1410_v38  ;;  %2094 = vmatprep.mubr.msk.bf16.mxu0 %vm2169_vm1, %v2168_v1  ;;  %v1898_v38 = vld [vmem:[%s2627_s9 + $0x18] sm:$0xff] }
 0xa65   : > { %2092 = vmatprep.subr.bf16.mxu0 %v2168_v1  ;;  %v1683_v39 = vpack.c.bf16 %v1898_v38, %v1898_v38 }
 0xa67   : > { %v1688_v40 = vsel %vm989_vm5, %v1683_v39, 0 }
 0xa68   : > { %2093 = vmatpush3.bf16.msra.mxu0 %v1411_v42 }
 0xa69   : > { %2106 = vmatprep.subr.bf16.mxu0 %v2168_v1 }
 0xa6b   : > { %2095 = vmatmul.mubr.msk.bf16.vlgmr.msra.gmra.mrb[36].mxu0 %vm406_vm0, %v2299_v26  ;;  %v1885_v26 = vld [vmem:[%s2623_s5 + $0x78] sm:$0xff] }
 0xa6c   : > { %2110 = vmatprep.mubr.msk.bf16.mxu0 %vm2169_vm1, %v2168_v1  ;;  %v1466_v52 = vpack.c.bf16 %v1885_v26, %v1884_v49  ;;  %2107 = vmatpush3.bf16.msra.mxu0 %v1521_v16 }
 0xa6d   : > { %2108 = vmatprep.subr.bf16.mxu0 %v2168_v1 }
 0xa70   : > { %2109 = vmatpush3.bf16.msra.mxu0 %v1522_v18 }
 0xa71   : > { %2120 = vmatprep.subr.bf16.mxu0 %v2168_v1 }
 0xa73   : > { %2111 = vmatmul.mubr.msk.bf16.vlgmr.msra.gmra.mrb[40].mxu0 %vm406_vm0, %v2270_v12 }
 0xa74   : > { %2122 = vmatprep.mubr.msk.bf16.mxu0 %vm2169_vm1, %v2168_v1 }
 0xb36   : > { %v1348_v45 = vpop.f32.mrb[32].mxu0 }
 0xb37   : > { %v1354_v47 = vpack.c.bf16 %v1348_v45, %v1348_v45  ;;  %v2082_v48 = vpop.f32.mrb[33].mxu0 }
 0xb38   : > { %v1351_v50 = vpop.f32.mrb[34].mxu0 }
 0xb39   : > { %v2083_v51 = vpop.f32.mrb[35].mxu0  ;;  %2087 = vmatmul.mubr.msk.bf16.vlgmr.msra.gmra.mrb[32].mxu1 %vm595_vm2, %v1354_v47 }
 0xb3a   : > { %2099 = vmatpush3.bf16.msra.mxu1 %v1465_v46  ;;  %2102 = vmatprep.mubr.msk.bf16.mxu1 %vm2169_vm1, %v2168_v1 }
 0xb3b   : > { %2100 = vmatprep.subr.bf16.mxu1 %v2168_v1 }
 0xb3e   : > { %v1454_v54 = vpop.f32.mrb[36].mxu0  ;;  %2101 = vmatpush3.bf16.msra.mxu1 %v1466_v52  ;;  %v1900_v52 = vld [vmem:[%s2628_s10] ss:$0 sm:$0xff] }
 0xb3f   : > { %v2096_v55 = vpop.f32.mrb[37].mxu0  ;;  %2114 = vmatprep.subr.bf16.mxu1 %v2168_v1  ;;  %v1455_v10 = vadd.f32 %v1880_v9, %v1454_v54 }
 0xb40   : > { %v1457_v56 = vpop.f32.mrb[38].mxu0 }
 0xb41   : > { %v2097_v57 = vpop.f32.mrb[39].mxu0  ;;  %2103 = vmatmul.mubr.msk.bf16.vlgmr.msra.gmra.mrb[36].mxu1 %vm406_vm0, %v2270_v12  ;;  %v1572_v11 = vpack.c.bf16 %v1455_v10, %v1455_v10 }
 0xb42   : > { %2116 = vmatprep.mubr.msk.bf16.mxu1 %vm2169_vm1, %v2168_v1 }
 0xb46   : > { %v1565_v25 = vpop.f32.mrb[40].mxu0 }
 0xb47   : > { %v2112_v27 = vpop.f32.mrb[41].mxu0 }
 0xb48   : > { %v1568_v33 = vpop.f32.mrb[42].mxu0 }
 0xb49   : > { %v2113_v34 = vpop.f32.mrb[43].mxu0 }
 0xc0c   : > { %v1398_v58 = vpop.f32.mrb[32].mxu1 }
 0xc0d   : > { %v2561_v59 = vadd.f32 %v1398_v58, %v2480_v53  ;;  %v2088_v60 = vpop.f32.mrb[33].mxu1 }
 0xc0e   : > { %v1401_v61 = vpop.f32.mrb[34].mxu1 }
 0xc0f   : > { %v2089_v62 = vpop.f32.mrb[35].mxu1 }
 0xc14   : > { %v1509_v0 = vpop.f32.mrb[36].mxu1 }
 0xc15   : > { %v2104_v2 = vpop.f32.mrb[37].mxu1  ;;  %v1510_v5 = vadd.f32 %v1887_v63, %v1509_v0 }
 0xc16   : > { %v1512_v3 = vpop.f32.mrb[38].mxu1 }
 0xc17   : > { %v1513_v6 = vadd.f32 %v1887_v63, %v1512_v3  ;;  %v2105_v7 = vpop.f32.mrb[39].mxu1 }
 0xc19   : > { %v1573_v8 = vpack.c.bf16 %v1513_v6, %v1510_v5 }
 0xc1b   : > { %v1578_v53 = vsel %vm595_vm2, %v1573_v8, 0 }
 0xc1c   : > { %2115 = vmatpush3.bf16.xpose.msra.mxu1 %v1578_v53 }
 0xc1d   : > { %2126 = vmatprep.subr.bf16.mxu1 %v2168_v1 }
 0xc23   : > { %2117 = vmatmul.mubr.msk.bf16.vlgmr.msra.gmra.mrb[40].mxu1 %vm595_vm2, %v1572_v11 }
 0xc24   : > { %2128 = vmatprep.mubr.msk.bf16.mxu1 %vm2169_vm1, %v2168_v1  ;;  %v1894_v1 = vld [vmem:[%s2626_s8 + $0x3] ss:$0 sm:$0xff]  ;;  %2127 = vmatpush3.bf16.msra.mxu1 %v1688_v40 }
 0xc25   : > { %v1566_v32 = vadd.f32 %v1894_v1, %v1565_v25  ;;  %v1569_v35 = vadd.f32 %v1894_v1, %v1568_v33 }
 0xc27   : > { %v1633_v36 = vpack.c.bf16 %v1569_v35, %v1566_v32 }
 0xc29   : > { %v1638_v37 = vsel %vm660_vm4, %v1633_v36, 0 }
 0xc2a   : > { %2121 = vmatpush3.bf16.msra.mxu0 %v1638_v37 }
 0xcf6   : > { %v1614_v19 = vpop.f32.mrb[40].mxu1 }
 0xcf7   : > { %v1620_v20 = vmul.f32 0.35355338, %v1614_v19  ;;  %v2118_v21 = vpop.f32.mrb[41].mxu1 }
 0xcf8   : > { %v1617_v22 = vpop.f32.mrb[42].mxu1 }
 0xcf9   : > { %v2119_v23 = vpop.f32.mrb[43].mxu1  ;;  %v1621_v24 = vsel %vm643_vm3, %v1620_v20, -inf }
 0xcfa   : > { %1622 = vmax.xlane.f32.xlu1 %v1621_v24 }
 0xd87   : > { %v1623_v28 = vpop.xlane.xlu1 %1622 }
 0xd88   : > { %v1624_v29 = vsub.f32 %v1620_v20, %v1623_v28 }
 0xd8a   : > { %v1625_v30 = vmul.f32 1.442695, %v1624_v29 }
 0xd8c   : > { %2156 = vpow2.f32 %v1625_v30 }
 0xd96   : > { %v2157_v31 = vpop.eup %2156 }
 0xd97   : > { %v1627_v12 = vsel %vm643_vm3, %v2157_v31, 0.0 }
 0xd98   : > { %1628 = vadd.xlane.f32.xlu0 %v1627_v12 }
 0xe25   : > { %v1629_v41 = vpop.xlane.xlu0 %1628 }
 0xe26   : > { %2158 = vrcp.f32 %v1629_v41 }
 0xe30   : > { %v2159_v42 = vpop.eup %2158 }
 0xe31   : > { %v1631_v43 = vmul.f32 %v2159_v42, %v2157_v31 }
 0xe33   : > { %v1632_v44 = vpack.c.bf16 %v1631_v43, %v1631_v43 }
 0xe35   : > { %2123 = vmatmul.mubr.msk.bf16.vlgmr.msra.gmra.mrb[44].mxu0 %vm643_vm3, %v1632_v44 }
 0xf08   : > { %v1674_v45 = vpop.f32.mrb[44].mxu0 }
 0xf09   : > { %v1680_v46 = vpack.c.bf16 %v1674_v45, %v1674_v45  ;;  %v2124_v47 = vpop.f32.mrb[45].mxu0 }
 0xf0a   : > { %v1677_v48 = vpop.f32.mrb[46].mxu0 }
 0xf0b   : > { %v2125_v49 = vpop.f32.mrb[47].mxu0  ;;  %2129 = vmatmul.mubr.msk.bf16.vlgmr.msra.gmra.mrb[44].mxu1 %vm595_vm2, %v1680_v46 }
 0xfde   : > { %v1724_v26 = vpop.f32.mrb[44].mxu1 }
 0xfdf   : > { %v1730_v50 = vadd.f32 %v1724_v26, %v2561_v59  ;;  %v2130_v51 = vpop.f32.mrb[45].mxu1 }
 0xfe0   : > { %v1727_v54 = vpop.f32.mrb[46].mxu1 }
 0xfe1   : > { %v1731_v55 = vadd.f32 %v1730_v50, %v2255_v4  ;;  %v2131_v56 = vpop.f32.mrb[47].mxu1 }
 0xfe3   : > { %v1739_v57 = vadd.f32 %v1900_v52, %v1731_v55 }
 0xfe5   : > { %1740 = vst.msk [vmem:[%s401_s14] sm:$0xff] %vm406_vm0, %v1739_v57 }
 0xfe6 PF: > { %s21_s17 = sadd.s32 1, %s2166_s17  }
 0xfe7   : > { %p18_p4 = scmp.ge.s32.totalorder %s21_s17, 4  }
 0xfe9   :  { %20 = sbr.rel (!%p18_p4) target bundleno = 1 (0x1), region = 118 }

</bundles_post_ra>
